<compile_context>
chip_gen: v6e
topology: v6e:2x2x1
jax: 0.10.0
libtpu: 0.0.40
codegen_flags: <defaults>
</compile_context>

<pallas_src>
import jax
import jax.numpy as jnp
from jax.experimental import pallas as pl
from jax.experimental.pallas import tpu as pltpu

NUM_CLASSES = 7  # fc5 = nn.Linear(256, 7) in the reference module


def _round_up(x, m):
    return (x + m - 1) // m * m


def _pick_tk(k2=2048):
    """Reduction-tile size over fc2's output dim: 1024 on v7x, 512 on v5e/v6e."""
    try:
        kind = jax.devices()[0].device_kind.lower()
    except Exception:
        kind = ""
    tk = 1024 if ("v7" in kind or "7x" in kind) else 512
    return min(tk, k2)


# ----------------------------------------------------------------------------
# Fused kernel: fc1 (once) -> [fc2/fc3 tiled reduction] -> mix -> fc4 -> fc5(+ReLU)
# ----------------------------------------------------------------------------
def _fused_forward_kernel(x_ref, w1_ref, b1_ref, w2_ref, b2_ref, w3_ref, b3_ref,
                          mix_ref, w4_ref, b4_ref, w5_ref, b5_ref, o_ref,
                          h1_ref, acc_ref):
    f32 = jnp.float32
    bf16 = jnp.bfloat16
    k = pl.program_id(0)

    # --- first grid step: fc1 + ReLU (resident in VMEM for all steps), zero acc
    @pl.when(k == 0)
    def _():
        h1 = jnp.dot(x_ref[...], w1_ref[...], preferred_element_type=f32) + b1_ref[...]
        h1_ref[...] = jnp.maximum(h1, 0.0).astype(bf16)          # (Mp, 1024) bf16
        acc_ref[...] = jnp.zeros_like(acc_ref)                    # (Mp, 1024) f32

    # --- every step: one column-tile of fc2 (+bias+ReLU+bf16) feeding a row-tile
    #     of fc3, accumulated in f32.  No full (Mp, 2048) intermediate.
    h2 = jnp.dot(h1_ref[...], w2_ref[...], preferred_element_type=f32) + b2_ref[...]
    h2 = jnp.maximum(h2, 0.0).astype(bf16)                         # (Mp, tk)
    acc_ref[...] += jnp.dot(h2, w3_ref[...], preferred_element_type=f32)

    # --- last grid step: fc3 epilogue, Conv1d(k=1) as frame-mix matmul, fc4, fc5
    @pl.when(k == pl.num_programs(0) - 1)
    def _():
        h3 = jnp.maximum(acc_ref[...] + b3_ref[...], 0.0).astype(bf16)   # (Mp, 1024)
        # pooled[b, :] = sum_f cw[f] * h3[b*F + f, :]  (conv bias folded into b4)
        pooled = jnp.dot(mix_ref[...], h3, preferred_element_type=f32).astype(bf16)
        h4 = jnp.dot(pooled, w4_ref[...], preferred_element_type=f32) + b4_ref[...]
        h4 = jnp.maximum(h4, 0.0).astype(bf16)                            # (Bp, 256)
        h5 = jnp.dot(h4, w5_ref[...], preferred_element_type=f32) + b5_ref[...]
        # reference module applies ReLU to the fc5 logits
        o_ref[...] = jnp.maximum(h5, 0.0).astype(o_ref.dtype)            # (Bp, 128)


def _fused_forward_call(x_pad, packed):
    Mp, Kp = x_pad.shape
    Bp = packed["mix"].shape[0]
    K2 = packed["w2"].shape[1]            # 2048
    tk = _pick_tk(K2)
    nsteps = K2 // tk

    def const_spec(arr):
        n = arr.ndim
        return pl.BlockSpec(arr.shape, lambda k, _n=n: (0,) * _n)

    in_specs = [
        const_spec(x_pad),                                     # x       (Mp, Kp)
        const_spec(packed["w1"]), const_spec(packed["b1"]),    # w1, b1
        pl.BlockSpec((1024, tk), lambda k: (0, k)),            # w2 column tile
        pl.BlockSpec((1, tk),    lambda k: (0, k)),            # b2 tile
        pl.BlockSpec((tk, 1024), lambda k: (k, 0)),            # w3 row tile
        const_spec(packed["b3"]),                              # b3
        const_spec(packed["mix"]),                             # mix     (Bp, Mp)
        const_spec(packed["w4"]), const_spec(packed["b4"]),    # w4, b4 (+conv bias)
        const_spec(packed["w5"]), const_spec(packed["b5"]),    # w5, b5
    ]

    # ~0.49 GFLOP of matmuls, ~9 MB of weight streaming (bf16)
    cost = pl.CostEstimate(flops=int(4.9e8), transcendentals=0,
                           bytes_accessed=int(9.0e6))

    return pl.pallas_call(
        _fused_forward_kernel,
        out_shape=jax.ShapeDtypeStruct((Bp, 128), jnp.float32),
        grid=(nsteps,),
        in_specs=in_specs,
        out_specs=pl.BlockSpec((Bp, 128), lambda k: (0, 0)),
        scratch_shapes=[
            pltpu.VMEM((Mp, 1024), jnp.bfloat16),   # fc1 output (resident)
            pltpu.VMEM((Mp, 1024), jnp.float32),    # fc3 accumulator
        ],
        compiler_params=pltpu.CompilerParams(
            dimension_semantics=("arbitrary",),
            vmem_limit_bytes=32 * 1024 * 1024,
        ),
        cost_estimate=cost,
    )(x_pad, packed["w1"], packed["b1"], packed["w2"], packed["b2"],
      packed["w3"], packed["b3"], packed["mix"],
      packed["w4"], packed["b4"], packed["w5"], packed["b5"])


# ----------------------------------------------------------------------------
# Model wrapper (padding, argmax + cross-entropy glue on tiny (B, 7) logits)
# ----------------------------------------------------------------------------
def emotion_classifier_forward(packed, x, y, n_cls=NUM_CLASSES):
    b, f, p, c = x.shape                   # static under jit
    feat = p * c
    M = b * f
    Mp = packed["mix"].shape[1]            # static (array shape)
    Kp = packed["w1"].shape[0]             # 128

    # rearrange 'b f p c -> (b f) (p c)', pad to aligned tiles, cast to bf16
    h = x.reshape(M, feat).astype(jnp.bfloat16)
    x_pad = jnp.zeros((Mp, Kp), jnp.bfloat16).at[:M, :feat].set(h)

    logits_pad = _fused_forward_call(x_pad, packed)        # (Bp, 128) f32
    logits = logits_pad[:b, :n_cls]                        # (B, 7), post-ReLU

    preds = jnp.argmax(logits, axis=1)
    labels = jnp.squeeze(y).astype(jnp.int32).reshape(-1)
    logz = jax.nn.logsumexp(logits, axis=1)
    picked = jnp.take_along_axis(logits, labels[:, None], axis=1)[:, 0]
    loss = jnp.mean(logz - picked)
    return preds, loss


# ----------------------------------------------------------------------------
# Parameter init (PyTorch shapes) + one-time packing into kernel-ready layout
# ----------------------------------------------------------------------------
def _linear_init(key, fan_in, fan_out):
    kw, kb = jax.random.split(key)
    bound = 1.0 / jnp.sqrt(fan_in)
    w = jax.random.uniform(kw, (fan_in, fan_out), jnp.float32, -bound, bound)
    b = jax.random.uniform(kb, (fan_out,), jnp.float32, -bound, bound)
    return w, b


def init_params(key, kp=34):
    keys = jax.random.split(key, 6)
    w1, b1 = _linear_init(keys[0], 3 * kp, 1024)
    w2, b2 = _linear_init(keys[1], 1024, 2048)
    w3, b3 = _linear_init(keys[2], 2048, 1024)
    w4, b4 = _linear_init(keys[3], 1024, 256)
    w5, b5 = _linear_init(keys[4], 256, 7)
    # Conv1d(in_channels=27, out_channels=1, kernel_size=1): weight (1,27,1), bias (1,)
    kcw, kcb = jax.random.split(keys[5])
    cbound = 1.0 / jnp.sqrt(27.0)
    cw = jax.random.uniform(kcw, (1, 27), jnp.float32, -cbound, cbound)
    cb = jax.random.uniform(kcb, (1,), jnp.float32, -cbound, cbound)
    return dict(w1=w1, b1=b1, w2=w2, b2=b2, w3=w3, b3=b3,
                w4=w4, b4=b4, w5=w5, b5=b5, cw=cw, cb=cb)


def pack_params(params, batch_size, num_frames):
    """One-time (outside jit) packing: pad to aligned tiles, cast weights to bf16,
    fold conv bias into fc4's bias, build the frame-mix matrix."""
    feat = params["w1"].shape[0]            # 3*kp = 102
    Kp = _round_up(feat, 128)               # 128
    n_cls = params["w5"].shape[1]           # 7
    M = batch_size * num_frames
    Mp = _round_up(M, 8)
    Bp = _round_up(max(batch_size, 8), 8)

    w1 = jnp.zeros((Kp, 1024), jnp.bfloat16).at[:feat, :].set(
        params["w1"].astype(jnp.bfloat16))
    w5 = jnp.zeros((256, 128), jnp.bfloat16).at[:, :n_cls].set(
        params["w5"].astype(jnp.bfloat16))
    b5 = jnp.zeros((1, 128), jnp.float32).at[0, :n_cls].set(params["b5"])

    # Fold conv bias into fc4 bias: (mix@h3 + cb) @ w4 + b4 == mix@h3 @ w4 + (b4 + cb*sum_k w4[k,:])
    cb = params["cb"].reshape(())
    b4 = (params["b4"] + cb * params["w4"].sum(axis=0)).reshape(1, -1)

    # Frame-mix matrix for Conv1d(in=f, out=1, k=1): mix[i, i*f + j] = cw[j]
    # (zero for padded rows / padded batches, so padding never contaminates)
    cw = params["cw"].reshape(-1)                      # (f,)
    rows = jnp.arange(Bp)[:, None]
    cols = jnp.arange(Mp)[None, :]
    frame = cols - rows * num_frames
    valid = (rows < batch_size) & (frame >= 0) & (frame < num_frames)
    mix = jnp.where(valid, cw[jnp.clip(frame, 0, num_frames - 1)], 0.0
                    ).astype(jnp.bfloat16)

    return dict(
        w1=w1, b1=params["b1"].reshape(1, -1).astype(jnp.float32),
        w2=params["w2"].astype(jnp.bfloat16), b2=params["b2"].reshape(1, -1).astype(jnp.float32),
        w3=params["w3"].astype(jnp.bfloat16), b3=params["b3"].reshape(1, -1).astype(jnp.float32),
        w4=params["w4"].astype(jnp.bfloat16), b4=b4.astype(jnp.float32),
        w5=w5, b5=b5,
        mix=mix,
    )


if __name__ == "__main__":
    key = jax.random.PRNGKey(0)
    kx, ky, kparam = jax.random.split(key, 3)

    B, F, P, C = 2, 27, 34, 3          # frames=27 fixed by Conv1d(in_channels=27), kp=34
    x = jax.random.normal(kx, (B, F, P, C), dtype=jnp.float32)
    y = jax.random.randint(ky, (B, 1), 0, NUM_CLASSES)

    params = init_params(kparam, kp=P)
    packed = pack_params(params, batch_size=B, num_frames=F)   # packed once (bf16 weights)

    fwd = jax.jit(emotion_classifier_forward)
    preds, loss = fwd(packed, x, y)
    jax.block_until_ready((preds, loss))
    assert preds.shape == (B,) and loss.shape == ()
    assert bool(jnp.isfinite(loss))
    print("KERNEL_OK")
</pallas_src>

<mosaic_0001>
module attributes {stable_mosaic.version = 11 : i64} {
  func.func @_fused_forward_kernel(%arg0: i32, %arg1: memref<56x128xbf16, #tpu.memory_space<vmem>>, %arg2: memref<128x1024xbf16, #tpu.memory_space<vmem>>, %arg3: memref<1x1024xf32, #tpu.memory_space<vmem>>, %arg4: memref<1024x512xbf16, #tpu.memory_space<vmem>>, %arg5: memref<1x512xf32, #tpu.memory_space<vmem>>, %arg6: memref<512x1024xbf16, #tpu.memory_space<vmem>>, %arg7: memref<1x1024xf32, #tpu.memory_space<vmem>>, %arg8: memref<8x56xbf16, #tpu.memory_space<vmem>>, %arg9: memref<1024x256xbf16, #tpu.memory_space<vmem>>, %arg10: memref<1x256xf32, #tpu.memory_space<vmem>>, %arg11: memref<256x128xbf16, #tpu.memory_space<vmem>>, %arg12: memref<1x128xf32, #tpu.memory_space<vmem>>, %arg13: memref<8x128xf32, #tpu.memory_space<vmem>>, %arg14: memref<56x1024xbf16, #tpu.memory_space<vmem>>, %arg15: memref<56x1024xf32, #tpu.memory_space<vmem>>) attributes {dimension_semantics = [#tpu.dimension_semantics<arbitrary>], iteration_bounds = array<i64: 4>, scalar_prefetch = 0 : i64, scratch_operands = 2 : i64, tpu.core_type = #tpu.core_type<tc>, window_params = [{pipeline_mode = #tpu.pipeline_mode<synchronous>, transform_indices = @transform_0, window_bounds = array<i64: 56, 128>}, {pipeline_mode = #tpu.pipeline_mode<synchronous>, transform_indices = @transform_1, window_bounds = array<i64: 128, 1024>}, {pipeline_mode = #tpu.pipeline_mode<synchronous>, transform_indices = @transform_2, window_bounds = array<i64: 1, 1024>}, {transform_indices = @transform_3, window_bounds = array<i64: 1024, 512>}, {transform_indices = @transform_4, window_bounds = array<i64: 1, 512>}, {transform_indices = @transform_5, window_bounds = array<i64: 512, 1024>}, {pipeline_mode = #tpu.pipeline_mode<synchronous>, transform_indices = @transform_6, window_bounds = array<i64: 1, 1024>}, {pipeline_mode = #tpu.pipeline_mode<synchronous>, transform_indices = @transform_7, window_bounds = array<i64: 8, 56>}, {pipeline_mode = #tpu.pipeline_mode<synchronous>, transform_indices = @transform_8, window_bounds = array<i64: 1024, 256>}, {pipeline_mode = #tpu.pipeline_mode<synchronous>, transform_indices = @transform_9, window_bounds = array<i64: 1, 256>}, {pipeline_mode = #tpu.pipeline_mode<synchronous>, transform_indices = @transform_10, window_bounds = array<i64: 256, 128>}, {pipeline_mode = #tpu.pipeline_mode<synchronous>, transform_indices = @transform_11, window_bounds = array<i64: 1, 128>}, {pipeline_mode = #tpu.pipeline_mode<synchronous>, transform_indices = @transform_12, window_bounds = array<i64: 8, 128>}]} {
    %c0_i32 = arith.constant 0 : i32
    %0 = arith.cmpi eq, %arg0, %c0_i32 : i32
    %1 = arith.extui %0 : i1 to i32
    %c0_i32_0 = arith.constant 0 : i32
    %2 = arith.cmpi ne, %1, %c0_i32_0 : i32
    scf.if %2 {
      %c0_15 = arith.constant 0 : index
      %c0_16 = arith.constant 0 : index
      %20 = vector.load %arg1[%c0_15, %c0_16] : memref<56x128xbf16, #tpu.memory_space<vmem>>, vector<56x128xbf16>
      %c0_17 = arith.constant 0 : index
      %c0_18 = arith.constant 0 : index
      %21 = vector.load %arg2[%c0_17, %c0_18] : memref<128x1024xbf16, #tpu.memory_space<vmem>>, vector<128x1024xbf16>
      %cst_19 = arith.constant dense<0.000000e+00> : vector<56x1024xf32>
      %22 = tpu.matmul %20, %21, %cst_19 {dimension_numbers = #tpu.dot_dimension_numbers<[1], [0], [0], [1], [0, 0, 1, 1], [], []>} : vector<56x128xbf16>, vector<128x1024xbf16>, vector<56x1024xf32> -> vector<56x1024xf32>
      %c0_20 = arith.constant 0 : index
      %c0_21 = arith.constant 0 : index
      %23 = vector.load %arg3[%c0_20, %c0_21] : memref<1x1024xf32, #tpu.memory_space<vmem>>, vector<1x1024xf32>
      %24 = vector.broadcast %23 : vector<1x1024xf32> to vector<56x1024xf32>
      %25 = arith.addf %22, %24 : vector<56x1024xf32>
      %cst_22 = arith.constant 0.000000e+00 : f32
      %26 = vector.broadcast %cst_22 : f32 to vector<56x1024xf32>
      %27 = arith.maximumf %25, %26 : vector<56x1024xf32>
      %28 = arith.truncf %27 : vector<56x1024xf32> to vector<56x1024xbf16>
      %c0_23 = arith.constant 0 : index
      %c0_24 = arith.constant 0 : index
      %29 = vector.load %arg14[%c0_23, %c0_24] : memref<56x1024xbf16, #tpu.memory_space<vmem>>, vector<56x1024xbf16>
      tpu.vector_store %arg14[%c0_23, %c0_24], %28 {strides = array<i32>} : memref<56x1024xbf16, #tpu.memory_space<vmem>>, vector<56x1024xbf16>,
      %cst_25 = arith.constant 0.000000e+00 : f32
      %30 = vector.broadcast %cst_25 : f32 to vector<56x1024xf32>
      %c0_26 = arith.constant 0 : index
      %c0_27 = arith.constant 0 : index
      %31 = vector.load %arg15[%c0_26, %c0_27] : memref<56x1024xf32, #tpu.memory_space<vmem>>, vector<56x1024xf32>
      tpu.vector_store %arg15[%c0_26, %c0_27], %30 {strides = array<i32>} : memref<56x1024xf32, #tpu.memory_space<vmem>>, vector<56x1024xf32>,
    } else {
    }
    %c0 = arith.constant 0 : index
    %c0_1 = arith.constant 0 : index
    %3 = vector.load %arg14[%c0, %c0_1] : memref<56x1024xbf16, #tpu.memory_space<vmem>>, vector<56x1024xbf16>
    %c0_2 = arith.constant 0 : index
    %c0_3 = arith.constant 0 : index
    %4 = vector.load %arg4[%c0_2, %c0_3] : memref<1024x512xbf16, #tpu.memory_space<vmem>>, vector<1024x512xbf16>
    %cst = arith.constant dense<0.000000e+00> : vector<56x512xf32>
    %5 = tpu.matmul %3, %4, %cst {dimension_numbers = #tpu.dot_dimension_numbers<[1], [0], [0], [1], [0, 0, 1, 1], [], []>} : vector<56x1024xbf16>, vector<1024x512xbf16>, vector<56x512xf32> -> vector<56x512xf32>
    %c0_4 = arith.constant 0 : index
    %c0_5 = arith.constant 0 : index
    %6 = vector.load %arg5[%c0_4, %c0_5] : memref<1x512xf32, #tpu.memory_space<vmem>>, vector<1x512xf32>
    %7 = vector.broadcast %6 : vector<1x512xf32> to vector<56x512xf32>
    %8 = arith.addf %5, %7 : vector<56x512xf32>
    %cst_6 = arith.constant 0.000000e+00 : f32
    %9 = vector.broadcast %cst_6 : f32 to vector<56x512xf32>
    %10 = arith.maximumf %8, %9 : vector<56x512xf32>
    %11 = arith.truncf %10 : vector<56x512xf32> to vector<56x512xbf16>
    %c0_7 = arith.constant 0 : index
    %c0_8 = arith.constant 0 : index
    %12 = vector.load %arg15[%c0_7, %c0_8] : memref<56x1024xf32, #tpu.memory_space<vmem>>, vector<56x1024xf32>
    %c0_9 = arith.constant 0 : index
    %c0_10 = arith.constant 0 : index
    %13 = vector.load %arg6[%c0_9, %c0_10] : memref<512x1024xbf16, #tpu.memory_space<vmem>>, vector<512x1024xbf16>
    %cst_11 = arith.constant dense<0.000000e+00> : vector<56x1024xf32>
    %14 = tpu.matmul %11, %13, %cst_11 {dimension_numbers = #tpu.dot_dimension_numbers<[1], [0], [0], [1], [0, 0, 1, 1], [], []>} : vector<56x512xbf16>, vector<512x1024xbf16>, vector<56x1024xf32> -> vector<56x1024xf32>
    %15 = arith.addf %12, %14 : vector<56x1024xf32>
    %c0_12 = arith.constant 0 : index
    %c0_13 = arith.constant 0 : index
    %16 = vector.load %arg15[%c0_12, %c0_13] : memref<56x1024xf32, #tpu.memory_space<vmem>>, vector<56x1024xf32>
    tpu.vector_store %arg15[%c0_12, %c0_13], %15 {strides = array<i32>} : memref<56x1024xf32, #tpu.memory_space<vmem>>, vector<56x1024xf32>,
    %c3_i32 = arith.constant 3 : i32
    %17 = arith.cmpi eq, %arg0, %c3_i32 : i32
    %18 = arith.extui %17 : i1 to i32
    %c0_i32_14 = arith.constant 0 : i32
    %19 = arith.cmpi ne, %18, %c0_i32_14 : i32
    scf.if %19 {
      %c0_15 = arith.constant 0 : index
      %c0_16 = arith.constant 0 : index
      %20 = vector.load %arg15[%c0_15, %c0_16] : memref<56x1024xf32, #tpu.memory_space<vmem>>, vector<56x1024xf32>
      %c0_17 = arith.constant 0 : index
      %c0_18 = arith.constant 0 : index
      %21 = vector.load %arg7[%c0_17, %c0_18] : memref<1x1024xf32, #tpu.memory_space<vmem>>, vector<1x1024xf32>
      %22 = vector.broadcast %21 : vector<1x1024xf32> to vector<56x1024xf32>
      %23 = arith.addf %20, %22 : vector<56x1024xf32>
      %cst_19 = arith.constant 0.000000e+00 : f32
      %24 = vector.broadcast %cst_19 : f32 to vector<56x1024xf32>
      %25 = arith.maximumf %23, %24 : vector<56x1024xf32>
      %26 = arith.truncf %25 : vector<56x1024xf32> to vector<56x1024xbf16>
      %c0_20 = arith.constant 0 : index
      %c0_21 = arith.constant 0 : index
      %27 = vector.load %arg8[%c0_20, %c0_21] : memref<8x56xbf16, #tpu.memory_space<vmem>>, vector<8x56xbf16>
      %cst_22 = arith.constant dense<0.000000e+00> : vector<8x1024xf32>
      %28 = tpu.matmul %27, %26, %cst_22 {dimension_numbers = #tpu.dot_dimension_numbers<[1], [0], [0], [1], [0, 0, 1, 1], [], []>} : vector<8x56xbf16>, vector<56x1024xbf16>, vector<8x1024xf32> -> vector<8x1024xf32>
      %29 = arith.truncf %28 : vector<8x1024xf32> to vector<8x1024xbf16>
      %c0_23 = arith.constant 0 : index
      %c0_24 = arith.constant 0 : index
      %30 = vector.load %arg9[%c0_23, %c0_24] : memref<1024x256xbf16, #tpu.memory_space<vmem>>, vector<1024x256xbf16>
      %cst_25 = arith.constant dense<0.000000e+00> : vector<8x256xf32>
      %31 = tpu.matmul %29, %30, %cst_25 {dimension_numbers = #tpu.dot_dimension_numbers<[1], [0], [0], [1], [0, 0, 1, 1], [], []>} : vector<8x1024xbf16>, vector<1024x256xbf16>, vector<8x256xf32> -> vector<8x256xf32>
      %c0_26 = arith.constant 0 : index
      %c0_27 = arith.constant 0 : index
      %32 = vector.load %arg10[%c0_26, %c0_27] : memref<1x256xf32, #tpu.memory_space<vmem>>, vector<1x256xf32>
      %33 = vector.broadcast %32 : vector<1x256xf32> to vector<8x256xf32>
      %34 = arith.addf %31, %33 : vector<8x256xf32>
      %cst_28 = arith.constant 0.000000e+00 : f32
      %35 = vector.broadcast %cst_28 : f32 to vector<8x256xf32>
      %36 = arith.maximumf %34, %35 : vector<8x256xf32>
      %37 = arith.truncf %36 : vector<8x256xf32> to vector<8x256xbf16>
      %c0_29 = arith.constant 0 : index
      %c0_30 = arith.constant 0 : index
      %38 = vector.load %arg11[%c0_29, %c0_30] : memref<256x128xbf16, #tpu.memory_space<vmem>>, vector<256x128xbf16>
      %cst_31 = arith.constant dense<0.000000e+00> : vector<8x128xf32>
      %39 = tpu.matmul %37, %38, %cst_31 {dimension_numbers = #tpu.dot_dimension_numbers<[1], [0], [0], [1], [0, 0, 1, 1], [], []>} : vector<8x256xbf16>, vector<256x128xbf16>, vector<8x128xf32> -> vector<8x128xf32>
      %c0_32 = arith.constant 0 : index
      %c0_33 = arith.constant 0 : index
      %40 = vector.load %arg12[%c0_32, %c0_33] : memref<1x128xf32, #tpu.memory_space<vmem>>, vector<1x128xf32>
      %41 = vector.broadcast %40 : vector<1x128xf32> to vector<8x128xf32>
      %42 = arith.addf %39, %41 : vector<8x128xf32>
      %cst_34 = arith.constant 0.000000e+00 : f32
      %43 = vector.broadcast %cst_34 : f32 to vector<8x128xf32>
      %44 = arith.maximumf %42, %43 : vector<8x128xf32>
      %c0_35 = arith.constant 0 : index
      %c0_36 = arith.constant 0 : index
      %45 = vector.load %arg13[%c0_35, %c0_36] : memref<8x128xf32, #tpu.memory_space<vmem>>, vector<8x128xf32>
      tpu.vector_store %arg13[%c0_35, %c0_36], %44 {strides = array<i32>} : memref<8x128xf32, #tpu.memory_space<vmem>>, vector<8x128xf32>,
    } else {
    }
    return
  }
  func.func @transform_0(%arg0: i32) -> (i32, i32) {
    %c0_i32 = arith.constant 0 : i32
    %c0_i32_0 = arith.constant 0 : i32
    %c0_i32_1 = arith.constant 0 : i32
    return %c0_i32, %c0_i32_0 : i32, i32
  }
  func.func @transform_1(%arg0: i32) -> (i32, i32) {
    %c0_i32 = arith.constant 0 : i32
    %c0_i32_0 = arith.constant 0 : i32
    %c0_i32_1 = arith.constant 0 : i32
    return %c0_i32, %c0_i32_0 : i32, i32
  }
  func.func @transform_2(%arg0: i32) -> (i32, i32) {
    %c0_i32 = arith.constant 0 : i32
    %c0_i32_0 = arith.constant 0 : i32
    %c0_i32_1 = arith.constant 0 : i32
    return %c0_i32, %c0_i32_0 : i32, i32
  }
  func.func @transform_3(%arg0: i32) -> (i32, i32) {
    %c0_i32 = arith.constant 0 : i32
    %c0_i32_0 = arith.constant 0 : i32
    return %c0_i32, %arg0 : i32, i32
  }
  func.func @transform_4(%arg0: i32) -> (i32, i32) {
    %c0_i32 = arith.constant 0 : i32
    %c0_i32_0 = arith.constant 0 : i32
    return %c0_i32, %arg0 : i32, i32
  }
  func.func @transform_5(%arg0: i32) -> (i32, i32) {
    %c0_i32 = arith.constant 0 : i32
    %c0_i32_0 = arith.constant 0 : i32
    return %arg0, %c0_i32 : i32, i32
  }
  func.func @transform_6(%arg0: i32) -> (i32, i32) {
    %c0_i32 = arith.constant 0 : i32
    %c0_i32_0 = arith.constant 0 : i32
    %c0_i32_1 = arith.constant 0 : i32
    return %c0_i32, %c0_i32_0 : i32, i32
  }
  func.func @transform_7(%arg0: i32) -> (i32, i32) {
    %c0_i32 = arith.constant 0 : i32
    %c0_i32_0 = arith.constant 0 : i32
    %c0_i32_1 = arith.constant 0 : i32
    return %c0_i32, %c0_i32_0 : i32, i32
  }
  func.func @transform_8(%arg0: i32) -> (i32, i32) {
    %c0_i32 = arith.constant 0 : i32
    %c0_i32_0 = arith.constant 0 : i32
    %c0_i32_1 = arith.constant 0 : i32
    return %c0_i32, %c0_i32_0 : i32, i32
  }
  func.func @transform_9(%arg0: i32) -> (i32, i32) {
    %c0_i32 = arith.constant 0 : i32
    %c0_i32_0 = arith.constant 0 : i32
    %c0_i32_1 = arith.constant 0 : i32
    return %c0_i32, %c0_i32_0 : i32, i32
  }
  func.func @transform_10(%arg0: i32) -> (i32, i32) {
    %c0_i32 = arith.constant 0 : i32
    %c0_i32_0 = arith.constant 0 : i32
    %c0_i32_1 = arith.constant 0 : i32
    return %c0_i32, %c0_i32_0 : i32, i32
  }
  func.func @transform_11(%arg0: i32) -> (i32, i32) {
    %c0_i32 = arith.constant 0 : i32
    %c0_i32_0 = arith.constant 0 : i32
    %c0_i32_1 = arith.constant 0 : i32
    return %c0_i32, %c0_i32_0 : i32, i32
  }
  func.func @transform_12(%arg0: i32) -> (i32, i32) {
    %c0_i32 = arith.constant 0 : i32
    %c0_i32_0 = arith.constant 0 : i32
    %c0_i32_1 = arith.constant 0 : i32
    return %c0_i32, %c0_i32_0 : i32, i32
  }
}

</mosaic_0001>

<bundles_post_ra>
// kernel: emotion_classifier_forward.1
= control target key start
LH: loop header
LB: loop body
LE: loop exit
PB: predicated region body
PF: predicated region fallthrough
CT: control target
= control target key end

     0   :  { %s11752_s0 = inlined_call_operand.vmem [shape: bf16[56,128], index: 0, kind: input, shape index: {}]   ;;  %s11753_s1 = inlined_call_operand.hbm [shape: bf16[128,1024], index: 1, kind: input, shape index: {}]   ;;  %s11754_s2 = inlined_call_operand.hbm [shape: f32[1,1024], index: 2, kind: input, shape index: {}]   ;;  %s11755_s3 = inlined_call_operand.hbm [shape: bf16[1024,2048], index: 3, kind: input, shape index: {}]   ;;  %s11756_s4 = inlined_call_operand.hbm [shape: f32[1,2048], index: 4, kind: input, shape index: {}]   ;;  %s11757_s5 = inlined_call_operand.hbm [shape: bf16[2048,1024], index: 5, kind: input, shape index: {}]   ;;  %s11758_s6 = inlined_call_operand.hbm [shape: f32[1,1024], index: 6, kind: input, shape index: {}]   ;;  %s11759_s7 = inlined_call_operand.hbm [shape: bf16[8,56], index: 7, kind: input, shape index: {}]   ;;  %s11760_s8 = inlined_call_operand.hbm [shape: bf16[1024,256], index: 8, kind: input, shape index: {}]   ;;  %s11761_s9 = inlined_call_operand.hbm [shape: f32[1,256], index: 9, kind: input, shape index: {}]   ;;  %s11762_s10 = inlined_call_operand.hbm [shape: bf16[256,128], index: 10, kind: input, shape index: {}]   ;;  %s11763_s11 = inlined_call_operand.hbm [shape: f32[1,128], index: 11, kind: input, shape index: {}]   ;;  %s11764_s12 = inlined_call_operand.vmem [shape: f32[8,128], index: 12, kind: output, shape index: {}]  }
   0x1   :  { %11788 = sst [smem:[#allocation31_spill]] %s11752_s0 }
   0x2   :  { %11789 = sst [smem:[#allocation32_spill]] %s11753_s1 }
   0x3   :  { %11790 = sst [smem:[#allocation33_spill]] %s11754_s2 }
   0x4   :  { %11791 = sst [smem:[#allocation34_spill]] %s11755_s3 }
   0x5   :  { %11792 = sst [smem:[#allocation35_spill]] %s11759_s7 }
   0x6   :  { %11793 = sst [smem:[#allocation36_spill]] %s11764_s12 }
   0x7   :  { %17 = vsyncpa [#allocation5], 0 }
   0x8   :  { %18 = vsyncpa [#allocation7], 0 }
   0x9   :  { %19 = vsyncpa [#allocation13], 0 }
   0xa   :  { %20 = vsyncpa [#allocation16], 0 }
   0xb   :  { %21 = vsyncpa [#allocation19], 0  ;;  %s10100_s21 = smov 0   ;;  %s10102_s22 = smov 0  }
   0xc   :  { %s10104_s23 = smov 0   ;;  %s10106_s24 = smov 0  }
   0xd LB: > { %11794 = sst [smem:[#allocation27_spill]] %s10002_s22  ;;  %s10012_s25 = smov [#allocation4]   ;;  %s10010_s24 = sphi %s10106_s24, %s11839_s24   ;;  %s10006_s23 = sphi %s10104_s23, %s11843_s23   ;;  %s10002_s22 = sphi %s10102_s22, %s11842_s22   ;;  %s9998_s21 = sphi %s10100_s21, %s11840_s21  }
   0xe   : > { %s335_s26 = sshll.u32 %s10012_s25, 4  ;;  %s10121_s27 = sadd.s32 4294967295, %s10010_s24   ;;  %s336_s26 = int_to_ptr.vmem [resolvable:$true] %s335_s26 }
   0xf   : > { %p8006_p0 = scmp.ge.s32.totalorder %s10010_s24, 1  ;;  %p11771_p1 = scmp.eq.s32.totalorder %s10121_s27, 0 }
  0x10   : > { %p320_p2 = scmp.lt.s32.totalorder %s10010_s24, 5  ;;  %s10140_s30 = sadd.s32 1, %s10010_s24  }
  0x11   : > { %11797 = sst [smem:[#allocation28_spill]] %s10140_s30  ;;  %s9671_s14 = scalar_lea.vmem %s336_s26, 8192 }
  0x12   : > { %p10127_p4 = pnand %p8006_p0, %p320_p2  ;;  %p9672_p8 = scmp.ne.s32.totalorder %s336_s26, %s9671_s14 }
  0x13   : > { %p9679_p11 = scmp.lt.s32.totalorder %s336_s26, %s336_s26  ;;  %p9680_p12 = scmp.lt.s32.totalorder %s9671_s14, %s9671_s14 }
  0x14   : > { %s11795_s28 = scalar_select %p10127_p4, 1, 0 }
  0x15   : > { %p8927_p5 = pneg %p10127_p4  ;;  %p9681_p13 = por %p9680_p12, %p9679_p11 }
  0x17   : > { %p10135_p6 = pnand %p8927_p5, %p11771_p1 }
  0x19   : > { %s11796_s29 = scalar_select %p10135_p6, 1, 0 }
  0x1a   : > { %p10144_p7 = pneg %p10135_p6 }
  0x1c   : > { %s11798_s13 = scalar_select %p10144_p7, 1, 0 }
  0x1d   : > { %p9674_p9 = pnand %p9672_p8, %p10144_p7 }
  0x1f   : > { %p9675_p10 = pneg %p9674_p9 }
  0x21   : > { %p9682_p0 = pnand %p9681_p13, %p9675_p10 }
  0x23   : > { %9685 = shalt.err (!%p9682_p0)
}
  0x24   : > { %s11766_s15 = smov 512   ;;  %s11767_s16 = smov 32  }
  0x25   : > { %s11799_s1 = sld [smem:[#allocation32_spill]]  ;;  %s94_s19 = ssub.s32 %s10010_s24, %s10140_s30 }
  0x26   : > { %s97_s20 = sadd.s32 1, %s10006_s23  ;;  %p95_p2 = scmp.eq.s32.totalorder %s94_s19, 0 }
  0x27   : > { %p104_p5 = scmp.ne.s32.totalorder %s10006_s23, %s10002_s22  ;;  %p105_p8 = scmp.eq.s32.totalorder %s10010_s24, 0 }
  0x28   : > { %p110_p9 = scmp.ne.s32.totalorder %s10002_s22, %s9998_s21  ;;  %p8970_p12 = scmp.lt.s32.totalorder %s10010_s24, 4 }
  0x29   : > { %s10167_s25 = scalar_select %p95_p2, %s10006_s23, %s97_s20  }
  0x2a   : > { %p106_p10 = por %p105_p8, %p104_p5  ;;  %p10171_p11 = por %p11771_p1, %p110_p9 }
  0x2b   : > { %8930 = dma.hbm_to_vmem [thread:$0]  (!%p10135_p6), %s11799_s1, 8192, %s336_s26, [#allocation5], %s11766_s15, %s11766_s15, %s11767_s16  }
  0x2c   : > { %11800 = sst [smem:[#allocation29_spill]] %s10167_s25  ;;  %s430_s12 = sand.u32 1, %s10010_s24  }
  0x2d   : > { %s11801_s14 = scalar_select %p10171_p11, 1, 0 }
  0x2e   : > { %s11768_s0 = sand.u32 1, %s10006_s23   ;;  %s8835_s26 = sshll.u32 %s10010_s24, 8 }
  0x2f   : > { %11802 = sst [smem:[#allocation30_spill]] %s11801_s14  ;;  %s10180_s17 = sshll.u32 %s11768_s0, 11 }
  0x30   : > { %s11803_s3 = sld [smem:[#allocation34_spill]]  ;;  %s434_s20 = scalar_lea.vmem [#allocation8], %s10180_s17 }
  0x31   : > { %s441_s15 = sshll.u32 %s434_s20, 4  ;;  %p10189_p13 = pnand %p8970_p12, %p106_p10  ;;  %s10193_s15 = int_to_ptr.vmem [resolvable:$true] %s441_s15 }
  0x32   : > { %s10195_s0 = scalar_lea.sflag [#allocation5], %s430_s12 }
  0x33   : > { %s11804_s16 = scalar_select %p10189_p13, 1, 0 }
  0x34   : > { %p10201_p2 = pneg %p10189_p13 }
  0x36   : > { %s10186_s21 = scalar_lea.hbm %s11803_s3, %s8835_s26  ;;  %s9691_s20 = scalar_lea.hbm %s11803_s3, 131072 }
  0x37   : > { %s9686_s1 = scalar_lea.hbm %s10186_s21, 32768  ;;  %p9692_p9 = scmp.lt.s32.totalorder %s10186_s21, %s11803_s3 }
  0x38   : > { %p9687_p0 = scmp.ne.s32.totalorder %s10186_s21, %s9686_s1  ;;  %p9693_p10 = scmp.lt.s32.totalorder %s9691_s20, %s9686_s1 }
  0x39   : > { %s11805_s26 = scalar_select %p10201_p2, 1, 0 }
  0x3a   : > { %p9689_p5 = pnand %p10201_p2, %p9687_p0  ;;  %p9694_p12 = por %p9693_p10, %p9692_p9 }
  0x3c   : > { %p9690_p8 = pneg %p9689_p5 }
  0x3e   : > { %p9695_p3 = pnand %p9694_p12, %p9690_p8 }
  0x40   : > { %9698 = shalt.err (!%p9695_p3)
}
  0x41   : > { %s9699_s12 = scalar_lea.vmem %s10193_s15, 32768  ;;  %s10015_s14 = smov [#allocation8]  }
  0x42   : > { %p9700_p1 = scmp.ne.s32.totalorder %s10193_s15, %s9699_s12  ;;  %s9704_s18 = sshll.u32 %s10015_s14, 4  ;;  %s9705_s18 = int_to_ptr.vmem [resolvable:$false] %s9704_s18 }
  0x43   : > { %s9706_s19 = scalar_lea.vmem %s9705_s18, 65536  ;;  %p9707_p11 = scmp.lt.s32.totalorder %s10193_s15, %s9705_s18 }
  0x44   : > { %p9702_p0 = pnand %p9700_p1, %p10201_p2  ;;  %p9708_p4 = scmp.lt.s32.totalorder %s9706_s19, %s9699_s12 }
  0x46   : > { %p9703_p5 = pneg %p9702_p0  ;;  %p9709_p6 = por %p9708_p4, %p9707_p11 }
  0x48   : > { %p9710_p7 = pnand %p9709_p6, %p9703_p5 }
  0x4a   : > { %9713 = shalt.err (!%p9710_p7)
}
  0x4b   : > { %s10016_s1 = smov 1024   ;;  %s10017_s30 = smov 256  }
  0x4c   : > { %s10018_s25 = smov 16   ;;  %s10019_s20 = smov [#allocation6]  }
  0x4d   : > { %8955 = dma.hbm_to_vmem [thread:$0]  (!%p10189_p13), %s10186_s21, 32768, %s10193_s15, %s10195_s0, %s10016_s1, %s10017_s30, %s10018_s25  }
  0x4e   : > { %s349_s3 = sshll.u32 %s10019_s20, 4  ;;  %s10020_s14 = smov [#allocation12]   ;;  %s350_s3 = int_to_ptr.vmem [resolvable:$true] %s349_s3 }
  0x4f   : > { %s371_s22 = sshll.u32 %s10020_s14, 4  ;;  %s9725_s18 = scalar_lea.vmem %s350_s3, 128  ;;  %s372_s22 = int_to_ptr.vmem [resolvable:$true] %s371_s22 }
  0x50   : > { %p9726_p1 = scmp.ne.s32.totalorder %s350_s3, %s9725_s18  ;;  %p11806_p3 = scmp.ne.s32.totalorder %s11798_s13, 0 }
  0x51   : > { %p9733_p7 = scmp.lt.s32.totalorder %s350_s3, %s350_s3  ;;  %p9734_p11 = scmp.lt.s32.totalorder %s9725_s18, %s9725_s18 }
  0x52   : > { %p9728_p4 = pnand %p9726_p1, %p11806_p3 }
  0x53   : > { %p9735_p8 = por %p9734_p11, %p9733_p7 }
  0x54   : > { %p9729_p6 = pneg %p9728_p4 }
  0x56   : > { %p9736_p9 = pnand %p9735_p8, %p9729_p6 }
  0x58   : > { %9739 = shalt.err (!%p9736_p9)
}
  0x59   : > { %p11807_p10 = scmp.ne.s32.totalorder %s11796_s29, 0  ;;  %s11808_s2 = sld [smem:[#allocation33_spill]] }
  0x5a   : > { %s9751_s15 = scalar_lea.vmem %s372_s22, 64  ;;  %p9759_p1 = scmp.lt.s32.totalorder %s372_s22, %s372_s22 }
  0x5b   : > { %p9752_p12 = scmp.ne.s32.totalorder %s372_s22, %s9751_s15  ;;  %p9760_p4 = scmp.lt.s32.totalorder %s9751_s15, %s9751_s15 }
  0x5d   : > { %p9754_p0 = pnand %p9752_p12, %p11806_p3  ;;  %p9761_p13 = por %p9760_p4, %p9759_p1 }
  0x5f   : > { %8933 = dma.hbm_to_vmem [thread:$0]  (!%p11807_p10), %s11808_s2, 128, %s350_s3, [#allocation7]  }
  0x60   : > { %p9755_p5 = pneg %p9754_p0 }
  0x62   : > { %p9762_p2 = pnand %p9761_p13, %p9755_p5 }
  0x64   : > { %9765 = shalt.err (!%p9762_p2)
}
  0x65   : > { %s11809_s7 = sld [smem:[#allocation35_spill]]  ;;  %s10021_s3 = smov [#allocation15]  }
  0x66   : > { %s395_s30 = sshll.u32 %s10021_s3, 4  ;;  %s11810_s25 = sand.u32 1, %s10006_s23   ;;  %s396_s30 = int_to_ptr.vmem [resolvable:$true] %s395_s30 }
  0x67   : > { %s8019_s20 = sshll.u32 %s11810_s25, 2  ;;  %s9777_s14 = scalar_lea.vmem %s396_s30, 32 }
  0x68   : > { %p9778_p6 = scmp.ne.s32.totalorder %s396_s30, %s9777_s14  ;;  %p9785_p13 = scmp.lt.s32.totalorder %s396_s30, %s396_s30 }
  0x69   : > { %p9786_p2 = scmp.lt.s32.totalorder %s9777_s14, %s9777_s14 }
  0x6a   : > { %p9780_p7 = pnand %p9778_p6, %p11806_p3 }
  0x6b   : > { %8939 = dma.hbm_to_vmem [thread:$0]  (!%p11807_p10), %s11809_s7, 64, %s372_s22, [#allocation13]  }
  0x6c   : > { %p9781_p11 = pneg %p9780_p7  ;;  %p9787_p8 = por %p9786_p2, %p9785_p13 }
  0x6e   : > { %p9788_p9 = pnand %p9787_p8, %p9781_p11 }
  0x70   : > { %9791 = shalt.err (!%p9788_p9)
}
  0x71   : > { %8945 = dma.hbm_to_vmem [thread:$0]  (!%p11807_p10), %s11761_s9, 32, %s396_s30, [#allocation16]  }
  0x72   : > { %s8836_s22 = sshll.u32 %s10010_s24, 6  ;;  %s455_s19 = scalar_lea.vmem [#allocation9], %s8019_s20 }
  0x73   : > { %s463_s15 = sshll.u32 %s455_s19, 4  ;;  %s461_s3 = scalar_lea.hbm %s11756_s4, %s8836_s22  ;;  %s464_s15 = int_to_ptr.vmem [resolvable:$true] %s463_s15 }
  0x74   : > { %s9792_s25 = scalar_lea.hbm %s461_s3, 64  ;;  %p11811_p0 = scmp.ne.s32.totalorder %s11805_s26, 0 }
  0x75   : > { %p9793_p12 = scmp.ne.s32.totalorder %s461_s3, %s9792_s25  ;;  %s9797_s18 = scalar_lea.hbm %s11756_s4, 256 }
  0x76   : > { %p9798_p4 = scmp.lt.s32.totalorder %s461_s3, %s11756_s4  ;;  %p9799_p6 = scmp.lt.s32.totalorder %s9797_s18, %s9792_s25 }
  0x77   : > { %p9795_p5 = pnand %p9793_p12, %p11811_p0 }
  0x78   : > { %p9800_p7 = por %p9799_p6, %p9798_p4 }
  0x79   : > { %p9796_p1 = pneg %p9795_p5 }
  0x7b   : > { %p9801_p11 = pnand %p9800_p7, %p9796_p1 }
  0x7d   : > { %9804 = shalt.err (!%p9801_p11)
}
  0x7e   : > { %s9805_s30 = scalar_lea.vmem %s464_s15, 64  ;;  %s10022_s20 = smov [#allocation9]  }
  0x7f   : > { %p9806_p13 = scmp.ne.s32.totalorder %s464_s15, %s9805_s30  ;;  %s9810_s22 = sshll.u32 %s10022_s20, 4  ;;  %s9811_s22 = int_to_ptr.vmem [resolvable:$false] %s9810_s22 }
  0x80   : > { %s9812_s19 = scalar_lea.vmem %s9811_s22, 128  ;;  %p9813_p9 = scmp.lt.s32.totalorder %s464_s15, %s9811_s22 }
  0x81   : > { %p9808_p2 = pnand %p9806_p13, %p11811_p0  ;;  %p9814_p12 = scmp.lt.s32.totalorder %s9812_s19, %s9805_s30 }
  0x83   : > { %p9809_p8 = pneg %p9808_p2  ;;  %p9815_p5 = por %p9814_p12, %p9813_p9 }
  0x85   : > { %p9816_p10 = pnand %p9815_p5, %p9809_p8 }
  0x87   : > { %9819 = shalt.err (!%p9816_p10)
}
  0x88   : > { %p11812_p3 = scmp.ne.s32.totalorder %s11804_s16, 0  ;;  %s10023_s2 = smov [#allocation11]  }
  0x89   : > { %s360_s7 = sshll.u32 %s10023_s2, 4  ;;  %s10024_s21 = smov [#allocation14]   ;;  %s361_s7 = int_to_ptr.vmem [resolvable:$true] %s360_s7 }
  0x8a   : > { %8958 = dma.hbm_to_vmem [thread:$0]  (!%p11812_p3), %s461_s3, 64, %s464_s15, %s10195_s0  }
  0x8b   : > { %s381_s1 = sshll.u32 %s10024_s21, 4  ;;  %s9831_s25 = scalar_lea.vmem %s361_s7, 128  ;;  %s382_s1 = int_to_ptr.vmem [resolvable:$true] %s381_s1 }
  0x8c   : > { %p9832_p1 = scmp.ne.s32.totalorder %s361_s7, %s9831_s25  ;;  %p11813_p4 = scmp.ne.s32.totalorder %s11798_s13, 0 }
  0x8d   : > { %p9839_p11 = scmp.lt.s32.totalorder %s361_s7, %s361_s7  ;;  %p9840_p13 = scmp.lt.s32.totalorder %s9831_s25, %s9831_s25 }
  0x8e   : > { %p9834_p6 = pnand %p9832_p1, %p11813_p4 }
  0x8f   : > { %p9841_p2 = por %p9840_p13, %p9839_p11 }
  0x90   : > { %p9835_p7 = pneg %p9834_p6 }
  0x92   : > { %p9842_p10 = pnand %p9841_p2, %p9835_p7 }
  0x94   : > { %9845 = shalt.err (!%p9842_p10)
}
  0x95   : > { %p11814_p8 = scmp.ne.s32.totalorder %s11796_s29, 0  ;;  %s9857_s3 = scalar_lea.vmem %s382_s1, 16384 }
  0x96   : > { %p9858_p9 = scmp.ne.s32.totalorder %s382_s1, %s9857_s3  ;;  %p9865_p3 = scmp.lt.s32.totalorder %s382_s1, %s382_s1 }
  0x97   : > { %8936 = dma.hbm_to_vmem [thread:$0]  (!%p11814_p8), %s11758_s6, 128, %s361_s7, [#allocation7]  }
  0x98   : > { %p9860_p12 = pnand %p9858_p9, %p11813_p4  ;;  %p9866_p1 = scmp.lt.s32.totalorder %s9857_s3, %s9857_s3 }
  0x9a   : > { %p9861_p5 = pneg %p9860_p12  ;;  %p9867_p6 = por %p9866_p1, %p9865_p3 }
  0x9c   : > { %p9868_p0 = pnand %p9867_p6, %p9861_p5 }
  0x9e   : > { %9871 = shalt.err (!%p9868_p0)
}
  0x9f   : > { %s10025_s18 = smov 128   ;;  %s10026_s12 = smov 8  }
  0xa0   : > { %8942 = dma.hbm_to_vmem [thread:$0]  (!%p11814_p8), %s11760_s8, 16384, %s382_s1, [#allocation13], %s10025_s18, %s10025_s18, %s10026_s12  }
  0xa1   : > { %s10027_s22 = smov [#allocation17]  }
  0xa2   : > { %s405_s19 = sshll.u32 %s10027_s22, 4  ;;  %s406_s19 = int_to_ptr.vmem [resolvable:$true] %s405_s19 }
  0xa3   : > { %s9883_s2 = scalar_lea.vmem %s406_s19, 2048  ;;  %p9891_p3 = scmp.lt.s32.totalorder %s406_s19, %s406_s19 }
  0xa4   : > { %p9884_p7 = scmp.ne.s32.totalorder %s406_s19, %s9883_s2  ;;  %p9892_p2 = scmp.lt.s32.totalorder %s9883_s2, %s9883_s2 }
  0xa6   : > { %p9886_p11 = pnand %p9884_p7, %p11813_p4  ;;  %p9893_p0 = por %p9892_p2, %p9891_p3 }
  0xa8   : > { %p9887_p13 = pneg %p9886_p11 }
  0xaa   : > { %p9894_p10 = pnand %p9893_p0, %p9887_p13 }
  0xac   : > { %9897 = shalt.err (!%p9894_p10)
}
  0xad   : > { %s10028_s7 = smov 64   ;;  %s10029_s21 = smov 4  }
  0xae   : > { %8948 = dma.hbm_to_vmem [thread:$0]  (!%p11814_p8), %s11762_s10, 2048, %s406_s19, [#allocation16], %s10028_s7, %s10028_s7, %s10029_s21  }
  0xaf   : > { %s10030_s14 = smov [#allocation18]   ;;  %s8838_s3 = sshll.u32 %s10010_s24, 15 }
  0xb0   : > { %s419_s15 = sshll.u32 %s10030_s14, 4  ;;  %s420_s15 = int_to_ptr.vmem [resolvable:$true] %s419_s15 }
  0xb1   : > { %s9909_s18 = scalar_lea.vmem %s420_s15, 16  ;;  %s9916_s12 = scalar_lea.vmem %s420_s15, 32 }
  0xb2   : > { %p9910_p9 = scmp.ne.s32.totalorder %s420_s15, %s9909_s18  ;;  %p9917_p1 = scmp.lt.s32.totalorder %s420_s15, %s420_s15 }
  0xb3   : > { %p9918_p6 = scmp.lt.s32.totalorder %s9916_s12, %s9909_s18 }
  0xb4   : > { %p9912_p12 = pnand %p9910_p9, %p11813_p4 }
  0xb5   : > { %p9919_p7 = por %p9918_p6, %p9917_p1 }
  0xb6   : > { %p9913_p5 = pneg %p9912_p12 }
  0xb8   : > { %p9920_p11 = pnand %p9919_p7, %p9913_p5 }
  0xba   : > { %9923 = shalt.err (!%p9920_p11)
}
  0xbb   : > { %8951 = dma.hbm_to_vmem [thread:$0]  (!%p11814_p8), %s11763_s11, 16, %s420_s15, [#allocation19]  }
  0xbc   : > { %s10296_s13 = scalar_lea.hbm %s11757_s5, %s8838_s3  ;;  %s474_s19 = scalar_lea.vmem [#allocation10], %s10180_s17 }
  0xbd   : > { %s482_s2 = sshll.u32 %s474_s19, 4  ;;  %s9924_s7 = scalar_lea.hbm %s10296_s13, 32768  ;;  %s483_s2 = int_to_ptr.vmem [resolvable:$true] %s482_s2 }
  0xbe   : > { %p9925_p4 = scmp.ne.s32.totalorder %s10296_s13, %s9924_s7  ;;  %p11815_p13 = scmp.ne.s32.totalorder %s11805_s26, 0 }
  0xbf   : > { %s9929_s1 = scalar_lea.hbm %s11757_s5, 131072  ;;  %p9930_p8 = scmp.lt.s32.totalorder %s10296_s13, %s11757_s5 }
  0xc0   : > { %p9927_p3 = pnand %p9925_p4, %p11815_p13  ;;  %p9931_p0 = scmp.lt.s32.totalorder %s9929_s1, %s9924_s7 }
  0xc2   : > { %p9928_p2 = pneg %p9927_p3  ;;  %p9932_p10 = por %p9931_p0, %p9930_p8 }
  0xc4   : > { %p9933_p9 = pnand %p9932_p10, %p9928_p2 }
  0xc6   : > { %9936 = shalt.err (!%p9933_p9)
}
  0xc7   : > { %s9937_s17 = scalar_lea.vmem %s483_s2, 32768  ;;  %s10031_s15 = smov [#allocation10]  }
  0xc8   : > { %p9938_p12 = scmp.ne.s32.totalorder %s483_s2, %s9937_s17  ;;  %s9942_s3 = sshll.u32 %s10031_s15, 4  ;;  %s9943_s3 = int_to_ptr.vmem [resolvable:$false] %s9942_s3 }
  0xc9   : > { %s9944_s18 = scalar_lea.vmem %s9943_s3, 65536  ;;  %p9945_p6 = scmp.lt.s32.totalorder %s483_s2, %s9943_s3 }
  0xca   : > { %p9940_p5 = pnand %p9938_p12, %p11815_p13  ;;  %p9946_p7 = scmp.lt.s32.totalorder %s9944_s18, %s9937_s17 }
  0xcc   : > { %p9941_p1 = pneg %p9940_p5  ;;  %p9947_p11 = por %p9946_p7, %p9945_p6 }
  0xce   : > { %p9948_p4 = pnand %p9947_p11, %p9941_p1 }
  0xd0   : > { %9951 = shalt.err (!%p9948_p4)
}
  0xd1   : > { %p11816_p3 = scmp.ne.s32.totalorder %s11804_s16, 0  ;;  %s11817_s12 = smov 32  }
  0xd2   : > { %s11818_s30 = smov 512   ;;  %p11819_p13 = scmp.ne.s32.totalorder %s11795_s28, 0 }
  0xd3   : > { %8961 = dma.hbm_to_vmem [thread:$0]  (!%p11816_p3), %s10296_s13, 32768, %s483_s2, %s10195_s0, %s11818_s30, %s11818_s30, %s11817_s12  }
  0xd4   : > { %494 = sbr.rel (%p11819_p13) target bundleno = 2135 (0x857), region = 68  ;;  %p11820_p2 = scmp.eq.s32.totalorder (!%p11819_p13), %s10121_s27, 0 }
  0xd9   : > { %9969 = dma.done.wait (%p11820_p2), [#allocation5], 8192   ;;  %p11821_p8 = pmov %p11820_p2 }
  0xda   : > { %p11822_p0 = pmov %p11820_p2 }
  0xdb   : > { %9971 = vsyncadd (%p11821_p8), [#allocation5], 4294959104 }
  0xdc   : > { %9973 = dma.done.wait (%p11822_p0), [#allocation7], 128   ;;  %p11823_p10 = pmov %p11822_p0 }
  0xdd   : > { %s11824_s16 = sld [smem:[#allocation27_spill]]  ;;  %s504_s20 = sand.u32 1, %s10121_s27  }
  0xde   : > { %9975 = vsyncadd (%p11823_p10), [#allocation7], 4294967168  ;;  %s11825_s26 = sld [smem:[#allocation30_spill]]  ;;  %s505_s28 = scalar_lea.sflag [#allocation5], %s504_s20 }
  0xe3   : > { %s506_s0 = sand.u32 1, %s11824_s16  }
  0xe4   : > { %s8029_s24 = sshll.u32 %s506_s0, 11  ;;  %p11826_p9 = scmp.ne.s32.totalorder %s11825_s26, 0 }
  0xe5   : > { %s10331_s22 = scalar_lea.vmem [#allocation8], %s8029_s24 }
  0xe6   : > { %9977 = dma.done.wait (%p11826_p9), %s505_s28, 65600  }
  0xe7   : > { %9979 = vsyncadd (%p11826_p9), %s505_s28, 4294901696  ;;  %s10337_s13 = sshll.u32 %s506_s0, 2  ;;  %s10340_s2 = scalar_lea.vmem [#allocation10], %s8029_s24 }
  0xe8   : > { %s517_s19 = scalar_lea.vmem [#allocation9], %s10337_s13  ;;  %p11827_p12 = pmov %p11822_p0 }
  0xe9   : > { %p11828_p5 = pmov %p11822_p0 }
  0xea   : > { %9981 = dma.done.wait (%p11827_p12), [#allocation7], 128  }
  0xeb   : > { %9983 = vsyncadd (%p11828_p5), [#allocation7], 4294967168  ;;  %p11829_p1 = pmov %p11822_p0 }
  0xec   : > { %p11830_p6 = pmov %p11822_p0 }
  0xed   : > { %9985 = dma.done.wait (%p11829_p1), [#allocation13], 16448  }
  0xee   : > { %9987 = vsyncadd (%p11830_p6), [#allocation13], 4294950848  ;;  %p11831_p7 = pmov %p11822_p0 }
  0xef   : > { %p11832_p11 = pmov %p11822_p0 }
  0xf0   : > { %9989 = dma.done.wait (%p11831_p7), [#allocation16], 2080  }
  0xf1   : > { %9991 = vsyncadd (%p11832_p11), [#allocation16], 4294965216  ;;  %p11833_p4 = pmov %p11822_p0 }
  0xf2   : > { %p11834_p3 = pmov %p11822_p0 }
  0xf3   : > { %9993 = dma.done.wait (%p11833_p4), [#allocation19], 16  }
  0xf4   : > { %9995 = vsyncadd (%p11834_p3), [#allocation19], 4294967280  ;;  %p11835_p13 = scmp.ne.s32.totalorder %s10121_s27, 0 }
  0xf5   : > { %s11836_s21 = sld [smem:[#allocation31_spill]] (!%p11835_p13) }
  0xf6   : > { %603 = sbr.rel (%p11835_p13) target bundleno = 545 (0x221), region = 116 }
  0xfb   : > { %v667_v0 = vld [vmem:[#allocation4 + $0x1c0] sm:$0xff]  ;;  %v668_v2 = vld [vmem:[#allocation4 + $0x1c8] sm:$0xff]  ;;  %v10032_v8 = vmov 0   ;;  %v669_v63 = vld [vmem:[#allocation4 + $0x1d0] sm:$0xff]  ;;  %s11837_s1 = smov %s11836_s21 }
  0xfc   : > { %v671_v1 = vld [vmem:[#allocation4 + $0x1e0] sm:$0xff]  ;;  %v672_v4 = vld [vmem:[#allocation4 + $0x1e8] sm:$0xff]  ;;  %1091 = vmatprep.mubr.bf16.mxu0 %v10032_v8  ;;  %1162 = vmatprep.mubr.bf16.mxu1 %v10032_v8 }
  0xfd   : > { %v8100_v3 = vcombine.high %v667_v0, %v671_v1  ;;  %v8099_v5 = vcombine.low %v667_v0, %v671_v1  ;;  %v659_v6 = vld [vmem:[#allocation4 + $0x180] sm:$0xff]  ;;  %v8102_v9 = vcombine.high %v668_v2, %v672_v4  ;;  %v8101_v10 = vcombine.low %v668_v2, %v672_v4  ;;  %v660_v12 = vld [vmem:[#allocation4 + $0x188] sm:$0xff]  ;;  %v673_v0 = vld [vmem:[#allocation4 + $0x1f0] sm:$0xff] }
  0xfe   : > { %v663_v7 = vld [vmem:[#allocation4 + $0x1a0] sm:$0xff]  ;;  %v664_v13 = vld [vmem:[#allocation4 + $0x1a8] sm:$0xff]  ;;  %v670_v1 = vld [vmem:[#allocation4 + $0x1d8] sm:$0xff] }
  0xff   : > { %v8092_v11 = vcombine.high %v659_v6, %v663_v7  ;;  %v651_v14 = vld [vmem:[#allocation4 + $0x140] sm:$0xff]  ;;  %1059 = vmatprep.subr.bf16.mxu0 %v8100_v3  ;;  %v8094_v15 = vcombine.high %v660_v12, %v664_v13  ;;  %v652_v17 = vld [vmem:[#allocation4 + $0x148] sm:$0xff]  ;;  %1130 = vmatprep.subr.bf16.mxu1 %v8102_v9  ;;  %v8091_v19 = vcombine.low %v659_v6, %v663_v7  ;;  %v674_v2 = vld [vmem:[#allocation4 + $0x1f8] sm:$0xff] }
 0x100   : > { %v655_v16 = vld [vmem:[#allocation4 + $0x160] sm:$0xff]  ;;  %v656_v18 = vld [vmem:[#allocation4 + $0x168] sm:$0xff]  ;;  %1060 = vmatpush1.bf16.msra.mxu0 %v8099_v5  ;;  %1131 = vmatpush1.bf16.msra.mxu1 %v8101_v10  ;;  %v8093_v20 = vcombine.low %v660_v12, %v664_v13  ;;  %v8104_v5 = vcombine.high %v669_v63, %v673_v0  ;;  %v8106_v6 = vcombine.high %v670_v1, %v674_v2  ;;  %v661_v7 = vld [vmem:[#allocation4 + $0x190] sm:$0xff] }
 0x101   : > { %1061 = vmatprep.subr.bf16.mxu0 %v8092_v11  ;;  %v8084_v21 = vcombine.high %v651_v14, %v655_v16  ;;  %1132 = vmatprep.subr.bf16.mxu1 %v8094_v15  ;;  %v8086_v22 = vcombine.high %v652_v17, %v656_v18  ;;  %v643_v23 = vld [vmem:[#allocation4 + $0x100] sm:$0xff]  ;;  %v644_v25 = vld [vmem:[#allocation4 + $0x108] sm:$0xff]  ;;  %v8083_v27 = vcombine.low %v651_v14, %v655_v16  ;;  %v665_v9 = vld [vmem:[#allocation4 + $0x1b0] sm:$0xff] }
 0x102   : > { %v647_v24 = vld [vmem:[#allocation4 + $0x120] sm:$0xff]  ;;  %v648_v26 = vld [vmem:[#allocation4 + $0x128] sm:$0xff]  ;;  %v8085_v28 = vcombine.low %v652_v17, %v656_v18  ;;  %v662_v11 = vld [vmem:[#allocation4 + $0x198] sm:$0xff]  ;;  %v8103_v13 = vcombine.low %v669_v63, %v673_v0  ;;  %v8105_v14 = vcombine.low %v670_v1, %v674_v2  ;;  %v8096_v15 = vcombine.high %v661_v7, %v665_v9 }
 0x103   : > { %v8076_v29 = vcombine.high %v643_v23, %v647_v24  ;;  %v8078_v30 = vcombine.high %v644_v25, %v648_v26  ;;  %v635_v31 = vld [vmem:[#allocation4 + $0xc0] sm:$0xff]  ;;  %v636_v33 = vld [vmem:[#allocation4 + $0xc8] sm:$0xff]  ;;  %v8075_v35 = vcombine.low %v643_v23, %v647_v24  ;;  %v8077_v36 = vcombine.low %v644_v25, %v648_v26  ;;  %v666_v12 = vld [vmem:[#allocation4 + $0x1b8] sm:$0xff] }
 0x104   : > { %1062 = vmatpush1.bf16.msra.mxu0 %v8091_v19  ;;  %1133 = vmatpush1.bf16.msra.mxu1 %v8093_v20  ;;  %v639_v32 = vld [vmem:[#allocation4 + $0xe0] sm:$0xff]  ;;  %v640_v34 = vld [vmem:[#allocation4 + $0xe8] sm:$0xff]  ;;  %v8098_v16 = vcombine.high %v662_v11, %v666_v12  ;;  %v653_v17 = vld [vmem:[#allocation4 + $0x150] sm:$0xff] }
 0x105   : > { %1063 = vmatprep.subr.bf16.mxu0 %v8084_v21  ;;  %1134 = vmatprep.subr.bf16.mxu1 %v8086_v22  ;;  %v8068_v37 = vcombine.high %v635_v31, %v639_v32  ;;  %v627_v38 = vld [vmem:[#allocation4 + $0x80] sm:$0xff]  ;;  %v8070_v39 = vcombine.high %v636_v33, %v640_v34  ;;  %v628_v41 = vld [vmem:[#allocation4 + $0x88] sm:$0xff]  ;;  %v8067_v43 = vcombine.low %v635_v31, %v639_v32  ;;  %v657_v18 = vld [vmem:[#allocation4 + $0x170] sm:$0xff] }
 0x106   : > { %v631_v40 = vld [vmem:[#allocation4 + $0xa0] sm:$0xff]  ;;  %v632_v42 = vld [vmem:[#allocation4 + $0xa8] sm:$0xff]  ;;  %v8069_v44 = vcombine.low %v636_v33, %v640_v34  ;;  %v654_v19 = vld [vmem:[#allocation4 + $0x158] sm:$0xff]  ;;  %v8095_v21 = vcombine.low %v661_v7, %v665_v9  ;;  %v8097_v22 = vcombine.low %v662_v11, %v666_v12  ;;  %v8088_v23 = vcombine.high %v653_v17, %v657_v18 }
 0x107   : > { %v8060_v45 = vcombine.high %v627_v38, %v631_v40  ;;  %v619_v46 = vld [vmem:[#allocation4 + $0x40] sm:$0xff]  ;;  %v8062_v47 = vcombine.high %v628_v41, %v632_v42  ;;  %v620_v49 = vld [vmem:[#allocation4 + $0x48] sm:$0xff]  ;;  %v8059_v51 = vcombine.low %v627_v38, %v631_v40  ;;  %v8061_v52 = vcombine.low %v628_v41, %v632_v42  ;;  %v658_v20 = vld [vmem:[#allocation4 + $0x178] sm:$0xff] }
 0x108   : > { %1064 = vmatpush1.bf16.msra.mxu0 %v8083_v27  ;;  %1135 = vmatpush1.bf16.msra.mxu1 %v8085_v28  ;;  %v623_v48 = vld [vmem:[#allocation4 + $0x60] sm:$0xff]  ;;  %v624_v50 = vld [vmem:[#allocation4 + $0x68] sm:$0xff]  ;;  %v8090_v24 = vcombine.high %v654_v19, %v658_v20  ;;  %v645_v25 = vld [vmem:[#allocation4 + $0x110] sm:$0xff]  ;;  %v8089_v31 = vcombine.low %v654_v19, %v658_v20 }
 0x109   : > { %1065 = vmatprep.subr.bf16.mxu0 %v8076_v29  ;;  %1136 = vmatprep.subr.bf16.mxu1 %v8078_v30  ;;  %v8052_v53 = vcombine.high %v619_v46, %v623_v48  ;;  %v8054_v54 = vcombine.high %v620_v49, %v624_v50  ;;  %v611_v55 = vld [vmem:[#allocation4] sm:$0xff]  ;;  %v612_v57 = vld [vmem:[#allocation4 + $0x8] sm:$0xff]  ;;  %v8051_v59 = vcombine.low %v619_v46, %v623_v48  ;;  %v649_v26 = vld [vmem:[#allocation4 + $0x130] sm:$0xff] }
 0x10a   : > { %v615_v56 = vld [vmem:[#allocation4 + $0x20] sm:$0xff]  ;;  %v616_v58 = vld [vmem:[#allocation4 + $0x28] sm:$0xff]  ;;  %v8053_v60 = vcombine.low %v620_v49, %v624_v50  ;;  %v646_v28 = vld [vmem:[#allocation4 + $0x118] sm:$0xff]  ;;  %v8087_v30 = vcombine.low %v653_v17, %v657_v18  ;;  %v8080_v32 = vcombine.high %v645_v25, %v649_v26  ;;  %v8079_v38 = vcombine.low %v645_v25, %v649_v26 }
 0x10b   : > { %v8044_v61 = vcombine.high %v611_v55, %v615_v56  ;;  %v8046_v62 = vcombine.high %v612_v57, %v616_v58  ;;  %v8043_v3 = vcombine.low %v611_v55, %v615_v56  ;;  %v8045_v4 = vcombine.low %v612_v57, %v616_v58  ;;  %v10365_v10 = vld [vmem:[%s11836_s21] sm:$0xff]   ;;  %v10374_v27 = vld [vmem:[%s11837_s1 + $0x8] sm:$0xff]   ;;  %v650_v29 = vld [vmem:[#allocation4 + $0x138] sm:$0xff] }
 0x10c   : > { %1066 = vmatpush1.bf16.msra.mxu0 %v8075_v35  ;;  %1137 = vmatpush1.bf16.msra.mxu1 %v8077_v36  ;;  %v8082_v33 = vcombine.high %v646_v28, %v650_v29  ;;  %v637_v34 = vld [vmem:[#allocation4 + $0xd0] sm:$0xff]  ;;  %v638_v36 = vld [vmem:[#allocation4 + $0xd8] sm:$0xff] }
 0x10d   : > { %1067 = vmatprep.subr.bf16.mxu0 %v8068_v37  ;;  %1138 = vmatprep.subr.bf16.mxu1 %v8070_v39  ;;  %v641_v35 = vld [vmem:[#allocation4 + $0xf0] sm:$0xff]  ;;  %v642_v37 = vld [vmem:[#allocation4 + $0xf8] sm:$0xff]  ;;  %v8081_v39 = vcombine.low %v646_v28, %v650_v29 }
 0x10e   : > { %v8072_v40 = vcombine.high %v637_v34, %v641_v35  ;;  %v8074_v41 = vcombine.high %v638_v36, %v642_v37  ;;  %v629_v42 = vld [vmem:[#allocation4 + $0x90] sm:$0xff]  ;;  %v634_v46 = vld [vmem:[#allocation4 + $0xb8] sm:$0xff]  ;;  %v8073_v48 = vcombine.low %v638_v36, %v642_v37 }
 0x10f   : > { %v618_v63 = vld [vmem:[#allocation4 + $0x38] sm:$0xff] }
 0x110   : > { %1068 = vmatpush1.bf16.msra.mxu0 %v8067_v43  ;;  %1139 = vmatpush1.bf16.msra.mxu1 %v8069_v44  ;;  %v633_v43 = vld [vmem:[#allocation4 + $0xb0] sm:$0xff] }
 0x111   : > { %1069 = vmatprep.subr.bf16.mxu0 %v8060_v45  ;;  %1140 = vmatprep.subr.bf16.mxu1 %v8062_v47  ;;  %v9033_v44 = vld [vmem:[%s11837_s1 + $0x10] sm:$0xff]   ;;  %v630_v45 = vld [vmem:[#allocation4 + $0x98] sm:$0xff]  ;;  %v8071_v47 = vcombine.low %v637_v34, %v641_v35  ;;  %v8064_v49 = vcombine.high %v629_v42, %v633_v43  ;;  %v8063_v55 = vcombine.low %v629_v42, %v633_v43 }
 0x112   : > { %v8066_v50 = vcombine.high %v630_v45, %v634_v46  ;;  %v8065_v56 = vcombine.low %v630_v45, %v634_v46 }
 0x114   : > { %1070 = vmatpush1.bf16.msra.mxu0 %v8059_v51  ;;  %1141 = vmatpush1.bf16.msra.mxu1 %v8061_v52  ;;  %v621_v51 = vld [vmem:[#allocation4 + $0x50] sm:$0xff] }
 0x115   : > { %1071 = vmatprep.subr.bf16.mxu0 %v8052_v53  ;;  %1142 = vmatprep.subr.bf16.mxu1 %v8054_v54  ;;  %v625_v52 = vld [vmem:[#allocation4 + $0x70] sm:$0xff]  ;;  %v622_v53 = vld [vmem:[#allocation4 + $0x58] sm:$0xff] }
 0x116   : > { %v626_v54 = vld [vmem:[#allocation4 + $0x78] sm:$0xff]  ;;  %v8056_v57 = vcombine.high %v621_v51, %v625_v52  ;;  %v8055_v0 = vcombine.low %v621_v51, %v625_v52 }
 0x117   : > { %v8058_v58 = vcombine.high %v622_v53, %v626_v54  ;;  %v8057_v1 = vcombine.low %v622_v53, %v626_v54 }
 0x118   : > { %1072 = vmatpush1.bf16.msra.mxu0 %v8051_v59  ;;  %1143 = vmatpush1.bf16.msra.mxu1 %v8053_v60  ;;  %v613_v59 = vld [vmem:[#allocation4 + $0x10] sm:$0xff] }
 0x119   : > { %1073 = vmatprep.subr.bf16.mxu0 %v8044_v61  ;;  %1144 = vmatprep.subr.bf16.mxu1 %v8046_v62  ;;  %v617_v60 = vld [vmem:[#allocation4 + $0x30] sm:$0xff]  ;;  %v9034_v61 = vld [vmem:[%s11837_s1 + $0x18] ss:$0 sps:$4 sm:$0xff]  }
 0x11a   : > { %v614_v62 = vld [vmem:[#allocation4 + $0x18] sm:$0xff]  ;;  %v8048_v2 = vcombine.high %v613_v59, %v617_v60 }
 0x11c   : > { %1074 = vmatpush1.bf16.msra.mxu0 %v8043_v3  ;;  %1145 = vmatpush1.bf16.msra.mxu1 %v8045_v4  ;;  %v8050_v3 = vcombine.high %v614_v62, %v618_v63  ;;  %v8047_v4 = vcombine.low %v613_v59, %v617_v60 }
 0x11d   : > { %1201 = vmatprep.subr.bf16.mxu0 %v8104_v5  ;;  %1272 = vmatprep.subr.bf16.mxu1 %v8106_v6  ;;  %v8049_v5 = vcombine.low %v614_v62, %v618_v63  ;;  %v10033_v6 = vmov 0.0  }
 0x11e   : > { %1603 = vst [vmem:[#allocation3] sm:$0xff] %v10033_v6  ;;  %1604 = vst [vmem:[#allocation3 + $0xc0] sm:$0xff] %v10033_v6 }
 0x11f   : > { %1092 = vmatmul.mubr.bf16.vlgmr.msra.gmra.mxu0 %v10365_v10  ;;  %1163 = vmatmul.mubr.bf16.vlgmr.msra.gmra.mxu1 %v10365_v10  ;;  %1605 = vst [vmem:[#allocation3 + $0x58] sm:$0xff] %v10033_v6  ;;  %1606 = vst [vmem:[#allocation3 + $0xe0] sm:$0xff] %v10033_v6 }
 0x120   : > { %1202 = vmatpush1.bf16.msra.mxu0 %v8103_v13  ;;  %1273 = vmatpush1.bf16.msra.mxu1 %v8105_v14  ;;  %1607 = vst [vmem:[#allocation3 + $0x158] sm:$0xff] %v10033_v6  ;;  %1608 = vst [vmem:[#allocation3 + $0x120] sm:$0xff] %v10033_v6 }
 0x121   : > { %1203 = vmatprep.subr.bf16.mxu0 %v8096_v15  ;;  %1274 = vmatprep.subr.bf16.mxu1 %v8098_v16  ;;  %1609 = vst [vmem:[#allocation3 + $0x190] sm:$0xff] %v10033_v6  ;;  %1610 = vst [vmem:[#allocation3 + $0x108] sm:$0xff] %v10033_v6 }
 0x122   : > { %1101 = vmatprep.mubr.bf16.mxu0 %v10032_v8  ;;  %1172 = vmatprep.mubr.bf16.mxu1 %v10032_v8  ;;  %1611 = vst [vmem:[#allocation3 + $0x8] sm:$0xff] %v10033_v6  ;;  %1612 = vst [vmem:[#allocation3 + $0x38] sm:$0xff] %v10033_v6 }
 0x123   : > { %1613 = vst [vmem:[#allocation3 + $0x1b0] sm:$0xff] %v10033_v6  ;;  %1614 = vst [vmem:[#allocation3 + $0x100] sm:$0xff] %v10033_v6 }
 0x124   : > { %1204 = vmatpush1.bf16.msra.mxu0 %v8095_v21  ;;  %1275 = vmatpush1.bf16.msra.mxu1 %v8097_v22  ;;  %1615 = vst [vmem:[#allocation3 + $0x188] sm:$0xff] %v10033_v6  ;;  %1616 = vst [vmem:[#allocation3 + $0x40] sm:$0xff] %v10033_v6 }
 0x125   : > { %1205 = vmatprep.subr.bf16.mxu0 %v8088_v23  ;;  %1276 = vmatprep.subr.bf16.mxu1 %v8090_v24  ;;  %1617 = vst [vmem:[#allocation3 + $0xe8] sm:$0xff] %v10033_v6  ;;  %1618 = vst [vmem:[#allocation3 + $0xf8] sm:$0xff] %v10033_v6 }
 0x126   : > { %1619 = vst [vmem:[#allocation3 + $0x130] sm:$0xff] %v10033_v6  ;;  %1620 = vst [vmem:[#allocation3 + $0x140] sm:$0xff] %v10033_v6 }
 0x127   : > { %1102 = vmatmul.mubr.bf16.gmra.mxu0 %v10374_v27  ;;  %1173 = vmatmul.mubr.bf16.gmra.mxu1 %v10374_v27  ;;  %1621 = vst [vmem:[#allocation3 + $0x48] sm:$0xff] %v10033_v6  ;;  %1622 = vst [vmem:[#allocation3 + $0x60] sm:$0xff] %v10033_v6 }
 0x128   : > { %1206 = vmatpush1.bf16.msra.mxu0 %v8087_v30  ;;  %1277 = vmatpush1.bf16.msra.mxu1 %v8089_v31  ;;  %1623 = vst [vmem:[#allocation3 + $0xa8] sm:$0xff] %v10033_v6  ;;  %1624 = vst [vmem:[#allocation3 + $0x110] sm:$0xff] %v10033_v6 }
 0x129   : > { %1207 = vmatprep.subr.bf16.mxu0 %v8080_v32  ;;  %1278 = vmatprep.subr.bf16.mxu1 %v8082_v33  ;;  %1625 = vst [vmem:[#allocation3 + $0x198] sm:$0xff] %v10033_v6  ;;  %1626 = vst [vmem:[#allocation3 + $0x88] sm:$0xff] %v10033_v6 }
 0x12a   : > { %1111 = vmatprep.mubr.bf16.mxu0 %v10032_v8  ;;  %1182 = vmatprep.mubr.bf16.mxu1 %v10032_v8  ;;  %1627 = vst [vmem:[#allocation3 + $0x78] sm:$0xff] %v10033_v6  ;;  %1628 = vst [vmem:[#allocation3 + $0x80] sm:$0xff] %v10033_v6 }
 0x12b   : > { %1629 = vst [vmem:[#allocation3 + $0x128] sm:$0xff] %v10033_v6  ;;  %1630 = vst [vmem:[#allocation3 + $0x10] sm:$0xff] %v10033_v6 }
 0x12c   : > { %1208 = vmatpush1.bf16.msra.mxu0 %v8079_v38  ;;  %1279 = vmatpush1.bf16.msra.mxu1 %v8081_v39  ;;  %1631 = vst [vmem:[#allocation3 + $0x178] sm:$0xff] %v10033_v6  ;;  %1632 = vst [vmem:[#allocation3 + $0x28] sm:$0xff] %v10033_v6 }
 0x12d   : > { %1209 = vmatprep.subr.bf16.mxu0 %v8072_v40  ;;  %1280 = vmatprep.subr.bf16.mxu1 %v8074_v41  ;;  %1633 = vst [vmem:[#allocation3 + $0x30] sm:$0xff] %v10033_v6  ;;  %1634 = vst [vmem:[#allocation3 + $0x18] sm:$0xff] %v10033_v6 }
 0x12e   : > { %1635 = vst [vmem:[#allocation3 + $0x168] sm:$0xff] %v10033_v6  ;;  %1636 = vst [vmem:[#allocation3 + $0x150] sm:$0xff] %v10033_v6 }
 0x12f   : > { %1112 = vmatmul.mubr.bf16.gmra.mxu0 %v9033_v44  ;;  %1183 = vmatmul.mubr.bf16.gmra.mxu1 %v9033_v44  ;;  %1637 = vst [vmem:[#allocation3 + $0x170] sm:$0xff] %v10033_v6  ;;  %1638 = vst [vmem:[#allocation3 + $0x160] sm:$0xff] %v10033_v6 }
 0x130   : > { %1210 = vmatpush1.bf16.msra.mxu0 %v8071_v47  ;;  %1281 = vmatpush1.bf16.msra.mxu1 %v8073_v48  ;;  %1639 = vst [vmem:[#allocation3 + $0xd0] sm:$0xff] %v10033_v6  ;;  %1640 = vst [vmem:[#allocation3 + $0xc8] sm:$0xff] %v10033_v6 }
 0x131   : > { %1211 = vmatprep.subr.bf16.mxu0 %v8064_v49  ;;  %1282 = vmatprep.subr.bf16.mxu1 %v8066_v50  ;;  %1641 = vst [vmem:[#allocation3 + $0x118] sm:$0xff] %v10033_v6  ;;  %1642 = vst [vmem:[#allocation3 + $0x90] sm:$0xff] %v10033_v6 }
 0x132   : > { %1121 = vmatprep.mubr.bf16.mxu0 %v10032_v8  ;;  %1192 = vmatprep.mubr.bf16.mxu1 %v10032_v8  ;;  %1643 = vst [vmem:[#allocation3 + $0x1a8] sm:$0xff] %v10033_v6  ;;  %1644 = vst [vmem:[#allocation3 + $0xb8] sm:$0xff] %v10033_v6 }
 0x133   : > { %1645 = vst [vmem:[#allocation3 + $0x138] sm:$0xff] %v10033_v6  ;;  %1646 = vst [vmem:[#allocation3 + $0xa0] sm:$0xff] %v10033_v6 }
 0x134   : > { %1212 = vmatpush1.bf16.msra.mxu0 %v8063_v55  ;;  %1283 = vmatpush1.bf16.msra.mxu1 %v8065_v56  ;;  %1647 = vst [vmem:[#allocation3 + $0x68] sm:$0xff] %v10033_v6  ;;  %1648 = vst [vmem:[#allocation3 + $0x20] sm:$0xff] %v10033_v6 }
 0x135   : > { %1213 = vmatprep.subr.bf16.mxu0 %v8056_v57  ;;  %1284 = vmatprep.subr.bf16.mxu1 %v8058_v58  ;;  %1649 = vst [vmem:[#allocation3 + $0xf0] sm:$0xff] %v10033_v6  ;;  %1650 = vst [vmem:[#allocation3 + $0x50] sm:$0xff] %v10033_v6 }
 0x136   : > { %1651 = vst [vmem:[#allocation3 + $0x148] sm:$0xff] %v10033_v6  ;;  %1652 = vst [vmem:[#allocation3 + $0xb0] sm:$0xff] %v10033_v6 }
 0x137   : > { %1122 = vmatmul.mubr.bf16.gmra.mxu0 %v9034_v61  ;;  %1193 = vmatmul.mubr.bf16.gmra.mxu1 %v9034_v61  ;;  %1653 = vst [vmem:[#allocation3 + $0x180] sm:$0xff] %v10033_v6  ;;  %1654 = vst [vmem:[#allocation3 + $0xd8] sm:$0xff] %v10033_v6 }
 0x138   : > { %1214 = vmatpush1.bf16.msra.mxu0 %v8055_v0  ;;  %1285 = vmatpush1.bf16.msra.mxu1 %v8057_v1  ;;  %1655 = vst [vmem:[#allocation3 + $0x98] sm:$0xff] %v10033_v6  ;;  %1656 = vst [vmem:[#allocation3 + $0x70] sm:$0xff] %v10033_v6 }
 0x139   : > { %1215 = vmatprep.subr.bf16.mxu0 %v8048_v2  ;;  %1286 = vmatprep.subr.bf16.mxu1 %v8050_v3  ;;  %1657 = vst [vmem:[#allocation3 + $0x1b8] sm:$0xff] %v10033_v6  ;;  %1658 = vst [vmem:[#allocation3 + $0x1a0] sm:$0xff] %v10033_v6 }
 0x13a   : > { %1233 = vmatprep.mubr.bf16.mxu0 %v10032_v8  ;;  %1304 = vmatprep.mubr.bf16.mxu1 %v10032_v8 }
 0x13c   : > { %1216 = vmatpush1.bf16.msra.mxu0 %v8047_v4  ;;  %1287 = vmatpush1.bf16.msra.mxu1 %v8049_v5 }
 0x13f   : > { %1234 = vmatmul.mubr.bf16.vlgmr.msra.gmra.mxu0 %v10365_v10  ;;  %1305 = vmatmul.mubr.bf16.vlgmr.msra.gmra.mxu1 %v10365_v10  ;;  %v10403_v10 = vld [vmem:[#allocation6] sm:$0xff] }
 0x140   : > { %1243 = vmatprep.mubr.bf16.mxu0 %v10032_v8  ;;  %1314 = vmatprep.mubr.bf16.mxu1 %v10032_v8 }
 0x147   : > { %1244 = vmatmul.mubr.bf16.gmra.mxu0 %v10374_v27  ;;  %1315 = vmatmul.mubr.bf16.gmra.mxu1 %v10374_v27 }
 0x148   : > { %1253 = vmatprep.mubr.bf16.mxu0 %v10032_v8  ;;  %1324 = vmatprep.mubr.bf16.mxu1 %v10032_v8 }
 0x14f   : > { %1254 = vmatmul.mubr.bf16.gmra.mxu0 %v9033_v44  ;;  %1325 = vmatmul.mubr.bf16.gmra.mxu1 %v9033_v44 }
 0x150   : > { %1263 = vmatprep.mubr.bf16.mxu0 %v10032_v8  ;;  %1334 = vmatprep.mubr.bf16.mxu1 %v10032_v8  ;;  %v677_v8 = vlaneseq }
 0x152   : > { %v10400_v7 = vshrl.u32 %v677_v8, 7 }
 0x154   : > { %v679_v9 = vsub.s32 0, %v10400_v7  ;;  %v687_v11 = vsub.s32 2, %v10400_v7  ;;  %v683_v12 = vsub.s32 1, %v10400_v7  ;;  %v691_v13 = vsub.s32 3, %v10400_v7 }
 0x156   : > { %v10409_v14 = vrot.slane %v10403_v10, %v679_v9  ;;  %v10412_v15 = vrot.slane %v10403_v10, %v687_v11  ;;  %v10415_v16 = vrot.slane %v10403_v10, %v683_v12  ;;  %v10418_v18 = vrot.slane %v10403_v10, %v691_v13 }
 0x157   : > { %1264 = vmatmul.mubr.bf16.gmra.mxu0 %v9034_v61  ;;  %1335 = vmatmul.mubr.bf16.gmra.mxu1 %v9034_v61 }
 0x1df   : > { %v1093_v17 = vpop.f32.mrf.mxu0  ;;  %v1164_v20 = vpop.f32.mrf.mxu1 }
 0x1e0   : > { %v1094_v19 = vadd.f32 %v1093_v17, %v10409_v14  ;;  %v1165_v21 = vadd.f32 %v1164_v20, %v10412_v15 }
 0x1e1   : > { %v1095_v22 = vpop.f32.mrf.mxu0  ;;  %v1166_v24 = vpop.f32.mrf.mxu1 }
 0x1e2   : > { %v1096_v23 = vadd.f32 %v1095_v22, %v10415_v16  ;;  %v1167_v25 = vadd.f32 %v1166_v24, %v10418_v18  ;;  %v1343_v27 = vmax.f32 %v1094_v19, 0.0  ;;  %v1345_v31 = vmax.f32 %v1165_v21, 0.0 }
 0x1e3   : > { %v1097_v26 = vpop.f32.mrf.mxu0  ;;  %v1168_v30 = vpop.f32.mrf.mxu1 }
 0x1e4   : > { %v1344_v28 = vmax.f32 %v1096_v23, 0.0  ;;  %v1098_v29 = vadd.f32 %v1097_v26, %v10409_v14  ;;  %v1346_v32 = vmax.f32 %v1167_v25, 0.0  ;;  %v1169_v33 = vadd.f32 %v1168_v30, %v10412_v15 }
 0x1e5   : > { %v1099_v34 = vpop.f32.mrf.mxu0  ;;  %v1170_v37 = vpop.f32.mrf.mxu1 }
 0x1e6   : > { %v8839_v35 = vpack.c.bf16 %v1344_v28, %v1343_v27  ;;  %v1100_v36 = vadd.f32 %v1099_v34, %v10415_v16  ;;  %v8840_v38 = vpack.c.bf16 %v1346_v32, %v1345_v31  ;;  %v1171_v39 = vadd.f32 %v1170_v37, %v10418_v18 }
 0x1e7   : > { %v1103_v40 = vpop.f32.mrf.mxu0  ;;  %v1351_v41 = vmax.f32 %v1098_v29, 0.0  ;;  %v1174_v44 = vpop.f32.mrf.mxu1  ;;  %v1353_v45 = vmax.f32 %v1169_v33, 0.0 }
 0x1e8   : > { %1575 = vst [vmem:[#allocation2 + $0xb0] sm:$0xff] %v8839_v35  ;;  %v1352_v42 = vmax.f32 %v1100_v36, 0.0  ;;  %v1104_v43 = vadd.f32 %v1103_v40, %v10409_v14  ;;  %1576 = vst [vmem:[#allocation2] sm:$0xff] %v8840_v38  ;;  %v1354_v46 = vmax.f32 %v1171_v39, 0.0  ;;  %v1175_v47 = vadd.f32 %v1174_v44, %v10412_v15 }
 0x1e9   : > { %v1105_v48 = vpop.f32.mrf.mxu0  ;;  %v1176_v51 = vpop.f32.mrf.mxu1 }
 0x1ea   : > { %v8843_v49 = vpack.c.bf16 %v1352_v42, %v1351_v41  ;;  %v1106_v50 = vadd.f32 %v1105_v48, %v10415_v16  ;;  %v8844_v52 = vpack.c.bf16 %v1354_v46, %v1353_v45  ;;  %v1177_v53 = vadd.f32 %v1176_v51, %v10418_v18 }
 0x1eb   : > { %v1107_v54 = vpop.f32.mrf.mxu0  ;;  %v1359_v55 = vmax.f32 %v1104_v43, 0.0  ;;  %v1178_v58 = vpop.f32.mrf.mxu1  ;;  %v1361_v59 = vmax.f32 %v1175_v47, 0.0  ;;  %v695_v43 = vsub.s32 4, %v10400_v7  ;;  %v703_v48 = vsub.s32 6, %v10400_v7 }
 0x1ec   : > { %1579 = vst [vmem:[#allocation2 + $0x50] sm:$0xff] %v8843_v49  ;;  %v1360_v56 = vmax.f32 %v1106_v50, 0.0  ;;  %v1108_v57 = vadd.f32 %v1107_v54, %v10409_v14  ;;  %1580 = vst [vmem:[#allocation2 + $0x68] sm:$0xff] %v8844_v52  ;;  %v1362_v60 = vmax.f32 %v1177_v53, 0.0  ;;  %v1179_v61 = vadd.f32 %v1178_v58, %v10412_v15 }
 0x1ed   : > { %v1109_v62 = vpop.f32.mrf.mxu0  ;;  %v1180_v1 = vpop.f32.mrf.mxu1  ;;  %v699_v52 = vsub.s32 5, %v10400_v7 }
 0x1ee   : > { %v8847_v63 = vpack.c.bf16 %v1360_v56, %v1359_v55  ;;  %v1110_v0 = vadd.f32 %v1109_v62, %v10415_v16  ;;  %v8848_v2 = vpack.c.bf16 %v1362_v60, %v1361_v59  ;;  %v1181_v3 = vadd.f32 %v1180_v1, %v10418_v18 }
 0x1ef   : > { %v1113_v4 = vpop.f32.mrf.mxu0  ;;  %v1367_v5 = vmax.f32 %v1108_v57, 0.0  ;;  %v1184_v9 = vpop.f32.mrf.mxu1  ;;  %v1369_v11 = vmax.f32 %v1179_v61, 0.0  ;;  %v707_v55 = vsub.s32 7, %v10400_v7  ;;  %v10456_v61 = vrot.slane %v10403_v10, %v703_v48 }
 0x1f0   : > { %1583 = vst [vmem:[#allocation2 + $0x80] sm:$0xff] %v8847_v63  ;;  %v1368_v6 = vmax.f32 %v1110_v0, 0.0  ;;  %v1114_v8 = vadd.f32 %v1113_v4, %v10409_v14  ;;  %1584 = vst [vmem:[#allocation2 + $0x88] sm:$0xff] %v8848_v2  ;;  %v1370_v12 = vmax.f32 %v1181_v3, 0.0  ;;  %v1185_v13 = vadd.f32 %v1184_v9, %v10412_v15 }
 0x1f1   : > { %v1115_v17 = vpop.f32.mrf.mxu0  ;;  %v1186_v21 = vpop.f32.mrf.mxu1  ;;  %v10462_v1 = vrot.slane %v10403_v10, %v707_v55 }
 0x1f2   : > { %v8851_v19 = vpack.c.bf16 %v1368_v6, %v1367_v5  ;;  %v1116_v20 = vadd.f32 %v1115_v17, %v10415_v16  ;;  %v8852_v22 = vpack.c.bf16 %v1370_v12, %v1369_v11  ;;  %v1187_v23 = vadd.f32 %v1186_v21, %v10418_v18 }
 0x1f3   : > { %v1117_v24 = vpop.f32.mrf.mxu0  ;;  %v1375_v25 = vmax.f32 %v1114_v8, 0.0  ;;  %v1188_v28 = vpop.f32.mrf.mxu1  ;;  %v1377_v29 = vmax.f32 %v1185_v13, 0.0 }
 0x1f4   : > { %1587 = vst [vmem:[#allocation2 + $0x38] sm:$0xff] %v8851_v19  ;;  %v1376_v26 = vmax.f32 %v1116_v20, 0.0  ;;  %v1118_v27 = vadd.f32 %v1117_v24, %v10409_v14  ;;  %1588 = vst [vmem:[#allocation2 + $0x90] sm:$0xff] %v8852_v22  ;;  %v1378_v30 = vmax.f32 %v1187_v23, 0.0  ;;  %v1189_v31 = vadd.f32 %v1188_v28, %v10412_v15 }
 0x1f5   : > { %v1119_v32 = vpop.f32.mrf.mxu0  ;;  %v1190_v35 = vpop.f32.mrf.mxu1 }
 0x1f6   : > { %v8855_v33 = vpack.c.bf16 %v1376_v26, %v1375_v25  ;;  %v1120_v34 = vadd.f32 %v1119_v32, %v10415_v16  ;;  %v8856_v36 = vpack.c.bf16 %v1378_v30, %v1377_v29  ;;  %v1191_v37 = vadd.f32 %v1190_v35, %v10418_v18 }
 0x1f7   : > { %v1123_v38 = vpop.f32.mrf.mxu0  ;;  %v1383_v39 = vmax.f32 %v1118_v27, 0.0  ;;  %v1194_v42 = vpop.f32.mrf.mxu1  ;;  %v1385_v44 = vmax.f32 %v1189_v31, 0.0 }
 0x1f8   : > { %1591 = vst [vmem:[#allocation2 + $0x40] sm:$0xff] %v8855_v33  ;;  %v1384_v40 = vmax.f32 %v1120_v34, 0.0  ;;  %v1124_v41 = vadd.f32 %v1123_v38, %v10409_v14  ;;  %1592 = vst [vmem:[#allocation2 + $0x28] sm:$0xff] %v8856_v36  ;;  %v1386_v45 = vmax.f32 %v1191_v37, 0.0  ;;  %v1195_v46 = vadd.f32 %v1194_v42, %v10412_v15 }
 0x1f9   : > { %v1125_v47 = vpop.f32.mrf.mxu0  ;;  %v1196_v51 = vpop.f32.mrf.mxu1  ;;  %v10453_v15 = vrot.slane %v10403_v10, %v695_v43 }
 0x1fa   : > { %v8859_v49 = vpack.c.bf16 %v1384_v40, %v1383_v39  ;;  %v1126_v50 = vadd.f32 %v1125_v47, %v10415_v16  ;;  %v8860_v53 = vpack.c.bf16 %v1386_v45, %v1385_v44  ;;  %v1197_v14 = vadd.f32 %v1196_v51, %v10418_v18 }
 0x1fb   : > { %v1127_v54 = vpop.f32.mrf.mxu0  ;;  %v1391_v56 = vmax.f32 %v1124_v41, 0.0  ;;  %v1198_v58 = vpop.f32.mrf.mxu1  ;;  %v1393_v59 = vmax.f32 %v1195_v46, 0.0  ;;  %v10459_v18 = vrot.slane %v10403_v10, %v699_v52 }
 0x1fc   : > { %1595 = vst [vmem:[#allocation2 + $0xd0] sm:$0xff] %v8859_v49  ;;  %v1392_v57 = vmax.f32 %v1126_v50, 0.0  ;;  %1596 = vst [vmem:[#allocation2 + $0xa8] sm:$0xff] %v8860_v53  ;;  %v1394_v60 = vmax.f32 %v1197_v14, 0.0 }
 0x1fd   : > { %v1128_v16 = vpop.f32.mrf.mxu0  ;;  %v1199_v63 = vpop.f32.mrf.mxu1 }
 0x1fe   : > { %v8863_v62 = vpack.c.bf16 %v1392_v57, %v1391_v56  ;;  %v8864_v7 = vpack.c.bf16 %v1394_v60, %v1393_v59 }
 0x1ff   : > { %v1235_v0 = vpop.f32.mrf.mxu0  ;;  %v1306_v3 = vpop.f32.mrf.mxu1 }
 0x200   : > { %1599 = vst [vmem:[#allocation2 + $0x20] sm:$0xff] %v8863_v62  ;;  %v1236_v2 = vadd.f32 %v1235_v0, %v10453_v15  ;;  %1600 = vst [vmem:[#allocation2 + $0x10] sm:$0xff] %v8864_v7  ;;  %v1307_v4 = vadd.f32 %v1306_v3, %v10456_v61 }
 0x201   : > { %v1237_v5 = vpop.f32.mrf.mxu0  ;;  %v1308_v8 = vpop.f32.mrf.mxu1 }
 0x202   : > { %v1238_v6 = vadd.f32 %v1237_v5, %v10459_v18  ;;  %v1309_v9 = vadd.f32 %v1308_v8, %v10462_v1  ;;  %v1347_v12 = vmax.f32 %v1236_v2, 0.0  ;;  %v1349_v19 = vmax.f32 %v1307_v4, 0.0 }
 0x203   : > { %v1239_v11 = vpop.f32.mrf.mxu0  ;;  %v1310_v10 = vpop.f32.mrf.mxu1 }
 0x204   : > { %v1348_v13 = vmax.f32 %v1238_v6, 0.0  ;;  %v1240_v17 = vadd.f32 %v1239_v11, %v10453_v15  ;;  %v1350_v20 = vmax.f32 %v1309_v9, 0.0  ;;  %v1311_v21 = vadd.f32 %v1310_v10, %v10456_v61 }
 0x205   : > { %v1241_v22 = vpop.f32.mrf.mxu0  ;;  %v1312_v25 = vpop.f32.mrf.mxu1 }
 0x206   : > { %v8841_v23 = vpack.c.bf16 %v1348_v13, %v1347_v12  ;;  %v1242_v24 = vadd.f32 %v1241_v22, %v10459_v18  ;;  %v8842_v26 = vpack.c.bf16 %v1350_v20, %v1349_v19  ;;  %v1313_v27 = vadd.f32 %v1312_v25, %v10462_v1 }
 0x207   : > { %v1245_v28 = vpop.f32.mrf.mxu0  ;;  %v1355_v29 = vmax.f32 %v1240_v17, 0.0  ;;  %v1316_v32 = vpop.f32.mrf.mxu1  ;;  %v1357_v33 = vmax.f32 %v1311_v21, 0.0 }
 0x208   : > { %1577 = vst [vmem:[#allocation2 + $0xd8] sm:$0xff] %v8841_v23  ;;  %v1356_v30 = vmax.f32 %v1242_v24, 0.0  ;;  %v1246_v31 = vadd.f32 %v1245_v28, %v10453_v15  ;;  %1578 = vst [vmem:[#allocation2 + $0x18] sm:$0xff] %v8842_v26  ;;  %v1358_v34 = vmax.f32 %v1313_v27, 0.0  ;;  %v1317_v35 = vadd.f32 %v1316_v32, %v10456_v61 }
 0x209   : > { %v1247_v36 = vpop.f32.mrf.mxu0  ;;  %v1318_v39 = vpop.f32.mrf.mxu1 }
 0x20a   : > { %v8845_v37 = vpack.c.bf16 %v1356_v30, %v1355_v29  ;;  %v1248_v38 = vadd.f32 %v1247_v36, %v10459_v18  ;;  %v8846_v40 = vpack.c.bf16 %v1358_v34, %v1357_v33  ;;  %v1319_v41 = vadd.f32 %v1318_v39, %v10462_v1 }
 0x20b   : > { %v1249_v42 = vpop.f32.mrf.mxu0  ;;  %v1363_v43 = vmax.f32 %v1246_v31, 0.0  ;;  %v1320_v46 = vpop.f32.mrf.mxu1  ;;  %v1365_v47 = vmax.f32 %v1317_v35, 0.0 }
 0x20c   : > { %1581 = vst [vmem:[#allocation2 + $0x30] sm:$0xff] %v8845_v37  ;;  %v1364_v44 = vmax.f32 %v1248_v38, 0.0  ;;  %v1250_v45 = vadd.f32 %v1249_v42, %v10453_v15  ;;  %1582 = vst [vmem:[#allocation2 + $0x48] sm:$0xff] %v8846_v40  ;;  %v1366_v48 = vmax.f32 %v1319_v41, 0.0  ;;  %v1321_v49 = vadd.f32 %v1320_v46, %v10456_v61 }
 0x20d   : > { %v1251_v50 = vpop.f32.mrf.mxu0  ;;  %v1322_v53 = vpop.f32.mrf.mxu1 }
 0x20e   : > { %v8849_v51 = vpack.c.bf16 %v1364_v44, %v1363_v43  ;;  %v1252_v52 = vadd.f32 %v1251_v50, %v10459_v18  ;;  %v8850_v14 = vpack.c.bf16 %v1366_v48, %v1365_v47  ;;  %v1323_v54 = vadd.f32 %v1322_v53, %v10462_v1 }
 0x20f   : > { %v1255_v55 = vpop.f32.mrf.mxu0  ;;  %v1371_v56 = vmax.f32 %v1250_v45, 0.0  ;;  %v1326_v59 = vpop.f32.mrf.mxu1  ;;  %v1373_v60 = vmax.f32 %v1321_v49, 0.0 }
 0x210   : > { %1585 = vst [vmem:[#allocation2 + $0x8] sm:$0xff] %v8849_v51  ;;  %v1372_v57 = vmax.f32 %v1252_v52, 0.0  ;;  %v1256_v58 = vadd.f32 %v1255_v55, %v10453_v15  ;;  %1586 = vst [vmem:[#allocation2 + $0x58] sm:$0xff] %v8850_v14  ;;  %v1374_v16 = vmax.f32 %v1323_v54, 0.0  ;;  %v1327_v62 = vadd.f32 %v1326_v59, %v10456_v61 }
 0x211   : > { %v1257_v63 = vpop.f32.mrf.mxu0  ;;  %v1328_v2 = vpop.f32.mrf.mxu1 }
 0x212   : > { %v8853_v7 = vpack.c.bf16 %v1372_v57, %v1371_v56  ;;  %v1258_v0 = vadd.f32 %v1257_v63, %v10459_v18  ;;  %v8854_v3 = vpack.c.bf16 %v1374_v16, %v1373_v60  ;;  %v1329_v4 = vadd.f32 %v1328_v2, %v10462_v1 }
 0x213   : > { %v1259_v5 = vpop.f32.mrf.mxu0  ;;  %v1379_v6 = vmax.f32 %v1256_v58, 0.0  ;;  %v1330_v11 = vpop.f32.mrf.mxu1  ;;  %v1381_v12 = vmax.f32 %v1327_v62, 0.0 }
 0x214   : > { %1589 = vst [vmem:[#allocation2 + $0x78] sm:$0xff] %v8853_v7  ;;  %v1380_v8 = vmax.f32 %v1258_v0, 0.0  ;;  %v1260_v9 = vadd.f32 %v1259_v5, %v10453_v15  ;;  %1590 = vst [vmem:[#allocation2 + $0xb8] sm:$0xff] %v8854_v3  ;;  %v1382_v13 = vmax.f32 %v1329_v4, 0.0  ;;  %v1331_v17 = vadd.f32 %v1330_v11, %v10456_v61 }
 0x215   : > { %v1261_v10 = vpop.f32.mrf.mxu0  ;;  %v1332_v21 = vpop.f32.mrf.mxu1 }
 0x216   : > { %v8857_v19 = vpack.c.bf16 %v1380_v8, %v1379_v6  ;;  %v1262_v20 = vadd.f32 %v1261_v10, %v10459_v18  ;;  %v8858_v22 = vpack.c.bf16 %v1382_v13, %v1381_v12  ;;  %v1333_v23 = vadd.f32 %v1332_v21, %v10462_v1 }
 0x217   : > { %v1265_v24 = vpop.f32.mrf.mxu0  ;;  %v1387_v25 = vmax.f32 %v1260_v9, 0.0  ;;  %v1336_v28 = vpop.f32.mrf.mxu1  ;;  %v1389_v29 = vmax.f32 %v1331_v17, 0.0 }
 0x218   : > { %1593 = vst [vmem:[#allocation2 + $0xc0] sm:$0xff] %v8857_v19  ;;  %v1388_v26 = vmax.f32 %v1262_v20, 0.0  ;;  %v1266_v27 = vadd.f32 %v1265_v24, %v10453_v15  ;;  %1594 = vst [vmem:[#allocation2 + $0x60] sm:$0xff] %v8858_v22  ;;  %v1390_v30 = vmax.f32 %v1333_v23, 0.0  ;;  %v1337_v31 = vadd.f32 %v1336_v28, %v10456_v61 }
 0x219   : > { %v1267_v32 = vpop.f32.mrf.mxu0  ;;  %v1338_v35 = vpop.f32.mrf.mxu1 }
 0x21a   : > { %v8861_v33 = vpack.c.bf16 %v1388_v26, %v1387_v25  ;;  %v1268_v34 = vadd.f32 %v1267_v32, %v10459_v18  ;;  %v8862_v36 = vpack.c.bf16 %v1390_v30, %v1389_v29  ;;  %v1339_v37 = vadd.f32 %v1338_v35, %v10462_v1 }
 0x21b   : > { %v1269_v38 = vpop.f32.mrf.mxu0  ;;  %v1395_v39 = vmax.f32 %v1266_v27, 0.0  ;;  %v1340_v41 = vpop.f32.mrf.mxu1  ;;  %v1397_v15 = vmax.f32 %v1337_v31, 0.0 }
 0x21c   : > { %1597 = vst [vmem:[#allocation2 + $0x98] sm:$0xff] %v8861_v33  ;;  %v1396_v40 = vmax.f32 %v1268_v34, 0.0  ;;  %1598 = vst [vmem:[#allocation2 + $0xa0] sm:$0xff] %v8862_v36  ;;  %v1398_v42 = vmax.f32 %v1339_v37, 0.0 }
 0x21d   : > { %v1270_v43 = vpop.f32.mrf.mxu0  ;;  %v1341_v45 = vpop.f32.mrf.mxu1 }
 0x21e   : > { %v8865_v44 = vpack.c.bf16 %v1396_v40, %v1395_v39  ;;  %v8866_v61 = vpack.c.bf16 %v1398_v42, %v1397_v15 }
 0x220   : > { %1601 = vst [vmem:[#allocation2 + $0xc8] sm:$0xff] %v8865_v44  ;;  %1602 = vst [vmem:[#allocation2 + $0x70] sm:$0xff] %v8866_v61 }
 0x221 PF: > { %v9035_v18 = vld [vmem:[%s10331_s22 + $0xe4] ss:$16 sps:$4 sm:$0xff]   ;;  %v9039_v46 = vld [vmem:[%s10331_s22 + $0xe0] ss:$16 sps:$4 sm:$0xff]   ;;  %v1659_v31 = vld [vmem:[#allocation2 + $0xb0] sm:$0xff]  ;;  %p8679_p2 = scmp.ne.s32.totalorder %s10121_s27, 3 }
 0x222   : > { %v9037_v1 = vld [vmem:[%s10331_s22 + $0x2e4] ss:$16 sps:$4 sm:$0xff]   ;;  %3393 = vmatprep.subr.bf16.mxu0 %v9035_v18  ;;  %v9040_v47 = vld [vmem:[%s10331_s22 + $0x2e0] ss:$16 sps:$4 sm:$0xff]   ;;  %v1663_v32 = vld [vmem:[#allocation2 + $0x50] sm:$0xff]  ;;  %s11838_s30 = sld [smem:[#allocation36_spill]] (!%p8679_p2) }
 0x223   : > { %3464 = vmatprep.subr.bf16.mxu1 %v9037_v1  ;;  %v9041_v48 = vld [vmem:[%s10331_s22 + $0xc4] ss:$16 sps:$4 sm:$0xff]   ;;  %3394 = vmatpush1.bf16.msra.mxu0 %v9039_v46  ;;  %v9045_v50 = vld [vmem:[%s10331_s22 + $0xc0] ss:$16 sps:$4 sm:$0xff]   ;;  %v10540_v34 = vcombine.high %v1659_v31, %v1663_v32 }
 0x224   : > { %3465 = vmatpush1.bf16.msra.mxu1 %v9040_v47  ;;  %v9043_v49 = vld [vmem:[%s10331_s22 + $0x2c4] ss:$16 sps:$4 sm:$0xff]   ;;  %3395 = vmatprep.subr.bf16.mxu0 %v9041_v48  ;;  %v9046_v51 = vld [vmem:[%s10331_s22 + $0x2c0] ss:$16 sps:$4 sm:$0xff]  }
 0x225   : > { %3466 = vmatprep.subr.bf16.mxu1 %v9043_v49  ;;  %v9047_v52 = vld [vmem:[%s10331_s22 + $0xa4] ss:$16 sps:$4 sm:$0xff]   ;;  %v9051_v14 = vld [vmem:[%s10331_s22 + $0xa0] ss:$16 sps:$4 sm:$0xff]   ;;  %3425 = vmatprep.mubr.bf16.mxu0 %v10540_v34 }
 0x226   : > { %v9049_v53 = vld [vmem:[%s10331_s22 + $0x2a4] ss:$16 sps:$4 sm:$0xff]   ;;  %v9052_v54 = vld [vmem:[%s10331_s22 + $0x2a0] ss:$16 sps:$4 sm:$0xff]  }
 0x227   : > { %3396 = vmatpush1.bf16.msra.mxu0 %v9045_v50  ;;  %v9053_v55 = vld [vmem:[%s10331_s22 + $0x84] ss:$16 sps:$4 sm:$0xff]   ;;  %v9057_v57 = vld [vmem:[%s10331_s22 + $0x80] ss:$16 sps:$4 sm:$0xff]   ;;  %v10564_v50 = vcombine.low %v1659_v31, %v1663_v32 }
 0x228   : > { %3467 = vmatpush1.bf16.msra.mxu1 %v9046_v51  ;;  %3397 = vmatprep.subr.bf16.mxu0 %v9047_v52  ;;  %v9055_v56 = vld [vmem:[%s10331_s22 + $0x284] ss:$16 sps:$4 sm:$0xff]   ;;  %v9058_v58 = vld [vmem:[%s10331_s22 + $0x280] ss:$16 sps:$4 sm:$0xff]  }
 0x229   : > { %3468 = vmatprep.subr.bf16.mxu1 %v9049_v53  ;;  %v9059_v59 = vld [vmem:[%s10331_s22 + $0x64] ss:$16 sps:$4 sm:$0xff]   ;;  %v9063_v16 = vld [vmem:[%s10331_s22 + $0x60] ss:$16 sps:$4 sm:$0xff]  }
 0x22a   : > { %v9061_v60 = vld [vmem:[%s10331_s22 + $0x264] ss:$16 sps:$4 sm:$0xff]   ;;  %v9064_v62 = vld [vmem:[%s10331_s22 + $0x260] ss:$16 sps:$4 sm:$0xff]  }
 0x22b   : > { %3398 = vmatpush1.bf16.msra.mxu0 %v9051_v14  ;;  %v9065_v63 = vld [vmem:[%s10331_s22 + $0x44] ss:$16 sps:$4 sm:$0xff]   ;;  %v9069_v0 = vld [vmem:[%s10331_s22 + $0x40] ss:$16 sps:$4 sm:$0xff]  }
 0x22c   : > { %3469 = vmatpush1.bf16.msra.mxu1 %v9052_v54  ;;  %3399 = vmatprep.subr.bf16.mxu0 %v9053_v55  ;;  %v9067_v7 = vld [vmem:[%s10331_s22 + $0x244] ss:$16 sps:$4 sm:$0xff]   ;;  %v9070_v2 = vld [vmem:[%s10331_s22 + $0x240] ss:$16 sps:$4 sm:$0xff]  }
 0x22d   : > { %3470 = vmatprep.subr.bf16.mxu1 %v9055_v56  ;;  %v9071_v3 = vld [vmem:[%s10331_s22 + $0x24] ss:$16 sps:$4 sm:$0xff]   ;;  %v9075_v5 = vld [vmem:[%s10331_s22 + $0x20] ss:$16 sps:$4 sm:$0xff]  }
 0x22e   : > { %v9073_v4 = vld [vmem:[%s10331_s22 + $0x224] ss:$16 sps:$4 sm:$0xff]   ;;  %v9076_v6 = vld [vmem:[%s10331_s22 + $0x220] ss:$16 sps:$4 sm:$0xff]  }
 0x22f   : > { %3400 = vmatpush1.bf16.msra.mxu0 %v9057_v57  ;;  %v9077_v8 = vld [vmem:[%s10331_s22 + $0x4] ss:$16 sps:$4 sm:$0xff]   ;;  %v9081_v11 = vld [vmem:[%s10331_s22] ss:$16 sps:$4 sm:$0xff]  }
 0x230   : > { %3471 = vmatpush1.bf16.msra.mxu1 %v9058_v58  ;;  %3401 = vmatprep.subr.bf16.mxu0 %v9059_v59  ;;  %v9079_v9 = vld [vmem:[%s10331_s22 + $0x204] ss:$16 sps:$4 sm:$0xff]   ;;  %v9082_v12 = vld [vmem:[%s10331_s22 + $0x200] ss:$16 sps:$4 sm:$0xff]  }
 0x231   : > { %3472 = vmatprep.subr.bf16.mxu1 %v9061_v60  ;;  %v9083_v13 = vld [vmem:[%s10331_s22 + $0x1e4] ss:$16 sps:$4 sm:$0xff]   ;;  %v9087_v10 = vld [vmem:[%s10331_s22 + $0x1e0] ss:$16 sps:$4 sm:$0xff]  }
 0x232   : > { %v9085_v17 = vld [vmem:[%s10331_s22 + $0x3e4] ss:$16 sps:$4 sm:$0xff]   ;;  %v9088_v19 = vld [vmem:[%s10331_s22 + $0x3e0] ss:$16 sps:$4 sm:$0xff]  }
 0x233   : > { %3402 = vmatpush1.bf16.msra.mxu0 %v9063_v16  ;;  %v9089_v20 = vld [vmem:[%s10331_s22 + $0x1c4] ss:$16 sps:$4 sm:$0xff]   ;;  %v9093_v22 = vld [vmem:[%s10331_s22 + $0x1c0] ss:$16 sps:$4 sm:$0xff]  }
 0x234   : > { %3473 = vmatpush1.bf16.msra.mxu1 %v9064_v62  ;;  %3403 = vmatprep.subr.bf16.mxu0 %v9065_v63  ;;  %v9091_v21 = vld [vmem:[%s10331_s22 + $0x3c4] ss:$16 sps:$4 sm:$0xff]   ;;  %v9094_v23 = vld [vmem:[%s10331_s22 + $0x3c0] ss:$16 sps:$4 sm:$0xff]  }
 0x235   : > { %3474 = vmatprep.subr.bf16.mxu1 %v9067_v7  ;;  %v9095_v24 = vld [vmem:[%s10331_s22 + $0x1a4] ss:$16 sps:$4 sm:$0xff]   ;;  %v9099_v26 = vld [vmem:[%s10331_s22 + $0x1a0] ss:$16 sps:$4 sm:$0xff]  }
 0x236   : > { %v9097_v25 = vld [vmem:[%s10331_s22 + $0x3a4] ss:$16 sps:$4 sm:$0xff]   ;;  %v9100_v27 = vld [vmem:[%s10331_s22 + $0x3a0] ss:$16 sps:$4 sm:$0xff]  }
 0x237   : > { %3404 = vmatpush1.bf16.msra.mxu0 %v9069_v0  ;;  %v9101_v28 = vld [vmem:[%s10331_s22 + $0x184] ss:$16 sps:$4 sm:$0xff]   ;;  %v9105_v30 = vld [vmem:[%s10331_s22 + $0x180] ss:$16 sps:$4 sm:$0xff]  }
 0x238   : > { %3475 = vmatpush1.bf16.msra.mxu1 %v9070_v2  ;;  %3405 = vmatprep.subr.bf16.mxu0 %v9071_v3  ;;  %v9103_v29 = vld [vmem:[%s10331_s22 + $0x384] ss:$16 sps:$4 sm:$0xff]   ;;  %v9106_v33 = vld [vmem:[%s10331_s22 + $0x380] ss:$16 sps:$4 sm:$0xff]  }
 0x239   : > { %3476 = vmatprep.subr.bf16.mxu1 %v9073_v4  ;;  %v10542_v35 = vld [vmem:[#allocation2 + $0x4] ss:$104 sps:$4 sm:$0xff]   ;;  %v9111_v38 = vld [vmem:[%s10331_s22 + $0x160] ss:$16 sps:$4 sm:$0xff]  }
 0x23a   : > { %v9107_v36 = vld [vmem:[%s10331_s22 + $0x164] ss:$16 sps:$4 sm:$0xff]   ;;  %3496 = vmatprep.mubr.bf16.mxu1 %v10542_v35  ;;  %v9112_v39 = vld [vmem:[%s10331_s22 + $0x360] ss:$16 sps:$4 sm:$0xff]  }
 0x23b   : > { %3406 = vmatpush1.bf16.msra.mxu0 %v9075_v5  ;;  %v9109_v37 = vld [vmem:[%s10331_s22 + $0x364] ss:$16 sps:$4 sm:$0xff]   ;;  %v9117_v15 = vld [vmem:[%s10331_s22 + $0x140] ss:$16 sps:$4 sm:$0xff]  }
 0x23c   : > { %3477 = vmatpush1.bf16.msra.mxu1 %v9076_v6  ;;  %3407 = vmatprep.subr.bf16.mxu0 %v9077_v8  ;;  %v9113_v40 = vld [vmem:[%s10331_s22 + $0x144] ss:$16 sps:$4 sm:$0xff]   ;;  %v9118_v42 = vld [vmem:[%s10331_s22 + $0x340] ss:$16 sps:$4 sm:$0xff]   ;;  %v10595_v8 = vld [vmem:[#allocation2 + $0x44] ss:$144 sps:$4 sm:$0xff]  }
 0x23d   : > { %3478 = vmatprep.subr.bf16.mxu1 %v9079_v9  ;;  %v9115_v41 = vld [vmem:[%s10331_s22 + $0x344] ss:$16 sps:$4 sm:$0xff]   ;;  %v9123_v45 = vld [vmem:[%s10331_s22 + $0x120] ss:$16 sps:$4 sm:$0xff]  }
 0x23e   : > { %v9119_v43 = vld [vmem:[%s10331_s22 + $0x124] ss:$16 sps:$4 sm:$0xff]   ;;  %v9124_v61 = vld [vmem:[%s10331_s22 + $0x320] ss:$16 sps:$4 sm:$0xff]  }
 0x23f   : > { %3408 = vmatpush1.bf16.msra.mxu0 %v9081_v11  ;;  %v9121_v44 = vld [vmem:[%s10331_s22 + $0x324] ss:$16 sps:$4 sm:$0xff]   ;;  %v9129_v46 = vld [vmem:[%s10331_s22 + $0x100] ss:$16 sps:$4 sm:$0xff]  }
 0x240   : > { %3479 = vmatpush1.bf16.msra.mxu1 %v9082_v12  ;;  %3409 = vmatprep.subr.bf16.mxu0 %v9083_v13  ;;  %v9125_v18 = vld [vmem:[%s10331_s22 + $0x104] ss:$16 sps:$4 sm:$0xff]   ;;  %v9130_v47 = vld [vmem:[%s10331_s22 + $0x300] ss:$16 sps:$4 sm:$0xff]  }
 0x241   : > { %3480 = vmatprep.subr.bf16.mxu1 %v9085_v17  ;;  %v9127_v1 = vld [vmem:[%s10331_s22 + $0x304] ss:$16 sps:$4 sm:$0xff]   ;;  %v9131_v51 = vld [vmem:[#allocation2] ss:$104 sps:$4 sm:$0xff]  }
 0x242   : > { %v9136_v48 = vld [vmem:[%s10331_s22 + $0x4e4] ss:$16 sps:$4 sm:$0xff]   ;;  %v9134_v52 = vld [vmem:[%s10331_s22 + $0x4e0] ss:$16 sps:$4 sm:$0xff]   ;;  %v10600_v17 = vld [vmem:[#allocation2 + $0x40] ss:$144 sps:$4 sm:$0xff]  }
 0x243   : > { %3410 = vmatpush2.bf16.msra.mxu0 %v9087_v10  ;;  %v9139_v49 = vld [vmem:[%s10331_s22 + $0x6e4] ss:$16 sps:$4 sm:$0xff]   ;;  %v9137_v53 = vld [vmem:[%s10331_s22 + $0x6e0] ss:$16 sps:$4 sm:$0xff]  }
 0x244   : > { %3481 = vmatpush2.bf16.msra.mxu1 %v9088_v19  ;;  %3411 = vmatprep.subr.bf16.mxu0 %v9089_v20  ;;  %v9142_v14 = vld [vmem:[%s10331_s22 + $0x4c4] ss:$16 sps:$4 sm:$0xff]   ;;  %v9140_v55 = vld [vmem:[%s10331_s22 + $0x4c0] ss:$16 sps:$4 sm:$0xff]  }
 0x245   : > { %3482 = vmatprep.subr.bf16.mxu1 %v9091_v21  ;;  %v9145_v54 = vld [vmem:[%s10331_s22 + $0x6c4] ss:$16 sps:$4 sm:$0xff]   ;;  %v9143_v56 = vld [vmem:[%s10331_s22 + $0x6c0] ss:$16 sps:$4 sm:$0xff]  }
 0x246   : > { %v9148_v57 = vld [vmem:[%s10331_s22 + $0x4a4] ss:$16 sps:$4 sm:$0xff]   ;;  %v9146_v60 = vld [vmem:[%s10331_s22 + $0x4a0] ss:$16 sps:$4 sm:$0xff]  }
 0x247   : > { %3412 = vmatpush2.bf16.msra.mxu0 %v9093_v22  ;;  %v9151_v58 = vld [vmem:[%s10331_s22 + $0x6a4] ss:$16 sps:$4 sm:$0xff]   ;;  %v10581_v62 = vld [vmem:[#allocation2 + $0x80] ss:$-72 sps:$4 sm:$0xff]   ;;  %v10586_v2 = vld [vmem:[#allocation2 + $0x88] ss:$8 sps:$4 sm:$0xff]  }
 0x248   : > { %3483 = vmatpush2.bf16.msra.mxu1 %v9094_v23  ;;  %3413 = vmatprep.subr.bf16.mxu0 %v9095_v24  ;;  %v10575_v59 = vld [vmem:[#allocation2 + $0x84] ss:$-72 sps:$4 sm:$0xff]   ;;  %v10578_v16 = vld [vmem:[#allocation2 + $0x8c] ss:$8 sps:$4 sm:$0xff]   ;;  %v9149_v63 = vld [vmem:[%s10331_s22 + $0x6a0] ss:$16 sps:$4 sm:$0xff]  }
 0x249   : > { %3484 = vmatprep.subr.bf16.mxu1 %v9097_v25  ;;  %v9154_v7 = vld [vmem:[%s10331_s22 + $0x484] ss:$16 sps:$4 sm:$0xff]   ;;  %v9152_v3 = vld [vmem:[%s10331_s22 + $0x480] ss:$16 sps:$4 sm:$0xff]   ;;  %v1683_v24 = vld [vmem:[#allocation2 + $0x20] sm:$0xff] }
 0x24a   : > { %v9157_v0 = vld [vmem:[%s10331_s22 + $0x684] ss:$16 sps:$4 sm:$0xff]   ;;  %v9155_v4 = vld [vmem:[%s10331_s22 + $0x680] ss:$16 sps:$4 sm:$0xff]   ;;  %v1684_v25 = vld [vmem:[#allocation2 + $0x10] sm:$0xff] }
 0x24b   : > { %3414 = vmatpush2.bf16.msra.mxu0 %v9099_v26  ;;  %v9160_v5 = vld [vmem:[%s10331_s22 + $0x464] ss:$16 sps:$4 sm:$0xff]   ;;  %v9158_v9 = vld [vmem:[%s10331_s22 + $0x460] ss:$16 sps:$4 sm:$0xff]   ;;  %v10623_v31 = vcombine.low %v1684_v25, %v1684_v25 }
 0x24c   : > { %3485 = vmatpush2.bf16.msra.mxu1 %v9100_v27  ;;  %3415 = vmatprep.subr.bf16.mxu0 %v9101_v28  ;;  %v9163_v6 = vld [vmem:[%s10331_s22 + $0x664] ss:$16 sps:$4 sm:$0xff]   ;;  %v9161_v13 = vld [vmem:[%s10331_s22 + $0x660] ss:$16 sps:$4 sm:$0xff]   ;;  %v10615_v28 = vcombine.high %v1683_v24, %v1683_v24 }
 0x24d   : > { %3486 = vmatprep.subr.bf16.mxu1 %v9103_v29  ;;  %v1676_v11 = vld [vmem:[#allocation2 + $0x28] sm:$0xff]  ;;  %v10617_v29 = vcombine.high %v1684_v25, %v1684_v25  ;;  %v1670_v25 = vld [vmem:[#allocation2 + $0x58] sm:$0xff] }
 0x24e   : > { %v1680_v12 = vld [vmem:[#allocation2 + $0xa8] sm:$0xff] }
 0x24f   : > { %3416 = vmatpush2.bf16.msra.mxu0 %v9105_v30  ;;  %v10602_v10 = vcombine.high %v1676_v11, %v1680_v12  ;;  %v10604_v19 = vcombine.low %v1676_v11, %v1680_v12  ;;  %v9166_v20 = vld [vmem:[%s10331_s22 + $0x444] ss:$16 sps:$4 sm:$0xff]   ;;  %v9164_v22 = vld [vmem:[%s10331_s22 + $0x440] ss:$16 sps:$4 sm:$0xff]   ;;  %v10620_v30 = vcombine.low %v1683_v24, %v1683_v24  ;;  %v9252_v24 = vld [vmem:[%s10331_s22 + $0x2e8] ss:$16 sps:$4 sm:$0xff]  }
 0x250   : > { %3487 = vmatpush2.bf16.msra.mxu1 %v9106_v33  ;;  %3417 = vmatprep.subr.bf16.mxu0 %v9107_v36  ;;  %v9169_v21 = vld [vmem:[%s10331_s22 + $0x644] ss:$16 sps:$4 sm:$0xff]   ;;  %v9167_v23 = vld [vmem:[%s10331_s22 + $0x640] ss:$16 sps:$4 sm:$0xff]  }
 0x251   : > { %3488 = vmatprep.subr.bf16.mxu1 %v9109_v37  ;;  %v9172_v26 = vld [vmem:[%s10331_s22 + $0x424] ss:$16 sps:$4 sm:$0xff]   ;;  %v9170_v32 = vld [vmem:[%s10331_s22 + $0x420] ss:$16 sps:$4 sm:$0xff]  }
 0x252   : > { %v9175_v27 = vld [vmem:[%s10331_s22 + $0x624] ss:$16 sps:$4 sm:$0xff]   ;;  %v9173_v33 = vld [vmem:[%s10331_s22 + $0x620] ss:$16 sps:$4 sm:$0xff]  }
 0x253   : > { %3418 = vmatpush2.bf16.msra.mxu0 %v9111_v38  ;;  %v9178_v36 = vld [vmem:[%s10331_s22 + $0x404] ss:$16 sps:$4 sm:$0xff]   ;;  %v9176_v38 = vld [vmem:[%s10331_s22 + $0x400] ss:$16 sps:$4 sm:$0xff]  }
 0x254   : > { %3489 = vmatpush2.bf16.msra.mxu1 %v9112_v39  ;;  %3419 = vmatprep.subr.bf16.mxu0 %v9113_v40  ;;  %v9181_v37 = vld [vmem:[%s10331_s22 + $0x604] ss:$16 sps:$4 sm:$0xff]   ;;  %v9179_v39 = vld [vmem:[%s10331_s22 + $0x600] ss:$16 sps:$4 sm:$0xff]  }
 0x255   : > { %3490 = vmatprep.subr.bf16.mxu1 %v9115_v41  ;;  %v9184_v40 = vld [vmem:[%s10331_s22 + $0x5e4] ss:$16 sps:$4 sm:$0xff]   ;;  %v9237_v11 = vld [vmem:[%s10331_s22 + $0x500] ss:$16 sps:$4 sm:$0xff]  }
 0x256   : > { %v9187_v41 = vld [vmem:[%s10331_s22 + $0x7e4] ss:$16 sps:$4 sm:$0xff]   ;;  %v9240_v12 = vld [vmem:[%s10331_s22 + $0x700] ss:$16 sps:$4 sm:$0xff]  }
 0x257   : > { %3420 = vmatpush2.bf16.msra.mxu0 %v9117_v15  ;;  %v10635_v15 = vld [vmem:[#allocation2 + $0xdc] ss:$-168 sps:$4 sm:$0xff]  }
 0x258   : > { %3491 = vmatpush2.bf16.msra.mxu1 %v9118_v42  ;;  %3421 = vmatprep.subr.bf16.mxu0 %v9119_v43  ;;  %v10638_v42 = vld [vmem:[#allocation2 + $0x1c] ss:$48 sps:$4 sm:$0xff]   ;;  %v9182_v43 = vld [vmem:[%s10331_s22 + $0x5e0] ss:$16 sps:$4 sm:$0xff]  }
 0x259   : > { %3492 = vmatprep.subr.bf16.mxu1 %v9121_v44  ;;  %v9185_v44 = vld [vmem:[%s10331_s22 + $0x7e0] ss:$16 sps:$4 sm:$0xff]  }
 0x25b   : > { %3422 = vmatpush2.bf16.msra.mxu0 %v9123_v45  ;;  %v9195_v45 = vld [vmem:[%s10331_s22 + $0x5c4] ss:$16 sps:$4 sm:$0xff]  }
 0x25c   : > { %3493 = vmatpush2.bf16.msra.mxu1 %v9124_v61  ;;  %3423 = vmatprep.subr.bf16.mxu0 %v9125_v18  ;;  %v9198_v61 = vld [vmem:[%s10331_s22 + $0x7c4] ss:$16 sps:$4 sm:$0xff]   ;;  %v9193_v18 = vld [vmem:[%s10331_s22 + $0x5c0] ss:$16 sps:$4 sm:$0xff]  }
 0x25d   : > { %3494 = vmatprep.subr.bf16.mxu1 %v9127_v1  ;;  %v9196_v1 = vld [vmem:[%s10331_s22 + $0x7c0] ss:$16 sps:$4 sm:$0xff]  }
 0x25f   : > { %3424 = vmatpush2.bf16.msra.mxu0 %v9129_v46  ;;  %v9202_v46 = vld [vmem:[%s10331_s22 + $0x5a4] ss:$16 sps:$4 sm:$0xff]  }
 0x260   : > { %3495 = vmatpush2.bf16.msra.mxu1 %v9130_v47  ;;  %3535 = vmatprep.subr.bf16.mxu0 %v9136_v48  ;;  %v9205_v47 = vld [vmem:[%s10331_s22 + $0x7a4] ss:$16 sps:$4 sm:$0xff]   ;;  %v9200_v48 = vld [vmem:[%s10331_s22 + $0x5a0] ss:$16 sps:$4 sm:$0xff]  }
 0x261   : > { %3606 = vmatprep.subr.bf16.mxu1 %v9139_v49  ;;  %v9203_v49 = vld [vmem:[%s10331_s22 + $0x7a0] ss:$16 sps:$4 sm:$0xff]  }
 0x262   : > { %3426 = vmatmul.mubr.bf16.vlgmr.msra.gmra.mxu0 %v10564_v50 }
 0x263   : > { %3497 = vmatmul.mubr.bf16.vlgmr.msra.gmra.mxu1 %v9131_v51  ;;  %3536 = vmatpush1.bf16.msra.mxu0 %v9134_v52  ;;  %v9211_v51 = vld [vmem:[%s10331_s22 + $0x584] ss:$16 sps:$4 sm:$0xff]  }
 0x264   : > { %3607 = vmatpush1.bf16.msra.mxu1 %v9137_v53  ;;  %3537 = vmatprep.subr.bf16.mxu0 %v9142_v14  ;;  %v9214_v52 = vld [vmem:[%s10331_s22 + $0x784] ss:$16 sps:$4 sm:$0xff]   ;;  %v9209_v53 = vld [vmem:[%s10331_s22 + $0x580] ss:$16 sps:$4 sm:$0xff]  }
 0x265   : > { %3608 = vmatprep.subr.bf16.mxu1 %v9145_v54  ;;  %3435 = vmatprep.mubr.bf16.mxu0 %v10575_v59  ;;  %v9212_v14 = vld [vmem:[%s10331_s22 + $0x780] ss:$16 sps:$4 sm:$0xff]   ;;  %v9217_v54 = vld [vmem:[%s10331_s22 + $0x564] ss:$16 sps:$4 sm:$0xff]  }
 0x266   : > { %3506 = vmatprep.mubr.bf16.mxu1 %v10578_v16 }
 0x267   : > { %3538 = vmatpush1.bf16.msra.mxu0 %v9140_v55  ;;  %v9220_v55 = vld [vmem:[%s10331_s22 + $0x764] ss:$16 sps:$4 sm:$0xff]  }
 0x268   : > { %3609 = vmatpush1.bf16.msra.mxu1 %v9143_v56  ;;  %3539 = vmatprep.subr.bf16.mxu0 %v9148_v57  ;;  %v9215_v56 = vld [vmem:[%s10331_s22 + $0x560] ss:$16 sps:$4 sm:$0xff]  }
 0x269   : > { %3610 = vmatprep.subr.bf16.mxu1 %v9151_v58  ;;  %v9218_v57 = vld [vmem:[%s10331_s22 + $0x760] ss:$16 sps:$4 sm:$0xff]   ;;  %v9226_v58 = vld [vmem:[%s10331_s22 + $0x544] ss:$16 sps:$4 sm:$0xff]  }
 0x26a   : > { %3436 = vmatmul.mubr.bf16.gmra.mxu0 %v10581_v62 }
 0x26b   : > { %3507 = vmatmul.mubr.bf16.gmra.mxu1 %v10586_v2  ;;  %3540 = vmatpush1.bf16.msra.mxu0 %v9146_v60  ;;  %v9229_v60 = vld [vmem:[%s10331_s22 + $0x744] ss:$16 sps:$4 sm:$0xff]  }
 0x26c   : > { %3611 = vmatpush1.bf16.msra.mxu1 %v9149_v63  ;;  %3541 = vmatprep.subr.bf16.mxu0 %v9154_v7  ;;  %v9224_v63 = vld [vmem:[%s10331_s22 + $0x540] ss:$16 sps:$4 sm:$0xff]  }
 0x26d   : > { %3612 = vmatprep.subr.bf16.mxu1 %v9157_v0  ;;  %3445 = vmatprep.mubr.bf16.mxu0 %v10595_v8  ;;  %v9227_v7 = vld [vmem:[%s10331_s22 + $0x740] ss:$16 sps:$4 sm:$0xff]   ;;  %v9233_v0 = vld [vmem:[%s10331_s22 + $0x524] ss:$16 sps:$4 sm:$0xff]  }
 0x26e   : > { %3516 = vmatprep.mubr.bf16.mxu1 %v10602_v10 }
 0x26f   : > { %3542 = vmatpush1.bf16.msra.mxu0 %v9152_v3  ;;  %v9236_v3 = vld [vmem:[%s10331_s22 + $0x724] ss:$16 sps:$4 sm:$0xff]  }
 0x270   : > { %3613 = vmatpush1.bf16.msra.mxu1 %v9155_v4  ;;  %3543 = vmatprep.subr.bf16.mxu0 %v9160_v5  ;;  %v9231_v4 = vld [vmem:[%s10331_s22 + $0x520] ss:$16 sps:$4 sm:$0xff]  }
 0x271   : > { %3614 = vmatprep.subr.bf16.mxu1 %v9163_v6  ;;  %v9234_v5 = vld [vmem:[%s10331_s22 + $0x720] ss:$16 sps:$4 sm:$0xff]   ;;  %v9239_v6 = vld [vmem:[%s10331_s22 + $0x504] ss:$16 sps:$4 sm:$0xff]  }
 0x272   : > { %3446 = vmatmul.mubr.bf16.gmra.mxu0 %v10600_v17 }
 0x273   : > { %3517 = vmatmul.mubr.bf16.gmra.mxu1 %v10604_v19  ;;  %3544 = vmatpush1.bf16.msra.mxu0 %v9158_v9  ;;  %v9242_v9 = vld [vmem:[%s10331_s22 + $0x704] ss:$16 sps:$4 sm:$0xff]  }
 0x274   : > { %3615 = vmatpush1.bf16.msra.mxu1 %v9161_v13  ;;  %3545 = vmatprep.subr.bf16.mxu0 %v9166_v20  ;;  %v9251_v13 = vld [vmem:[%s10331_s22 + $0xec] ss:$16 sps:$4 sm:$0xff]   ;;  %v10672_v20 = vld [vmem:[#allocation2 + $0xd8] ss:$-168 sps:$4 sm:$0xff]  }
 0x275   : > { %3616 = vmatprep.subr.bf16.mxu1 %v9169_v21  ;;  %3455 = vmatprep.mubr.bf16.mxu0 %v10615_v28  ;;  %v10674_v21 = vld [vmem:[#allocation2 + $0x18] ss:$48 sps:$4 sm:$0xff]  }
 0x276   : > { %3526 = vmatprep.mubr.bf16.mxu1 %v10617_v29 }
 0x277   : > { %3546 = vmatpush1.bf16.msra.mxu0 %v9164_v22  ;;  %v9254_v22 = vld [vmem:[%s10331_s22 + $0x2ec] ss:$16 sps:$4 sm:$0xff]  }
 0x278   : > { %3617 = vmatpush1.bf16.msra.mxu1 %v9167_v23  ;;  %3547 = vmatprep.subr.bf16.mxu0 %v9172_v26  ;;  %v9249_v23 = vld [vmem:[%s10331_s22 + $0xe8] ss:$16 sps:$4 sm:$0xff]   ;;  %v1674_v26 = vld [vmem:[#allocation2 + $0xb8] sm:$0xff] }
 0x279   : > { %3618 = vmatprep.subr.bf16.mxu1 %v9175_v27  ;;  %v9257_v27 = vld [vmem:[%s10331_s22 + $0xcc] ss:$16 sps:$4 sm:$0xff]  }
 0x27a   : > { %3456 = vmatmul.mubr.bf16.gmra.mxu0 %v10620_v30 }
 0x27b   : > { %3527 = vmatmul.mubr.bf16.gmra.mxu1 %v10623_v31  ;;  %3548 = vmatpush1.bf16.msra.mxu0 %v9170_v32  ;;  %v9260_v32 = vld [vmem:[%s10331_s22 + $0x2cc] ss:$16 sps:$4 sm:$0xff]  }
 0x27c   : > { %3619 = vmatpush1.bf16.msra.mxu1 %v9173_v33  ;;  %3549 = vmatprep.subr.bf16.mxu0 %v9178_v36  ;;  %v10681_v33 = vld [vmem:[#allocation2 + $0xc] ss:$112 sps:$4 sm:$0xff]   ;;  %v10683_v36 = vcombine.high %v1670_v25, %v1674_v26 }
 0x27d   : > { %3620 = vmatprep.subr.bf16.mxu1 %v9181_v37  ;;  %3567 = vmatprep.mubr.bf16.mxu0 %v10635_v15  ;;  %v9255_v37 = vld [vmem:[%s10331_s22 + $0xc8] ss:$16 sps:$4 sm:$0xff]  }
 0x27e   : > { %3638 = vmatprep.mubr.bf16.mxu1 %v10638_v42 }
 0x27f   : > { %3550 = vmatpush1.bf16.msra.mxu0 %v9176_v38  ;;  %v9258_v38 = vld [vmem:[%s10331_s22 + $0x2c8] ss:$16 sps:$4 sm:$0xff]  }
 0x280   : > { %3621 = vmatpush1.bf16.msra.mxu1 %v9179_v39  ;;  %3551 = vmatprep.subr.bf16.mxu0 %v9184_v40  ;;  %v9266_v39 = vld [vmem:[%s10331_s22 + $0xac] ss:$16 sps:$4 sm:$0xff]   ;;  %v10690_v40 = vld [vmem:[#allocation2 + $0x8] ss:$112 sps:$4 sm:$0xff]  }
 0x281   : > { %3622 = vmatprep.subr.bf16.mxu1 %v9187_v41  ;;  %v9269_v41 = vld [vmem:[%s10331_s22 + $0x2ac] ss:$16 sps:$4 sm:$0xff]  }
 0x283   : > { %3552 = vmatpush2.bf16.msra.mxu0 %v9182_v43  ;;  %v9264_v43 = vld [vmem:[%s10331_s22 + $0xa8] ss:$16 sps:$4 sm:$0xff]  }
 0x284   : > { %3623 = vmatpush2.bf16.msra.mxu1 %v9185_v44  ;;  %3553 = vmatprep.subr.bf16.mxu0 %v9195_v45  ;;  %v9267_v44 = vld [vmem:[%s10331_s22 + $0x2a8] ss:$16 sps:$4 sm:$0xff]   ;;  %v10697_v45 = vcombine.low %v1670_v25, %v1674_v26  ;;  %v9309_v26 = vld [vmem:[%s10331_s22 + $0x1ec] ss:$16 sps:$4 sm:$0xff]  }
 0x285   : > { %3624 = vmatprep.subr.bf16.mxu1 %v9198_v61  ;;  %v1678_v61 = vld [vmem:[#allocation2 + $0x60] sm:$0xff] }
 0x286   : > { %v9304_v25 = vld [vmem:[%s10331_s22 + $0x208] ss:$16 sps:$4 sm:$0xff]  }
 0x287   : > { %3554 = vmatpush2.bf16.msra.mxu0 %v9193_v18  ;;  %v1682_v18 = vld [vmem:[#allocation2 + $0xa0] sm:$0xff] }
 0x288   : > { %3625 = vmatpush2.bf16.msra.mxu1 %v9196_v1  ;;  %3555 = vmatprep.subr.bf16.mxu0 %v9202_v46  ;;  %v9272_v1 = vld [vmem:[%s10331_s22 + $0x8c] ss:$16 sps:$4 sm:$0xff]  }
 0x289   : > { %3626 = vmatprep.subr.bf16.mxu1 %v9205_v47  ;;  %v9275_v46 = vld [vmem:[%s10331_s22 + $0x28c] ss:$16 sps:$4 sm:$0xff]  }
 0x28a   : > { %v10701_v47 = vld [vmem:[#allocation2 + $0xc4] ss:$-40 sps:$4 sm:$0xff]  }
 0x28b   : > { %3556 = vmatpush2.bf16.msra.mxu0 %v9200_v48  ;;  %v10703_v48 = vcombine.high %v1678_v61, %v1682_v18 }
 0x28c   : > { %3627 = vmatpush2.bf16.msra.mxu1 %v9203_v49  ;;  %3557 = vmatprep.subr.bf16.mxu0 %v9211_v51  ;;  %v9270_v49 = vld [vmem:[%s10331_s22 + $0x88] ss:$16 sps:$4 sm:$0xff]  }
 0x28d   : > { %3628 = vmatprep.subr.bf16.mxu1 %v9214_v52  ;;  %v9273_v51 = vld [vmem:[%s10331_s22 + $0x288] ss:$16 sps:$4 sm:$0xff]   ;;  %v9281_v52 = vld [vmem:[%s10331_s22 + $0x6c] ss:$16 sps:$4 sm:$0xff]  }
 0x28f   : > { %3558 = vmatpush2.bf16.msra.mxu0 %v9209_v53  ;;  %v10710_v53 = vld [vmem:[#allocation2 + $0xc0] ss:$-40 sps:$4 sm:$0xff]  }
 0x290   : > { %3629 = vmatpush2.bf16.msra.mxu1 %v9212_v14  ;;  %3559 = vmatprep.subr.bf16.mxu0 %v9217_v54  ;;  %v9284_v14 = vld [vmem:[%s10331_s22 + $0x26c] ss:$16 sps:$4 sm:$0xff]   ;;  %v9279_v54 = vld [vmem:[%s10331_s22 + $0x68] ss:$16 sps:$4 sm:$0xff]  }
 0x291   : > { %3630 = vmatprep.subr.bf16.mxu1 %v9220_v55  ;;  %v9282_v55 = vld [vmem:[%s10331_s22 + $0x268] ss:$16 sps:$4 sm:$0xff]  }
 0x293   : > { %3560 = vmatpush2.bf16.msra.mxu0 %v9215_v56  ;;  %v10717_v56 = vcombine.low %v1678_v61, %v1682_v18  ;;  %v9322_v61 = vld [vmem:[%s10331_s22 + $0x3a8] ss:$16 sps:$4 sm:$0xff]   ;;  %v9327_v18 = vld [vmem:[%s10331_s22 + $0x18c] ss:$16 sps:$4 sm:$0xff]  }
 0x294   : > { %3631 = vmatpush2.bf16.msra.mxu1 %v9218_v57  ;;  %3561 = vmatprep.subr.bf16.mxu0 %v9226_v58  ;;  %v1685_v57 = vld [vmem:[#allocation2 + $0xc8] sm:$0xff]  ;;  %v1686_v58 = vld [vmem:[#allocation2 + $0x70] sm:$0xff] }
 0x295   : > { %3632 = vmatprep.subr.bf16.mxu1 %v9229_v60  ;;  %v9287_v60 = vld [vmem:[%s10331_s22 + $0x4c] ss:$16 sps:$4 sm:$0xff]  }
 0x297   : > { %3562 = vmatpush2.bf16.msra.mxu0 %v9224_v63  ;;  %v9290_v63 = vld [vmem:[%s10331_s22 + $0x24c] ss:$16 sps:$4 sm:$0xff]  }
 0x298   : > { %3633 = vmatpush2.bf16.msra.mxu1 %v9227_v7  ;;  %3563 = vmatprep.subr.bf16.mxu0 %v9233_v0  ;;  %v10721_v7 = vcombine.high %v1685_v57, %v1685_v57  ;;  %v10723_v0 = vcombine.high %v1686_v58, %v1686_v58 }
 0x299   : > { %3634 = vmatprep.subr.bf16.mxu1 %v9236_v3  ;;  %v9285_v3 = vld [vmem:[%s10331_s22 + $0x48] ss:$16 sps:$4 sm:$0xff]  }
 0x29b   : > { %3564 = vmatpush2.bf16.msra.mxu0 %v9231_v4  ;;  %v9288_v4 = vld [vmem:[%s10331_s22 + $0x248] ss:$16 sps:$4 sm:$0xff]  }
 0x29c   : > { %3635 = vmatpush2.bf16.msra.mxu1 %v9234_v5  ;;  %3565 = vmatprep.subr.bf16.mxu0 %v9239_v6  ;;  %v9295_v5 = vld [vmem:[%s10331_s22 + $0x2c] ss:$16 sps:$4 sm:$0xff]  }
 0x29d   : > { %3636 = vmatprep.subr.bf16.mxu1 %v9242_v9  ;;  %v9298_v6 = vld [vmem:[%s10331_s22 + $0x22c] ss:$16 sps:$4 sm:$0xff]   ;;  %v10733_v9 = vcombine.low %v1685_v57, %v1685_v57 }
 0x29e   : > { %v9342_v57 = vld [vmem:[%s10331_s22 + $0x34c] ss:$16 sps:$4 sm:$0xff]  }
 0x29f   : > { %3566 = vmatpush2.bf16.msra.mxu0 %v9237_v11  ;;  %v9293_v11 = vld [vmem:[%s10331_s22 + $0x28] ss:$16 sps:$4 sm:$0xff]  }
 0x2a0   : > { %3637 = vmatpush2.bf16.msra.mxu1 %v9240_v12  ;;  %3677 = vmatprep.subr.bf16.mxu0 %v9251_v13  ;;  %v9296_v12 = vld [vmem:[%s10331_s22 + $0x228] ss:$16 sps:$4 sm:$0xff]   ;;  %v10737_v13 = vcombine.low %v1686_v58, %v1686_v58 }
 0x2a1   : > { %3748 = vmatprep.subr.bf16.mxu1 %v9254_v22  ;;  %v9303_v22 = vld [vmem:[%s10331_s22 + $0xc] ss:$16 sps:$4 sm:$0xff]   ;;  %v9337_v58 = vld [vmem:[%s10331_s22 + $0x148] ss:$16 sps:$4 sm:$0xff]  }
 0x2a2   : > { %3568 = vmatmul.mubr.bf16.vlgmr.msra.gmra.mxu0 %v10672_v20 }
 0x2a3   : > { %3639 = vmatmul.mubr.bf16.vlgmr.msra.gmra.mxu1 %v10674_v21  ;;  %3678 = vmatpush1.bf16.msra.mxu0 %v9249_v23  ;;  %v9306_v23 = vld [vmem:[%s10331_s22 + $0x20c] ss:$16 sps:$4 sm:$0xff]  }
 0x2a4   : > { %3749 = vmatpush1.bf16.msra.mxu1 %v9252_v24  ;;  %3679 = vmatprep.subr.bf16.mxu0 %v9257_v27  ;;  %v9301_v24 = vld [vmem:[%s10331_s22 + $0x8] ss:$16 sps:$4 sm:$0xff]   ;;  %v9312_v27 = vld [vmem:[%s10331_s22 + $0x3ec] ss:$16 sps:$4 sm:$0xff]  }
 0x2a5   : > { %3750 = vmatprep.subr.bf16.mxu1 %v9260_v32  ;;  %3577 = vmatprep.mubr.bf16.mxu0 %v10681_v33  ;;  %v9307_v32 = vld [vmem:[%s10331_s22 + $0x1e8] ss:$16 sps:$4 sm:$0xff]  }
 0x2a6   : > { %3648 = vmatprep.mubr.bf16.mxu1 %v10683_v36 }
 0x2a7   : > { %3680 = vmatpush1.bf16.msra.mxu0 %v9255_v37  ;;  %v9310_v37 = vld [vmem:[%s10331_s22 + $0x3e8] ss:$16 sps:$4 sm:$0xff]  }
 0x2a8   : > { %3751 = vmatpush1.bf16.msra.mxu1 %v9258_v38  ;;  %3681 = vmatprep.subr.bf16.mxu0 %v9266_v39  ;;  %v9315_v38 = vld [vmem:[%s10331_s22 + $0x1cc] ss:$16 sps:$4 sm:$0xff]  }
 0x2a9   : > { %3752 = vmatprep.subr.bf16.mxu1 %v9269_v41  ;;  %v9318_v39 = vld [vmem:[%s10331_s22 + $0x3cc] ss:$16 sps:$4 sm:$0xff]   ;;  %v9313_v41 = vld [vmem:[%s10331_s22 + $0x1c8] ss:$16 sps:$4 sm:$0xff]  }
 0x2aa   : > { %3578 = vmatmul.mubr.bf16.gmra.mxu0 %v10690_v40 }
 0x2ab   : > { %3649 = vmatmul.mubr.bf16.gmra.mxu1 %v10697_v45  ;;  %3682 = vmatpush1.bf16.msra.mxu0 %v9264_v43  ;;  %v9316_v43 = vld [vmem:[%s10331_s22 + $0x3c8] ss:$16 sps:$4 sm:$0xff]  }
 0x2ac   : > { %3753 = vmatpush1.bf16.msra.mxu1 %v9267_v44  ;;  %3683 = vmatprep.subr.bf16.mxu0 %v9272_v1  ;;  %v9319_v44 = vld [vmem:[%s10331_s22 + $0x1a8] ss:$16 sps:$4 sm:$0xff]   ;;  %v9330_v1 = vld [vmem:[%s10331_s22 + $0x38c] ss:$16 sps:$4 sm:$0xff]  }
 0x2ad   : > { %3754 = vmatprep.subr.bf16.mxu1 %v9275_v46  ;;  %3587 = vmatprep.mubr.bf16.mxu0 %v10701_v47  ;;  %v9325_v46 = vld [vmem:[%s10331_s22 + $0x188] ss:$16 sps:$4 sm:$0xff]  }
 0x2ae   : > { %3658 = vmatprep.mubr.bf16.mxu1 %v10703_v48 }
 0x2af   : > { %3684 = vmatpush1.bf16.msra.mxu0 %v9270_v49  ;;  %v9328_v49 = vld [vmem:[%s10331_s22 + $0x388] ss:$16 sps:$4 sm:$0xff]  }
 0x2b0   : > { %3755 = vmatpush1.bf16.msra.mxu1 %v9273_v51  ;;  %3685 = vmatprep.subr.bf16.mxu0 %v9281_v52  ;;  %v9333_v51 = vld [vmem:[%s10331_s22 + $0x16c] ss:$16 sps:$4 sm:$0xff]  }
 0x2b1   : > { %3756 = vmatprep.subr.bf16.mxu1 %v9284_v14  ;;  %v9336_v52 = vld [vmem:[%s10331_s22 + $0x36c] ss:$16 sps:$4 sm:$0xff]   ;;  %v9331_v14 = vld [vmem:[%s10331_s22 + $0x168] ss:$16 sps:$4 sm:$0xff]  }
 0x2b2   : > { %3588 = vmatmul.mubr.bf16.gmra.mxu0 %v10710_v53 }
 0x2b3   : > { %3659 = vmatmul.mubr.bf16.gmra.mxu1 %v10717_v56  ;;  %3686 = vmatpush1.bf16.msra.mxu0 %v9279_v54  ;;  %v9334_v54 = vld [vmem:[%s10331_s22 + $0x368] ss:$16 sps:$4 sm:$0xff]  }
 0x2b4   : > { %3757 = vmatpush1.bf16.msra.mxu1 %v9282_v55  ;;  %3687 = vmatprep.subr.bf16.mxu0 %v9287_v60  ;;  %v9339_v55 = vld [vmem:[%s10331_s22 + $0x14c] ss:$16 sps:$4 sm:$0xff]   ;;  %v9340_v60 = vld [vmem:[%s10331_s22 + $0x348] ss:$16 sps:$4 sm:$0xff]  }
 0x2b5   : > { %3758 = vmatprep.subr.bf16.mxu1 %v9290_v63  ;;  %3597 = vmatprep.mubr.bf16.mxu0 %v10721_v7  ;;  %v9345_v63 = vld [vmem:[%s10331_s22 + $0x12c] ss:$16 sps:$4 sm:$0xff]  }
 0x2b6   : > { %3668 = vmatprep.mubr.bf16.mxu1 %v10723_v0 }
 0x2b7   : > { %3688 = vmatpush1.bf16.msra.mxu0 %v9285_v3  ;;  %v9348_v3 = vld [vmem:[%s10331_s22 + $0x32c] ss:$16 sps:$4 sm:$0xff]  }
 0x2b8   : > { %3759 = vmatpush1.bf16.msra.mxu1 %v9288_v4  ;;  %3689 = vmatprep.subr.bf16.mxu0 %v9295_v5  ;;  %v9343_v4 = vld [vmem:[%s10331_s22 + $0x128] ss:$16 sps:$4 sm:$0xff]  }
 0x2b9   : > { %3760 = vmatprep.subr.bf16.mxu1 %v9298_v6  ;;  %v9346_v5 = vld [vmem:[%s10331_s22 + $0x328] ss:$16 sps:$4 sm:$0xff]   ;;  %v9351_v6 = vld [vmem:[%s10331_s22 + $0x10c] ss:$16 sps:$4 sm:$0xff]  }
 0x2ba   : > { %3598 = vmatmul.mubr.bf16.gmra.mxu0 %v10733_v9 }
 0x2bb   : > { %3669 = vmatmul.mubr.bf16.gmra.mxu1 %v10737_v13  ;;  %3690 = vmatpush1.bf16.msra.mxu0 %v9293_v11  ;;  %v9354_v11 = vld [vmem:[%s10331_s22 + $0x30c] ss:$16 sps:$4 sm:$0xff]  }
 0x2bc   : > { %3761 = vmatpush1.bf16.msra.mxu1 %v9296_v12  ;;  %3691 = vmatprep.subr.bf16.mxu0 %v9303_v22  ;;  %v9349_v12 = vld [vmem:[%s10331_s22 + $0x108] ss:$16 sps:$4 sm:$0xff]  }
 0x2bd   : > { %3762 = vmatprep.subr.bf16.mxu1 %v9306_v23  ;;  %3709 = vmatprep.mubr.bf16.mxu0 %v10540_v34  ;;  %v9321_v34 = vld [vmem:[%s10331_s22 + $0x1ac] ss:$16 sps:$4 sm:$0xff]   ;;  %v9352_v22 = vld [vmem:[%s10331_s22 + $0x308] ss:$16 sps:$4 sm:$0xff]  }
 0x2be   : > { %3780 = vmatprep.mubr.bf16.mxu1 %v10542_v35  ;;  %v9324_v35 = vld [vmem:[%s10331_s22 + $0x3ac] ss:$16 sps:$4 sm:$0xff]  }
 0x2bf   : > { %3692 = vmatpush1.bf16.msra.mxu0 %v9301_v24  ;;  %v9357_v23 = vld [vmem:[%s10331_s22 + $0x4ec] ss:$16 sps:$4 sm:$0xff]  }
 0x2c0   : > { %3763 = vmatpush1.bf16.msra.mxu1 %v9304_v25  ;;  %3693 = vmatprep.subr.bf16.mxu0 %v9309_v26  ;;  %v9360_v24 = vld [vmem:[%s10331_s22 + $0x6ec] ss:$16 sps:$4 sm:$0xff]   ;;  %v9355_v25 = vld [vmem:[%s10331_s22 + $0x4e8] ss:$16 sps:$4 sm:$0xff]  }
 0x2c1   : > { %3764 = vmatprep.subr.bf16.mxu1 %v9312_v27  ;;  %v9358_v26 = vld [vmem:[%s10331_s22 + $0x6e8] ss:$16 sps:$4 sm:$0xff]   ;;  %v9363_v27 = vld [vmem:[%s10331_s22 + $0x4cc] ss:$16 sps:$4 sm:$0xff]  }
 0x2c3   : > { %3694 = vmatpush2.bf16.msra.mxu0 %v9307_v32  ;;  %v9366_v32 = vld [vmem:[%s10331_s22 + $0x6cc] ss:$16 sps:$4 sm:$0xff]  }
 0x2c4   : > { %3765 = vmatpush2.bf16.msra.mxu1 %v9310_v37  ;;  %3695 = vmatprep.subr.bf16.mxu0 %v9315_v38  ;;  %v9451_v37 = vld [vmem:[#allocation2] ss:$104 sps:$4 sm:$0xff]  }
 0x2c5   : > { %3766 = vmatprep.subr.bf16.mxu1 %v9318_v39  ;;  %v9361_v38 = vld [vmem:[%s10331_s22 + $0x4c8] ss:$16 sps:$4 sm:$0xff]  }
 0x2c6   : > { %v9364_v39 = vld [vmem:[%s10331_s22 + $0x6c8] ss:$16 sps:$4 sm:$0xff]  }
 0x2c7   : > { %3696 = vmatpush2.bf16.msra.mxu0 %v9313_v41  ;;  %v9369_v41 = vld [vmem:[%s10331_s22 + $0x4ac] ss:$16 sps:$4 sm:$0xff]  }
 0x2c8   : > { %3767 = vmatpush2.bf16.msra.mxu1 %v9316_v43  ;;  %3697 = vmatprep.subr.bf16.mxu0 %v9321_v34  ;;  %v9372_v43 = vld [vmem:[%s10331_s22 + $0x6ac] ss:$16 sps:$4 sm:$0xff]   ;;  %v9370_v34 = vld [vmem:[%s10331_s22 + $0x6a8] ss:$16 sps:$4 sm:$0xff]  }
 0x2c9   : > { %3768 = vmatprep.subr.bf16.mxu1 %v9324_v35  ;;  %v9375_v35 = vld [vmem:[%s10331_s22 + $0x48c] ss:$16 sps:$4 sm:$0xff]  }
 0x2cb   : > { %3698 = vmatpush2.bf16.msra.mxu0 %v9319_v44  ;;  %v9378_v44 = vld [vmem:[%s10331_s22 + $0x68c] ss:$16 sps:$4 sm:$0xff]  }
 0x2cc   : > { %3769 = vmatpush2.bf16.msra.mxu1 %v9322_v61  ;;  %3699 = vmatprep.subr.bf16.mxu0 %v9327_v18  ;;  %v9381_v61 = vld [vmem:[%s10331_s22 + $0x46c] ss:$16 sps:$4 sm:$0xff]  }
 0x2cd   : > { %3770 = vmatprep.subr.bf16.mxu1 %v9330_v1  ;;  %v9384_v18 = vld [vmem:[%s10331_s22 + $0x66c] ss:$16 sps:$4 sm:$0xff]  }
 0x2ce   : > { %v9387_v1 = vld [vmem:[%s10331_s22 + $0x44c] ss:$16 sps:$4 sm:$0xff]  }
 0x2cf   : > { %3700 = vmatpush2.bf16.msra.mxu0 %v9325_v46  ;;  %v9390_v46 = vld [vmem:[%s10331_s22 + $0x64c] ss:$16 sps:$4 sm:$0xff]  }
 0x2d0   : > { %3771 = vmatpush2.bf16.msra.mxu1 %v9328_v49  ;;  %3701 = vmatprep.subr.bf16.mxu0 %v9333_v51  ;;  %v9393_v49 = vld [vmem:[%s10331_s22 + $0x42c] ss:$16 sps:$4 sm:$0xff]  }
 0x2d1   : > { %3772 = vmatprep.subr.bf16.mxu1 %v9336_v52  ;;  %v9396_v51 = vld [vmem:[%s10331_s22 + $0x62c] ss:$16 sps:$4 sm:$0xff]  }
 0x2d2   : > { %v9399_v52 = vld [vmem:[%s10331_s22 + $0x40c] ss:$16 sps:$4 sm:$0xff]  }
 0x2d3   : > { %3702 = vmatpush2.bf16.msra.mxu0 %v9331_v14  ;;  %v9402_v14 = vld [vmem:[%s10331_s22 + $0x60c] ss:$16 sps:$4 sm:$0xff]  }
 0x2d4   : > { %3773 = vmatpush2.bf16.msra.mxu1 %v9334_v54  ;;  %3703 = vmatprep.subr.bf16.mxu0 %v9339_v55  ;;  %v9405_v54 = vld [vmem:[%s10331_s22 + $0x5ec] ss:$16 sps:$4 sm:$0xff]  }
 0x2d5   : > { %3774 = vmatprep.subr.bf16.mxu1 %v9342_v57  ;;  %v9408_v55 = vld [vmem:[%s10331_s22 + $0x7ec] ss:$16 sps:$4 sm:$0xff]  }
 0x2d6   : > { %v9411_v57 = vld [vmem:[%s10331_s22 + $0x5cc] ss:$16 sps:$4 sm:$0xff]  }
 0x2d7   : > { %3704 = vmatpush2.bf16.msra.mxu0 %v9337_v58  ;;  %v9414_v58 = vld [vmem:[%s10331_s22 + $0x7cc] ss:$16 sps:$4 sm:$0xff]  }
 0x2d8   : > { %3775 = vmatpush2.bf16.msra.mxu1 %v9340_v60  ;;  %3705 = vmatprep.subr.bf16.mxu0 %v9345_v63  ;;  %v9409_v60 = vld [vmem:[%s10331_s22 + $0x5c8] ss:$16 sps:$4 sm:$0xff]   ;;  %v9420_v63 = vld [vmem:[%s10331_s22 + $0x7ac] ss:$16 sps:$4 sm:$0xff]  }
 0x2d9   : > { %3776 = vmatprep.subr.bf16.mxu1 %v9348_v3  ;;  %v9415_v3 = vld [vmem:[%s10331_s22 + $0x5a8] ss:$16 sps:$4 sm:$0xff]  }
 0x2db   : > { %3706 = vmatpush2.bf16.msra.mxu0 %v9343_v4  ;;  %v9418_v4 = vld [vmem:[%s10331_s22 + $0x7a8] ss:$16 sps:$4 sm:$0xff]  }
 0x2dc   : > { %3777 = vmatpush2.bf16.msra.mxu1 %v9346_v5  ;;  %3707 = vmatprep.subr.bf16.mxu0 %v9351_v6  ;;  %v9423_v5 = vld [vmem:[%s10331_s22 + $0x58c] ss:$16 sps:$4 sm:$0xff]  }
 0x2dd   : > { %3778 = vmatprep.subr.bf16.mxu1 %v9354_v11  ;;  %v9426_v6 = vld [vmem:[%s10331_s22 + $0x78c] ss:$16 sps:$4 sm:$0xff]   ;;  %v9421_v11 = vld [vmem:[%s10331_s22 + $0x588] ss:$16 sps:$4 sm:$0xff]  }
 0x2df   : > { %3708 = vmatpush2.bf16.msra.mxu0 %v9349_v12  ;;  %v9424_v12 = vld [vmem:[%s10331_s22 + $0x788] ss:$16 sps:$4 sm:$0xff]  }
 0x2e0   : > { %3779 = vmatpush2.bf16.msra.mxu1 %v9352_v22  ;;  %3819 = vmatprep.subr.bf16.mxu0 %v9357_v23  ;;  %v9429_v22 = vld [vmem:[%s10331_s22 + $0x56c] ss:$16 sps:$4 sm:$0xff]  }
 0x2e1   : > { %3890 = vmatprep.subr.bf16.mxu1 %v9360_v24  ;;  %v9432_v23 = vld [vmem:[%s10331_s22 + $0x76c] ss:$16 sps:$4 sm:$0xff]   ;;  %v9427_v24 = vld [vmem:[%s10331_s22 + $0x568] ss:$16 sps:$4 sm:$0xff]  }
 0x2e2   : > { %3710 = vmatmul.mubr.bf16.vlgmr.msra.gmra.mxu0 %v10564_v50  ;;  %v9367_v50 = vld [vmem:[%s10331_s22 + $0x4a8] ss:$16 sps:$4 sm:$0xff]  }
 0x2e3   : > { %3781 = vmatmul.mubr.bf16.vlgmr.msra.gmra.mxu1 %v9451_v37  ;;  %3820 = vmatpush1.bf16.msra.mxu0 %v9355_v25  ;;  %v9430_v25 = vld [vmem:[%s10331_s22 + $0x768] ss:$16 sps:$4 sm:$0xff]  }
 0x2e4   : > { %3891 = vmatpush1.bf16.msra.mxu1 %v9358_v26  ;;  %3821 = vmatprep.subr.bf16.mxu0 %v9363_v27  ;;  %v9435_v26 = vld [vmem:[%s10331_s22 + $0x54c] ss:$16 sps:$4 sm:$0xff]   ;;  %v9436_v37 = vld [vmem:[%s10331_s22 + $0x748] ss:$16 sps:$4 sm:$0xff]  }
 0x2e5   : > { %3892 = vmatprep.subr.bf16.mxu1 %v9366_v32  ;;  %3719 = vmatprep.mubr.bf16.mxu0 %v10575_v59  ;;  %v9373_v59 = vld [vmem:[%s10331_s22 + $0x488] ss:$16 sps:$4 sm:$0xff]   ;;  %v9438_v27 = vld [vmem:[%s10331_s22 + $0x74c] ss:$16 sps:$4 sm:$0xff]  }
 0x2e6   : > { %3790 = vmatprep.mubr.bf16.mxu1 %v10578_v16  ;;  %v9376_v16 = vld [vmem:[%s10331_s22 + $0x688] ss:$16 sps:$4 sm:$0xff]  }
 0x2e7   : > { %3822 = vmatpush1.bf16.msra.mxu0 %v9361_v38  ;;  %v9433_v32 = vld [vmem:[%s10331_s22 + $0x548] ss:$16 sps:$4 sm:$0xff]   ;;  %v1945_v38 = vlaneseq }
 0x2e8   : > { %3893 = vmatpush1.bf16.msra.mxu1 %v9364_v39  ;;  %3823 = vmatprep.subr.bf16.mxu0 %v9369_v41  ;;  %v9441_v39 = vld [vmem:[%s10331_s22 + $0x52c] ss:$16 sps:$4 sm:$0xff]  }
 0x2e9   : > { %3894 = vmatprep.subr.bf16.mxu1 %v9372_v43  ;;  %v9444_v41 = vld [vmem:[%s10331_s22 + $0x72c] ss:$16 sps:$4 sm:$0xff]   ;;  %v9439_v43 = vld [vmem:[%s10331_s22 + $0x528] ss:$16 sps:$4 sm:$0xff]  }
 0x2ea   : > { %3720 = vmatmul.mubr.bf16.gmra.mxu0 %v10581_v62  ;;  %v9379_v62 = vld [vmem:[%s10331_s22 + $0x468] ss:$16 sps:$4 sm:$0xff]  }
 0x2eb   : > { %3791 = vmatmul.mubr.bf16.gmra.mxu1 %v10586_v2  ;;  %3824 = vmatpush1.bf16.msra.mxu0 %v9367_v50  ;;  %v9382_v2 = vld [vmem:[%s10331_s22 + $0x668] ss:$16 sps:$4 sm:$0xff]  }
 0x2ec   : > { %3895 = vmatpush1.bf16.msra.mxu1 %v9370_v34  ;;  %3825 = vmatprep.subr.bf16.mxu0 %v9375_v35  ;;  %v9442_v50 = vld [vmem:[%s10331_s22 + $0x728] ss:$16 sps:$4 sm:$0xff]   ;;  %v10854_v34 = vshrl.u32 %v1945_v38, 7  ;;  %v9447_v35 = vld [vmem:[%s10331_s22 + $0x50c] ss:$16 sps:$4 sm:$0xff]  }
 0x2ed   : > { %3896 = vmatprep.subr.bf16.mxu1 %v9378_v44  ;;  %3729 = vmatprep.mubr.bf16.mxu0 %v10595_v8  ;;  %v9385_v8 = vld [vmem:[%s10331_s22 + $0x448] ss:$16 sps:$4 sm:$0xff]   ;;  %v9450_v44 = vld [vmem:[%s10331_s22 + $0x70c] ss:$16 sps:$4 sm:$0xff]  }
 0x2ee   : > { %3800 = vmatprep.mubr.bf16.mxu1 %v10602_v10  ;;  %v9388_v10 = vld [vmem:[%s10331_s22 + $0x648] ss:$16 sps:$4 sm:$0xff]  }
 0x2ef   : > { %3826 = vmatpush1.bf16.msra.mxu0 %v9373_v59  ;;  %v4117_v59 = vld [vmem:[%s10340_s2 + $0x1c0] sm:$0xff] }
 0x2f0   : > { %3897 = vmatpush1.bf16.msra.mxu1 %v9376_v16  ;;  %3827 = vmatprep.subr.bf16.mxu0 %v9381_v61  ;;  %v4121_v16 = vld [vmem:[%s10340_s2 + $0x1e0] sm:$0xff] }
 0x2f1   : > { %3898 = vmatprep.subr.bf16.mxu1 %v9384_v18  ;;  %v9445_v61 = vld [vmem:[%s10331_s22 + $0x508] ss:$16 sps:$4 sm:$0xff]  }
 0x2f2   : > { %3730 = vmatmul.mubr.bf16.gmra.mxu0 %v10600_v17  ;;  %v9391_v17 = vld [vmem:[%s10331_s22 + $0x428] ss:$16 sps:$4 sm:$0xff]  }
 0x2f3   : > { %3801 = vmatmul.mubr.bf16.gmra.mxu1 %v10604_v19  ;;  %3828 = vmatpush1.bf16.msra.mxu0 %v9379_v62  ;;  %v9394_v19 = vld [vmem:[%s10331_s22 + $0x628] ss:$16 sps:$4 sm:$0xff]   ;;  %v10863_v62 = vsub.s32 0, %v10854_v34 }
 0x2f4   : > { %3899 = vmatpush1.bf16.msra.mxu1 %v9382_v2  ;;  %3829 = vmatprep.subr.bf16.mxu0 %v9387_v1  ;;  %v9448_v18 = vld [vmem:[%s10331_s22 + $0x708] ss:$16 sps:$4 sm:$0xff]   ;;  %v10867_v2 = vld [vmem:[%s517_s19] sm:$0xf]  ;;  %v8480_v1 = vcombine.high %v4117_v59, %v4121_v16 }
 0x2f5   : > { %3900 = vmatprep.subr.bf16.mxu1 %v9390_v46  ;;  %3739 = vmatprep.mubr.bf16.mxu0 %v10615_v28  ;;  %v9397_v28 = vld [vmem:[%s10331_s22 + $0x408] ss:$16 sps:$4 sm:$0xff]   ;;  %v10870_v46 = vsub.s32 1, %v10854_v34 }
 0x2f6   : > { %3810 = vmatprep.mubr.bf16.mxu1 %v10617_v29  ;;  %v9400_v29 = vld [vmem:[%s10331_s22 + $0x608] ss:$16 sps:$4 sm:$0xff]  }
 0x2f7   : > { %3830 = vmatpush1.bf16.msra.mxu0 %v9385_v8  ;;  %v4109_v8 = vld [vmem:[%s10340_s2 + $0x180] sm:$0xff] }
 0x2f8   : > { %3901 = vmatpush1.bf16.msra.mxu1 %v9388_v10  ;;  %3831 = vmatprep.subr.bf16.mxu0 %v9393_v49  ;;  %v4113_v10 = vld [vmem:[%s10340_s2 + $0x1a0] sm:$0xff]  ;;  %v10876_v49 = vrot.slane %v10867_v2, %v10863_v62 }
 0x2f9   : > { %3902 = vmatprep.subr.bf16.mxu1 %v9396_v51  ;;  %v8479_v51 = vcombine.low %v4117_v59, %v4121_v16  ;;  %v4245_v38 = vld [vmem:[%s10340_s2 + $0x5c0] sm:$0xff] }
 0x2fa   : > { %3740 = vmatmul.mubr.bf16.gmra.mxu0 %v10620_v30  ;;  %v9403_v30 = vld [vmem:[%s10331_s22 + $0x5e8] ss:$16 sps:$4 sm:$0xff]  }
 0x2fb   : > { %3811 = vmatmul.mubr.bf16.gmra.mxu1 %v10623_v31  ;;  %3832 = vmatpush1.bf16.msra.mxu0 %v9391_v17  ;;  %v9406_v31 = vld [vmem:[%s10331_s22 + $0x7e8] ss:$16 sps:$4 sm:$0xff]   ;;  %v10880_v17 = vrot.slane %v10867_v2, %v10870_v46 }
 0x2fc   : > { %3903 = vmatpush1.bf16.msra.mxu1 %v9394_v19  ;;  %3833 = vmatprep.subr.bf16.mxu0 %v9399_v52  ;;  %v8472_v19 = vcombine.high %v4109_v8, %v4113_v10  ;;  %v4069_v59 = vld [vmem:[%s10340_s2 + $0x40] sm:$0xff] }
 0x2fd   : > { %3904 = vmatprep.subr.bf16.mxu1 %v9402_v14  ;;  %3851 = vmatprep.mubr.bf16.mxu0 %v10635_v15  ;;  %v9412_v15 = vld [vmem:[%s10331_s22 + $0x7c8] ss:$16 sps:$4 sm:$0xff]  }
 0x2fe   : > { %3922 = vmatprep.mubr.bf16.mxu1 %v10638_v42  ;;  %v9417_v42 = vld [vmem:[%s10331_s22 + $0x5ac] ss:$16 sps:$4 sm:$0xff]  }
 0x2ff   : > { %3834 = vmatpush1.bf16.msra.mxu0 %v9397_v28  ;;  %v4101_v28 = vld [vmem:[%s10340_s2 + $0x140] sm:$0xff] }
 0x300   : > { %3905 = vmatpush1.bf16.msra.mxu1 %v9400_v29  ;;  %3835 = vmatprep.subr.bf16.mxu0 %v9405_v54  ;;  %v4105_v29 = vld [vmem:[%s10340_s2 + $0x160] sm:$0xff] }
 0x301   : > { %3906 = vmatprep.subr.bf16.mxu1 %v9408_v55  ;;  %v4073_v16 = vld [vmem:[%s10340_s2 + $0x60] sm:$0xff] }
 0x303   : > { %3836 = vmatpush2.bf16.msra.mxu0 %v9403_v30 }
 0x304   : > { %3907 = vmatpush2.bf16.msra.mxu1 %v9406_v31  ;;  %3837 = vmatprep.subr.bf16.mxu0 %v9411_v57  ;;  %v8471_v31 = vcombine.low %v4109_v8, %v4113_v10  ;;  %v4237_v10 = vld [vmem:[%s10340_s2 + $0x580] sm:$0xff] }
 0x305   : > { %3908 = vmatprep.subr.bf16.mxu1 %v9414_v58 }
 0x307   : > { %3838 = vmatpush2.bf16.msra.mxu0 %v9409_v60 }
 0x308   : > { %3909 = vmatpush2.bf16.msra.mxu1 %v9412_v15  ;;  %3839 = vmatprep.subr.bf16.mxu0 %v9417_v42  ;;  %v4093_v15 = vld [vmem:[%s10340_s2 + $0x100] sm:$0xff] }
 0x309   : > { %3910 = vmatprep.subr.bf16.mxu1 %v9420_v63 }
 0x30b   : > { %3840 = vmatpush2.bf16.msra.mxu0 %v9415_v3  ;;  %v8463_v3 = vcombine.low %v4101_v28, %v4105_v29 }
 0x30c   : > { %3911 = vmatpush2.bf16.msra.mxu1 %v9418_v4  ;;  %3841 = vmatprep.subr.bf16.mxu0 %v9423_v5  ;;  %v4085_v5 = vld [vmem:[%s10340_s2 + $0xc0] sm:$0xff] }
 0x30d   : > { %3912 = vmatprep.subr.bf16.mxu1 %v9426_v6  ;;  %v4089_v6 = vld [vmem:[%s10340_s2 + $0xe0] sm:$0xff] }
 0x30f   : > { %3842 = vmatpush2.bf16.msra.mxu0 %v9421_v11 }
 0x310   : > { %3913 = vmatpush2.bf16.msra.mxu1 %v9424_v12  ;;  %3843 = vmatprep.subr.bf16.mxu0 %v9429_v22 }
 0x311   : > { %3914 = vmatprep.subr.bf16.mxu1 %v9432_v23 }
 0x313   : > { %3844 = vmatpush2.bf16.msra.mxu0 %v9427_v24 }
 0x314   : > { %3915 = vmatpush2.bf16.msra.mxu1 %v9430_v25  ;;  %3845 = vmatprep.subr.bf16.mxu0 %v9435_v26 }
 0x315   : > { %3916 = vmatprep.subr.bf16.mxu1 %v9438_v27  ;;  %v4077_v27 = vld [vmem:[%s10340_s2 + $0x80] sm:$0xff] }
 0x317   : > { %3846 = vmatpush2.bf16.msra.mxu0 %v9433_v32 }
 0x318   : > { %3917 = vmatpush2.bf16.msra.mxu1 %v9436_v37  ;;  %3847 = vmatprep.subr.bf16.mxu0 %v9441_v39  ;;  %v4249_v39 = vld [vmem:[%s10340_s2 + $0x5e0] sm:$0xff] }
 0x319   : > { %3918 = vmatprep.subr.bf16.mxu1 %v9444_v41  ;;  %v8447_v41 = vcombine.low %v4085_v5, %v4089_v6 }
 0x31b   : > { %3848 = vmatpush2.bf16.msra.mxu0 %v9439_v43 }
 0x31c   : > { %3919 = vmatpush2.bf16.msra.mxu1 %v9442_v50  ;;  %3849 = vmatprep.subr.bf16.mxu0 %v9447_v35  ;;  %v8608_v35 = vcombine.high %v4245_v38, %v4249_v39 }
 0x31d   : > { %3920 = vmatprep.subr.bf16.mxu1 %v9450_v44 }
 0x31f   : > { %3850 = vmatpush2.bf16.msra.mxu0 %v9445_v61  ;;  %v8607_v61 = vcombine.low %v4245_v38, %v4249_v39 }
 0x320   : > { %3921 = vmatpush2.bf16.msra.mxu1 %v9448_v18  ;;  %5597 = vmatprep.subr.bf16.mxu0 %v8480_v1 }
 0x321   : > { %5668 = vmatprep.subr.bf16.mxu1 %v8608_v35  ;;  %v4177_v35 = vld [vmem:[%s10340_s2 + $0x3a0] sm:$0xff] }
 0x322   : > { %v3427_v52 = vpop.f32.mrf.mxu0  ;;  %3852 = vmatmul.mubr.bf16.vlgmr.msra.gmra.mxu0 %v10672_v20 }
 0x323   : > { %v3498_v14 = vpop.f32.mrf.mxu1  ;;  %3923 = vmatmul.mubr.bf16.vlgmr.msra.gmra.mxu1 %v10674_v21  ;;  %v3428_v54 = vadd.f32 %v3427_v52, %v10876_v49  ;;  %3861 = vmatprep.mubr.bf16.mxu0 %v10681_v33  ;;  %v8464_v21 = vcombine.high %v4101_v28, %v4105_v29  ;;  %v4097_v33 = vld [vmem:[%s10340_s2 + $0x120] sm:$0xff]  ;;  %v8432_v52 = vcombine.high %v4069_v59, %v4073_v16 }
 0x324   : > { %3932 = vmatprep.mubr.bf16.mxu1 %v10683_v36  ;;  %v3429_v55 = vpop.f32.mrf.mxu0  ;;  %5598 = vmatpush1.bf16.msra.mxu0 %v8479_v51  ;;  %v8456_v4 = vcombine.high %v4093_v15, %v4097_v33  ;;  %v8455_v23 = vcombine.low %v4093_v15, %v4097_v33  ;;  %v4241_v51 = vld [vmem:[%s10340_s2 + $0x5a0] sm:$0xff]  ;;  %v8431_v15 = vcombine.low %v4069_v59, %v4073_v16 }
 0x325   : > { %v3500_v30 = vpop.f32.mrf.mxu1  ;;  %v10889_v57 = vadd.f32 %v3498_v14, %v3428_v54  ;;  %v3430_v20 = vadd.f32 %v3429_v55, %v10880_v17  ;;  %5599 = vmatprep.subr.bf16.mxu0 %v8472_v19  ;;  %5669 = vmatpush1.bf16.msra.mxu1 %v8607_v61  ;;  %v4061_v29 = vld [vmem:[%s10340_s2] sm:$0xff] }
 0x326   : > { %v10892_v58 = vpop.f32.mrf.mxu0  ;;  %v4065_v54 = vld [vmem:[%s10340_s2 + $0x20] sm:$0xff] }
 0x327   : > { %v10894_v60 = vpop.f32.mrf.mxu1  ;;  %v10898_v42 = vadd.f32 %v3500_v30, %v3430_v20  ;;  %v4229_v20 = vld [vmem:[%s10340_s2 + $0x540] sm:$0xff] }
 0x328   : > { %v10900_v36 = vpop.f32.mrf.mxu0  ;;  %5600 = vmatpush1.bf16.msra.mxu0 %v8471_v31  ;;  %v4213_v16 = vld [vmem:[%s10340_s2 + $0x4c0] sm:$0xff] }
 0x329   : > { %v10902_v63 = vpop.f32.mrf.mxu1  ;;  %5601 = vmatprep.subr.bf16.mxu0 %v8464_v21  ;;  %v4233_v21 = vld [vmem:[%s10340_s2 + $0x560] sm:$0xff] }
 0x32a   : > { %3862 = vmatmul.mubr.bf16.gmra.mxu0 %v10690_v40  ;;  %v3437_v11 = vpop.f32.mrf.mxu0  ;;  %v4217_v61 = vld [vmem:[%s10340_s2 + $0x4e0] sm:$0xff] }
 0x32b   : > { %3933 = vmatmul.mubr.bf16.gmra.mxu1 %v10697_v45  ;;  %v3508_v12 = vpop.f32.mrf.mxu1  ;;  %3871 = vmatprep.mubr.bf16.mxu0 %v10701_v47  ;;  %v3438_v22 = vadd.f32 %v3437_v11, %v10876_v49  ;;  %v8448_v45 = vcombine.high %v4085_v5, %v4089_v6  ;;  %v4081_v47 = vld [vmem:[%s10340_s2 + $0xa0] sm:$0xff]  ;;  %v8424_v5 = vcombine.high %v4061_v29, %v4065_v54 }
 0x32c   : > { %3942 = vmatprep.mubr.bf16.mxu1 %v10703_v48  ;;  %5602 = vmatpush1.bf16.msra.mxu0 %v8463_v3  ;;  %v3439_v24 = vpop.f32.mrf.mxu0  ;;  %v8440_v44 = vcombine.high %v4077_v27, %v4081_v47  ;;  %v8439_v19 = vcombine.low %v4077_v27, %v4081_v47  ;;  %v8591_v6 = vcombine.low %v4229_v20, %v4233_v21  ;;  %v4181_v11 = vld [vmem:[%s10340_s2 + $0x3c0] sm:$0xff] }
 0x32d   : > { %v3510_v40 = vpop.f32.mrf.mxu1  ;;  %5603 = vmatprep.subr.bf16.mxu0 %v8456_v4  ;;  %v3440_v25 = vadd.f32 %v3439_v24, %v10880_v17  ;;  %v10912_v26 = vadd.f32 %v3508_v12, %v3438_v22  ;;  %v8592_v4 = vcombine.high %v4229_v20, %v4233_v21  ;;  %v4185_v12 = vld [vmem:[%s10340_s2 + $0x3e0] sm:$0xff] }
 0x32e   : > { %v10916_v32 = vpop.f32.mrf.mxu0  ;;  %v8544_v47 = vcombine.high %v4181_v11, %v4185_v12  ;;  %v4157_v20 = vld [vmem:[%s10340_s2 + $0x300] sm:$0xff] }
 0x32f   : > { %v10918_v48 = vpop.f32.mrf.mxu1  ;;  %v10920_v37 = vadd.f32 %v3510_v40, %v3440_v25  ;;  %v4221_v40 = vld [vmem:[%s10340_s2 + $0x500] sm:$0xff]  ;;  %v8423_v25 = vcombine.low %v4061_v29, %v4065_v54 }
 0x330   : > { %5604 = vmatpush1.bf16.msra.mxu0 %v8455_v23  ;;  %v10924_v43 = vpop.f32.mrf.mxu0  ;;  %v4161_v21 = vld [vmem:[%s10340_s2 + $0x320] sm:$0xff] }
 0x331   : > { %v10926_v50 = vpop.f32.mrf.mxu1  ;;  %5605 = vmatprep.subr.bf16.mxu0 %v8448_v45  ;;  %v4225_v45 = vld [vmem:[%s10340_s2 + $0x520] sm:$0xff] }
 0x332   : > { %3872 = vmatmul.mubr.bf16.gmra.mxu0 %v10710_v53  ;;  %v3447_v18 = vpop.f32.mrf.mxu0  ;;  %v8583_v39 = vcombine.low %v4221_v40, %v4225_v45 }
 0x333   : > { %3943 = vmatmul.mubr.bf16.gmra.mxu1 %v10717_v56  ;;  %v3518_v1 = vpop.f32.mrf.mxu1  ;;  %3881 = vmatprep.mubr.bf16.mxu0 %v10721_v7  ;;  %v3448_v8 = vadd.f32 %v3447_v18, %v10876_v49  ;;  %v8600_v56 = vcombine.high %v4237_v10, %v4241_v51  ;;  %v8543_v18 = vcombine.low %v4181_v11, %v4185_v12 }
 0x334   : > { %3952 = vmatprep.mubr.bf16.mxu1 %v10723_v0  ;;  %5606 = vmatpush1.bf16.msra.mxu0 %v8447_v41  ;;  %v3449_v14 = vpop.f32.mrf.mxu0  ;;  %v8599_v0 = vcombine.low %v4237_v10, %v4241_v51  ;;  %v4173_v41 = vld [vmem:[%s10340_s2 + $0x380] sm:$0xff]  ;;  %v8576_v10 = vcombine.high %v4213_v16, %v4217_v61  ;;  %v8520_v11 = vcombine.high %v4157_v20, %v4161_v21 }
 0x335   : > { %v3520_v53 = vpop.f32.mrf.mxu1  ;;  %5607 = vmatprep.subr.bf16.mxu0 %v8440_v44  ;;  %v3450_v7 = vadd.f32 %v3449_v14, %v10880_v17  ;;  %v10938_v28 = vadd.f32 %v3518_v1, %v3448_v8  ;;  %5670 = vmatprep.subr.bf16.mxu1 %v8600_v56  ;;  %v8536_v51 = vcombine.high %v4173_v41, %v4177_v35  ;;  %v4169_v14 = vld [vmem:[%s10340_s2 + $0x360] sm:$0xff] }
 0x336   : > { %v10942_v55 = vpop.f32.mrf.mxu0  ;;  %5671 = vmatpush1.bf16.msra.mxu1 %v8599_v0  ;;  %v4209_v56 = vld [vmem:[%s10340_s2 + $0x4a0] sm:$0xff] }
 0x337   : > { %v10944_v30 = vpop.f32.mrf.mxu1  ;;  %v10946_v31 = vadd.f32 %v3520_v53, %v3450_v7  ;;  %5672 = vmatprep.subr.bf16.mxu1 %v8592_v4  ;;  %v4205_v53 = vld [vmem:[%s10340_s2 + $0x480] sm:$0xff]  ;;  %v8535_v7 = vcombine.low %v4173_v41, %v4177_v35 }
 0x338   : > { %5608 = vmatpush1.bf16.msra.mxu0 %v8439_v19  ;;  %v10950_v33 = vpop.f32.mrf.mxu0  ;;  %v8575_v19 = vcombine.low %v4213_v16, %v4217_v61  ;;  %v8568_v0 = vcombine.high %v4205_v53, %v4209_v56  ;;  %v8567_v54 = vcombine.low %v4205_v53, %v4209_v56  ;;  %v4201_v4 = vld [vmem:[%s10340_s2 + $0x460] sm:$0xff] }
 0x339   : > { %v10952_v3 = vpop.f32.mrf.mxu1  ;;  %5609 = vmatprep.subr.bf16.mxu0 %v8432_v52  ;;  %v4165_v52 = vld [vmem:[%s10340_s2 + $0x340] sm:$0xff] }
 0x33a   : > { %3882 = vmatmul.mubr.bf16.gmra.mxu0 %v10733_v9  ;;  %v3457_v22 = vpop.f32.mrf.mxu0  ;;  %5673 = vmatpush1.bf16.msra.mxu1 %v8591_v6  ;;  %v8528_v29 = vcombine.high %v4165_v52, %v4169_v14  ;;  %v4145_v41 = vld [vmem:[%s10340_s2 + $0x2a0] sm:$0xff] }
 0x33b   : > { %3953 = vmatmul.mubr.bf16.gmra.mxu1 %v10737_v13  ;;  %v3528_v23 = vpop.f32.mrf.mxu1  ;;  %v3458_v24 = vadd.f32 %v3457_v22, %v10876_v49  ;;  %v8584_v13 = vcombine.high %v4221_v40, %v4225_v45  ;;  %v4149_v22 = vld [vmem:[%s10340_s2 + $0x2c0] sm:$0xff]  ;;  %v8519_v45 = vcombine.low %v4157_v20, %v4161_v21 }
 0x33c   : > { %5610 = vmatpush1.bf16.msra.mxu0 %v8431_v15  ;;  %v10961_v27 = vpop.f32.mrf.mxu0  ;;  %v4197_v15 = vld [vmem:[%s10340_s2 + $0x440] sm:$0xff] }
 0x33d   : > { %v10963_v9 = vpop.f32.mrf.mxu1  ;;  %5611 = vmatprep.subr.bf16.mxu0 %v8424_v5  ;;  %v10965_v38 = vadd.f32 %v3528_v23, %v3458_v24  ;;  %5674 = vmatprep.subr.bf16.mxu1 %v8584_v13  ;;  %v8527_v5 = vcombine.low %v4165_v52, %v4169_v14  ;;  %v8560_v6 = vcombine.high %v4197_v15, %v4201_v4  ;;  %v4153_v23 = vld [vmem:[%s10340_s2 + $0x2e0] sm:$0xff] }
 0x33e   : > { %v3461_v44 = vpop.f32.mrf.mxu0  ;;  %5675 = vmatpush1.bf16.msra.mxu1 %v8583_v39  ;;  %v8559_v12 = vcombine.low %v4197_v15, %v4201_v4  ;;  %v4189_v24 = vld [vmem:[%s10340_s2 + $0x400] sm:$0xff]  ;;  %v8512_v13 = vcombine.high %v4149_v22, %v4153_v23  ;;  %v10996_v4 = vld [vmem:[%s10340_s2 + $0x1c8] sm:$0xff] }
 0x33f   : > { %v3532_v59 = vpop.f32.mrf.mxu1  ;;  %5676 = vmatprep.subr.bf16.mxu1 %v8576_v10  ;;  %v4193_v40 = vld [vmem:[%s10340_s2 + $0x420] sm:$0xff] }
 0x340   : > { %5612 = vmatpush1.bf16.msra.mxu0 %v8423_v25  ;;  %v3462_v1 = vpop.f32.mrf.mxu0  ;;  %v8552_v25 = vcombine.high %v4189_v24, %v4193_v40  ;;  %v4141_v39 = vld [vmem:[%s10340_s2 + $0x280] sm:$0xff]  ;;  %v8511_v59 = vcombine.low %v4149_v22, %v4153_v23 }
 0x341   : > { %v3533_v8 = vpop.f32.mrf.mxu1  ;;  %5613 = vmatprep.subr.bf16.mxu0 %v8544_v47  ;;  %v8551_v47 = vcombine.low %v4189_v24, %v4193_v40  ;;  %v4309_v35 = vld [vmem:[%s10340_s2 + $0x7c0] sm:$0xff]  ;;  %v8504_v61 = vcombine.high %v4141_v39, %v4145_v41 }
 0x342   : > { %5677 = vmatpush1.bf16.msra.mxu1 %v8575_v19  ;;  %v4313_v44 = vld [vmem:[%s10340_s2 + $0x7e0] sm:$0xff]  ;;  %v8503_v19 = vcombine.low %v4141_v39, %v4145_v41 }
 0x343   : > { %5678 = vmatprep.subr.bf16.mxu1 %v8568_v0  ;;  %v8672_v16 = vcombine.high %v4309_v35, %v4313_v44  ;;  %v4133_v1 = vld [vmem:[%s10340_s2 + $0x240] sm:$0xff] }
 0x344   : > { %5614 = vmatpush2.bf16.msra.mxu0 %v8543_v18  ;;  %v8671_v18 = vcombine.low %v4309_v35, %v4313_v44  ;;  %v4137_v8 = vld [vmem:[%s10340_s2 + $0x260] sm:$0xff]  ;;  %v3434_v35 = vadd.f32 %v10900_v36, %v10880_v17 }
 0x345   : > { %5615 = vmatprep.subr.bf16.mxu0 %v8536_v51  ;;  %v4301_v10 = vld [vmem:[%s10340_s2 + $0x780] sm:$0xff]  ;;  %v8496_v14 = vcombine.high %v4133_v1, %v4137_v8 }
 0x346   : > { %5679 = vmatpush1.bf16.msra.mxu1 %v8567_v54  ;;  %v4305_v51 = vld [vmem:[%s10340_s2 + $0x7a0] sm:$0xff]  ;;  %v8495_v54 = vcombine.low %v4133_v1, %v4137_v8  ;;  %v3505_v36 = vadd.f32 %v10902_v63, %v3434_v35  ;;  %v3444_v63 = vadd.f32 %v10924_v43, %v10880_v17  ;;  %v4114_v35 = vld [vmem:[%s10340_s2 + $0x1a8] sm:$0xff] }
 0x347   : > { %5680 = vmatprep.subr.bf16.mxu1 %v8560_v6  ;;  %v8664_v52 = vcombine.high %v4301_v10, %v4305_v51  ;;  %v8663_v53 = vcombine.low %v4301_v10, %v4305_v51  ;;  %v4125_v56 = vld [vmem:[%s10340_s2 + $0x200] sm:$0xff] }
 0x348   : > { %5616 = vmatpush2.bf16.msra.mxu0 %v8535_v7  ;;  %v4129_v7 = vld [vmem:[%s10340_s2 + $0x220] sm:$0xff] }
 0x349   : > { %5617 = vmatprep.subr.bf16.mxu0 %v8528_v29  ;;  %v4293_v0 = vld [vmem:[%s10340_s2 + $0x740] sm:$0xff]  ;;  %v8488_v21 = vcombine.high %v4125_v56, %v4129_v7 }
 0x34a   : > { %5681 = vmatpush1.bf16.msra.mxu1 %v8559_v12  ;;  %v4297_v29 = vld [vmem:[%s10340_s2 + $0x760] sm:$0xff]  ;;  %v8487_v12 = vcombine.low %v4125_v56, %v4129_v7  ;;  %v3442_v56 = vadd.f32 %v10916_v32, %v10876_v49 }
 0x34b   : > { %5682 = vmatprep.subr.bf16.mxu1 %v8552_v25  ;;  %v8656_v20 = vcombine.high %v4293_v0, %v4297_v29  ;;  %v8655_v15 = vcombine.low %v4293_v0, %v4297_v29  ;;  %v4285_v6 = vld [vmem:[%s10340_s2 + $0x700] sm:$0xff] }
 0x34c   : > { %5618 = vmatpush2.bf16.msra.mxu0 %v8527_v5  ;;  %v10999_v5 = vld [vmem:[%s10340_s2 + $0x1e8] sm:$0xff]  ;;  %v4277_v40 = vld [vmem:[%s10340_s2 + $0x6c0] sm:$0xff] }
 0x34d   : > { %5619 = vmatprep.subr.bf16.mxu0 %v8520_v11  ;;  %v4289_v11 = vld [vmem:[%s10340_s2 + $0x720] sm:$0xff]  ;;  %v8482_v23 = vcombine.high %v10996_v4, %v10999_v5 }
 0x34e   : > { %5683 = vmatpush1.bf16.msra.mxu1 %v8551_v47  ;;  %v8648_v22 = vcombine.high %v4285_v6, %v4289_v11  ;;  %v8647_v24 = vcombine.low %v4285_v6, %v4289_v11 }
 0x34f   : > { %5684 = vmatprep.subr.bf16.mxu1 %v8672_v16  ;;  %v4273_v16 = vld [vmem:[%s10340_s2 + $0x6a0] sm:$0xff] }
 0x350   : > { %5620 = vmatpush2.bf16.msra.mxu0 %v8519_v45  ;;  %v4281_v45 = vld [vmem:[%s10340_s2 + $0x6e0] sm:$0xff] }
 0x351   : > { %5621 = vmatprep.subr.bf16.mxu0 %v8512_v13  ;;  %v8640_v25 = vcombine.high %v4277_v40, %v4281_v45  ;;  %v3432_v13 = vadd.f32 %v10892_v58, %v10876_v49  ;;  %v8639_v47 = vcombine.low %v4277_v40, %v4281_v45 }
 0x352   : > { %5685 = vmatpush2.bf16.msra.mxu1 %v8671_v18 }
 0x353   : > { %5686 = vmatprep.subr.bf16.mxu1 %v8664_v52  ;;  %v3503_v58 = vadd.f32 %v10894_v60, %v3432_v13 }
 0x354   : > { %5622 = vmatpush2.bf16.msra.mxu0 %v8511_v59  ;;  %v4269_v59 = vld [vmem:[%s10340_s2 + $0x680] sm:$0xff] }
 0x355   : > { %5623 = vmatprep.subr.bf16.mxu0 %v8504_v61  ;;  %v8632_v1 = vcombine.high %v4269_v59, %v4273_v16  ;;  %v8631_v10 = vcombine.low %v4269_v59, %v4273_v16  ;;  %v8481_v59 = vcombine.low %v10996_v4, %v10999_v5  ;;  %v3515_v16 = vadd.f32 %v10926_v50, %v3444_v63 }
 0x356   : > { %5687 = vmatpush2.bf16.msra.mxu1 %v8663_v53  ;;  %v4265_v53 = vld [vmem:[%s10340_s2 + $0x660] sm:$0xff] }
 0x357   : > { %5688 = vmatprep.subr.bf16.mxu1 %v8656_v20 }
 0x358   : > { %5624 = vmatpush2.bf16.msra.mxu0 %v8503_v19 }
 0x359   : > { %5625 = vmatprep.subr.bf16.mxu0 %v8496_v14  ;;  %v4261_v14 = vld [vmem:[%s10340_s2 + $0x640] sm:$0xff] }
 0x35a   : > { %5689 = vmatpush2.bf16.msra.mxu1 %v8655_v15  ;;  %v8624_v60 = vcombine.high %v4261_v14, %v4265_v53  ;;  %v8623_v20 = vcombine.low %v4261_v14, %v4265_v53 }
 0x35b   : > { %5690 = vmatprep.subr.bf16.mxu1 %v8648_v22  ;;  %v4253_v22 = vld [vmem:[%s10340_s2 + $0x600] sm:$0xff] }
 0x35c   : > { %5626 = vmatpush2.bf16.msra.mxu0 %v8495_v54 }
 0x35d   : > { %5627 = vmatprep.subr.bf16.mxu0 %v8488_v21 }
 0x35e   : > { %5691 = vmatpush2.bf16.msra.mxu1 %v8647_v24  ;;  %v3513_v24 = vadd.f32 %v10918_v48, %v3442_v56 }
 0x35f   : > { %5692 = vmatprep.subr.bf16.mxu1 %v8640_v25 }
 0x360   : > { %5628 = vmatpush2.bf16.msra.mxu0 %v8487_v12 }
 0x361   : > { %5739 = vmatprep.subr.bf16.mxu0 %v8482_v23  ;;  %v4257_v23 = vld [vmem:[%s10340_s2 + $0x620] sm:$0xff] }
 0x362   : > { %v3569_v39 = vpop.f32.mrf.mxu0  ;;  %5693 = vmatpush2.bf16.msra.mxu1 %v8639_v47  ;;  %v8616_v25 = vcombine.high %v4253_v22, %v4257_v23  ;;  %v8615_v48 = vcombine.low %v4253_v22, %v4257_v23 }
 0x363   : > { %v3640_v41 = vpop.f32.mrf.mxu1  ;;  %v3570_v44 = vadd.f32 %v3569_v39, %v10889_v57  ;;  %5694 = vmatprep.subr.bf16.mxu1 %v8632_v1 }
 0x364   : > { %v3571_v61 = vpop.f32.mrf.mxu0 }
 0x365   : > { %v3642_v18 = vpop.f32.mrf.mxu1  ;;  %v3572_v8 = vadd.f32 %v3571_v61, %v10898_v42  ;;  %v3641_v52 = vadd.f32 %v3640_v41, %v3570_v44  ;;  %v4110_v41 = vld [vmem:[%s10340_s2 + $0x188] sm:$0xff] }
 0x366   : > { %v3573_v51 = vpop.f32.mrf.mxu0  ;;  %5695 = vmatpush2.bf16.msra.mxu1 %v8631_v10  ;;  %v8474_v5 = vcombine.high %v4110_v41, %v4114_v35  ;;  %v8473_v56 = vcombine.low %v4110_v41, %v4114_v35  ;;  %v4086_v41 = vld [vmem:[%s10340_s2 + $0xc8] sm:$0xff] }
 0x367   : > { %v3644_v19 = vpop.f32.mrf.mxu1  ;;  %v3574_v57 = vadd.f32 %v3573_v51, %v3503_v58  ;;  %v3643_v42 = vadd.f32 %v3642_v18, %v3572_v8  ;;  %5696 = vmatprep.subr.bf16.mxu1 %v8624_v60  ;;  %v3961_v6 = vmax.f32 %v3641_v52, 0.0  ;;  %v11038_v58 = vld [vmem:[%s10340_s2 + $0x5c8] sm:$0xff]  ;;  %v3452_v8 = vadd.f32 %v10942_v55, %v10876_v49 }
 0x368   : > { %v3575_v7 = vpop.f32.mrf.mxu0  ;;  %v4102_v52 = vld [vmem:[%s10340_s2 + $0x148] sm:$0xff]  ;;  %v3454_v49 = vadd.f32 %v10950_v33, %v10880_v17 }
 0x369   : > { %v3646_v0 = vpop.f32.mrf.mxu1  ;;  %v3645_v29 = vadd.f32 %v3644_v19, %v3574_v57  ;;  %v3576_v54 = vadd.f32 %v3575_v7, %v3505_v36  ;;  %v3962_v13 = vmax.f32 %v3643_v42, 0.0  ;;  %v4106_v57 = vld [vmem:[%s10340_s2 + $0x168] sm:$0xff] }
 0x36a   : > { %v3579_v21 = vpop.f32.mrf.mxu0  ;;  %5697 = vmatpush2.bf16.msra.mxu1 %v8623_v20  ;;  %v8466_v33 = vcombine.high %v4102_v52, %v4106_v57  ;;  %v8465_v23 = vcombine.low %v4102_v52, %v4106_v57  ;;  %v4090_v35 = vld [vmem:[%s10340_s2 + $0xe8] sm:$0xff] }
 0x36b   : > { %v3650_v15 = vpop.f32.mrf.mxu1  ;;  %v3965_v32 = vmax.f32 %v3645_v29, 0.0  ;;  %v3647_v11 = vadd.f32 %v3646_v0, %v3576_v54  ;;  %v3580_v12 = vadd.f32 %v3579_v21, %v10912_v26  ;;  %5698 = vmatprep.subr.bf16.mxu1 %v8616_v25  ;;  %v3523_v29 = vadd.f32 %v10944_v30, %v3452_v8 }
 0x36c   : > { %v3581_v40 = vpop.f32.mrf.mxu0  ;;  %v3460_v30 = vadd.f32 %v10961_v27, %v10880_v17 }
 0x36d   : > { %v3652_v45 = vpop.f32.mrf.mxu1  ;;  %v11027_v43 = vpack.c.bf16 %v3965_v32, %v3961_v6  ;;  %v3966_v47 = vmax.f32 %v3647_v11, 0.0  ;;  %v3582_v39 = vadd.f32 %v3581_v40, %v10920_v37  ;;  %v3651_v18 = vadd.f32 %v3650_v15, %v3580_v12  ;;  %v11041_v37 = vld [vmem:[%s10340_s2 + $0x5e8] sm:$0xff] }
 0x36e   : > { %v3583_v44 = vpop.f32.mrf.mxu0  ;;  %v8610_v19 = vcombine.high %v11038_v58, %v11041_v37  ;;  %5699 = vmatpush2.bf16.msra.mxu1 %v8615_v48  ;;  %v8609_v14 = vcombine.low %v11038_v58, %v11041_v37  ;;  %v4094_v32 = vld [vmem:[%s10340_s2 + $0x108] sm:$0xff]  ;;  %v3525_v12 = vadd.f32 %v10952_v3, %v3454_v49 }
 0x36f   : > { %v3654_v26 = vpop.f32.mrf.mxu1  ;;  %v11035_v61 = vpack.c.bf16 %v3966_v47, %v3962_v13  ;;  %v3584_v1 = vadd.f32 %v3583_v44, %v3513_v24  ;;  %v3653_v10 = vadd.f32 %v3652_v45, %v3582_v39  ;;  %v3969_v7 = vmax.f32 %v3651_v18, 0.0  ;;  %v4098_v11 = vld [vmem:[%s10340_s2 + $0x128] sm:$0xff] }
 0x370   : > { %v3585_v51 = vpop.f32.mrf.mxu0  ;;  %5810 = vmatprep.subr.bf16.mxu1 %v8610_v19  ;;  %v8458_v13 = vcombine.high %v4094_v32, %v4098_v11  ;;  %v8457_v27 = vcombine.low %v4094_v32, %v4098_v11 }
 0x371   : > { %v3656_v4 = vpop.f32.mrf.mxu1  ;;  %v3586_v50 = vadd.f32 %v3585_v51, %v3515_v16  ;;  %v3655_v36 = vadd.f32 %v3654_v26, %v3584_v1  ;;  %5629 = vmatprep.mubr.bf16.mxu0 %v11035_v61  ;;  %v3970_v63 = vmax.f32 %v3653_v10, 0.0  ;;  %v3531_v26 = vadd.f32 %v10963_v9, %v3460_v30  ;;  %v4174_v30 = vld [vmem:[%s10340_s2 + $0x388] sm:$0xff] }
 0x372   : > { %v3589_v55 = vpop.f32.mrf.mxu0  ;;  %5630 = vmatmul.mubr.bf16.vlgmr.msra.gmra.mxu0 %v11027_v43  ;;  %v8450_v10 = vcombine.high %v4086_v41, %v4090_v35 }
 0x373   : > { %v3660_v53 = vpop.f32.mrf.mxu1  ;;  %v3973_v0 = vmax.f32 %v3655_v36, 0.0  ;;  %v3590_v60 = vadd.f32 %v3589_v55, %v10938_v28  ;;  %v3657_v42 = vadd.f32 %v3656_v4, %v3586_v50  ;;  %5740 = vmatpush1.bf16.msra.mxu0 %v8481_v59  ;;  %v4078_v50 = vld [vmem:[%s10340_s2 + $0x88] sm:$0xff] }
 0x374   : > { %v3591_v54 = vpop.f32.mrf.mxu0  ;;  %5741 = vmatprep.subr.bf16.mxu0 %v8474_v5  ;;  %v4082_v36 = vld [vmem:[%s10340_s2 + $0xa8] sm:$0xff] }
 0x375   : > { %v3662_v20 = vpop.f32.mrf.mxu1  ;;  %v11057_v21 = vpack.c.bf16 %v3973_v0, %v3969_v7  ;;  %v3974_v15 = vmax.f32 %v3657_v42, 0.0  ;;  %v3592_v6 = vadd.f32 %v3591_v54, %v10946_v31  ;;  %v3661_v40 = vadd.f32 %v3660_v53, %v3590_v60  ;;  %v4070_v60 = vld [vmem:[%s10340_s2 + $0x48] sm:$0xff] }
 0x376   : > { %v3593_v22 = vpop.f32.mrf.mxu0  ;;  %v8442_v53 = vcombine.high %v4078_v50, %v4082_v36  ;;  %v4074_v42 = vld [vmem:[%s10340_s2 + $0x68] sm:$0xff]  ;;  %v8441_v54 = vcombine.low %v4078_v50, %v4082_v36 }
 0x377   : > { %v3664_v28 = vpop.f32.mrf.mxu1  ;;  %v11065_v24 = vpack.c.bf16 %v3974_v15, %v3970_v63  ;;  %v3594_v45 = vadd.f32 %v3593_v22, %v3523_v29  ;;  %5742 = vmatpush1.bf16.msra.mxu0 %v8473_v56  ;;  %v3663_v47 = vadd.f32 %v3662_v20, %v3592_v6  ;;  %v3977_v59 = vmax.f32 %v3661_v40, 0.0  ;;  %v4062_v63 = vld [vmem:[%s10340_s2 + $0x8] sm:$0xff] }
 0x378   : > { %v3595_v25 = vpop.f32.mrf.mxu0  ;;  %5743 = vmatprep.subr.bf16.mxu0 %v8466_v33  ;;  %v8434_v33 = vcombine.high %v4070_v60, %v4074_v42  ;;  %v4066_v15 = vld [vmem:[%s10340_s2 + $0x28] sm:$0xff]  ;;  %v8433_v6 = vcombine.low %v4070_v60, %v4074_v42 }
 0x379   : > { %v3666_v31 = vpop.f32.mrf.mxu1  ;;  %v3596_v39 = vadd.f32 %v3595_v25, %v3525_v12  ;;  %v3665_v3 = vadd.f32 %v3664_v28, %v3594_v45  ;;  %5639 = vmatprep.mubr.bf16.mxu0 %v11065_v24  ;;  %v3978_v51 = vmax.f32 %v3663_v47, 0.0  ;;  %v8426_v11 = vcombine.high %v4062_v63, %v4066_v15  ;;  %v4182_v12 = vld [vmem:[%s10340_s2 + $0x3c8] sm:$0xff] }
 0x37a   : > { %v3599_v44 = vpop.f32.mrf.mxu0  ;;  %5640 = vmatmul.mubr.bf16.gmra.mxu0 %v11057_v21  ;;  %v4186_v22 = vld [vmem:[%s10340_s2 + $0x3e8] sm:$0xff]  ;;  %v8425_v28 = vcombine.low %v4062_v63, %v4066_v15 }
 0x37b   : > { %v3670_v17 = vpop.f32.mrf.mxu1  ;;  %v3981_v48 = vmax.f32 %v3665_v3, 0.0  ;;  %v3667_v16 = vadd.f32 %v3666_v31, %v3596_v39  ;;  %5744 = vmatpush1.bf16.msra.mxu0 %v8465_v23  ;;  %v3600_v18 = vadd.f32 %v3599_v44, %v10965_v38  ;;  %v8449_v38 = vcombine.low %v4086_v41, %v4090_v35  ;;  %v4178_v40 = vld [vmem:[%s10340_s2 + $0x3a8] sm:$0xff] }
 0x37c   : > { %v3601_v1 = vpop.f32.mrf.mxu0  ;;  %5745 = vmatprep.subr.bf16.mxu0 %v8458_v13  ;;  %v8546_v23 = vcombine.high %v4182_v12, %v4186_v22  ;;  %v8545_v45 = vcombine.low %v4182_v12, %v4186_v22  ;;  %v8538_v25 = vcombine.high %v4174_v30, %v4178_v40  ;;  %v4166_v31 = vld [vmem:[%s10340_s2 + $0x348] sm:$0xff]  ;;  %v8537_v47 = vcombine.low %v4174_v30, %v4178_v40 }
 0x37d   : > { %v3672_v8 = vpop.f32.mrf.mxu1  ;;  %v11073_v4 = vpack.c.bf16 %v3981_v48, %v3977_v59  ;;  %v3982_v5 = vmax.f32 %v3667_v16, 0.0  ;;  %v3602_v19 = vadd.f32 %v3601_v1, %v3531_v26  ;;  %v3671_v55 = vadd.f32 %v3670_v17, %v3600_v18  ;;  %v4170_v13 = vld [vmem:[%s10340_s2 + $0x368] sm:$0xff] }
 0x37e   : > { %v3603_v9 = vpop.f32.mrf.mxu0  ;;  %v8530_v39 = vcombine.high %v4166_v31, %v4170_v13  ;;  %v4158_v3 = vld [vmem:[%s10340_s2 + $0x308] sm:$0xff]  ;;  %v8529_v35 = vcombine.low %v4166_v31, %v4170_v13  ;;  %v1955_v59 = vsub.s32 2, %v10854_v34  ;;  %v1959_v16 = vsub.s32 3, %v10854_v34  ;;  %v4115_v31 = vld [vmem:[%s10340_s2 + $0x1b0] sm:$0xff] }
 0x37f   : > { %v3674_v52 = vpop.f32.mrf.mxu1  ;;  %v11077_v57 = vpack.c.bf16 %v3982_v5, %v3978_v51  ;;  %v3673_v49 = vadd.f32 %v3672_v8, %v3602_v19  ;;  %5746 = vmatpush1.bf16.msra.mxu0 %v8457_v27  ;;  %v3985_v20 = vmax.f32 %v3671_v55, 0.0  ;;  %v4162_v41 = vld [vmem:[%s10340_s2 + $0x328] sm:$0xff] }
 0x380   : > { %5747 = vmatprep.subr.bf16.mxu0 %v8450_v10  ;;  %v3604_v56 = vpop.f32.mrf.mxu0  ;;  %v8522_v44 = vcombine.high %v4158_v3, %v4162_v41  ;;  %v4150_v17 = vld [vmem:[%s10340_s2 + $0x2c8] sm:$0xff]  ;;  %v8521_v26 = vcombine.low %v4158_v3, %v4162_v41  ;;  %v11109_v10 = vrot.slane %v10867_v2, %v1955_v59  ;;  %v11114_v5 = vrot.slane %v10867_v2, %v1959_v16 }
 0x381   : > { %v3675_v7 = vpop.f32.mrf.mxu1  ;;  %v3986_v0 = vmax.f32 %v3673_v49, 0.0  ;;  %5649 = vmatprep.mubr.bf16.mxu0 %v11077_v57  ;;  %v11088_v32 = vpack.c.bf16 %v3985_v20, %v3985_v20  ;;  %v4154_v27 = vld [vmem:[%s10340_s2 + $0x2e8] sm:$0xff] }
 0x382   : > { %5650 = vmatmul.mubr.bf16.gmra.mxu0 %v11073_v4  ;;  %v8514_v48 = vcombine.high %v4150_v17, %v4154_v27  ;;  %v4142_v18 = vld [vmem:[%s10340_s2 + $0x288] sm:$0xff]  ;;  %v8513_v8 = vcombine.low %v4150_v17, %v4154_v27 }
 0x383   : > { %v11083_v29 = vpack.c.bf16 %v3986_v0, %v3986_v0  ;;  %5748 = vmatpush1.bf16.msra.mxu0 %v8449_v38  ;;  %v4146_v1 = vld [vmem:[%s10340_s2 + $0x2a8] sm:$0xff] }
 0x384   : > { %5749 = vmatprep.subr.bf16.mxu0 %v8442_v53  ;;  %v8506_v51 = vcombine.high %v4142_v18, %v4146_v1  ;;  %v4134_v19 = vld [vmem:[%s10340_s2 + $0x248] sm:$0xff]  ;;  %v8505_v49 = vcombine.low %v4142_v18, %v4146_v1 }
 0x385   : > { %5659 = vmatprep.mubr.bf16.mxu0 %v11083_v29  ;;  %v4138_v50 = vld [vmem:[%s10340_s2 + $0x268] sm:$0xff] }
 0x386   : > { %v8498_v53 = vcombine.high %v4134_v19, %v4138_v50  ;;  %v4126_v2 = vld [vmem:[%s10340_s2 + $0x208] sm:$0xff]  ;;  %v8497_v20 = vcombine.low %v4134_v19, %v4138_v50 }
 0x387   : > { %5750 = vmatpush1.bf16.msra.mxu0 %v8441_v54  ;;  %v4130_v0 = vld [vmem:[%s10340_s2 + $0x228] sm:$0xff] }
 0x388   : > { %5751 = vmatprep.subr.bf16.mxu0 %v8434_v33  ;;  %v8490_v15 = vcombine.high %v4126_v2, %v4130_v0 }
 0x38a   : > { %5660 = vmatmul.mubr.bf16.gmra.mxu0 %v11088_v32 }
 0x38b   : > { %5752 = vmatpush1.bf16.msra.mxu0 %v8433_v6  ;;  %5771 = vmatprep.mubr.bf16.mxu0 %v11035_v61  ;;  %v4119_v6 = vld [vmem:[%s10340_s2 + $0x1d0] sm:$0xff] }
 0x38c   : > { %5753 = vmatprep.subr.bf16.mxu0 %v8426_v11  ;;  %v4123_v11 = vld [vmem:[%s10340_s2 + $0x1f0] sm:$0xff] }
 0x38d   : > { %v8484_v30 = vcombine.high %v4119_v6, %v4123_v11  ;;  %v8483_v41 = vcombine.low %v4119_v6, %v4123_v11  ;;  %v4087_v6 = vld [vmem:[%s10340_s2 + $0xd0] sm:$0xff] }
 0x38e   : > { %v4091_v11 = vld [vmem:[%s10340_s2 + $0xf0] sm:$0xff] }
 0x38f   : > { %5754 = vmatpush1.bf16.msra.mxu0 %v8425_v28  ;;  %v8489_v28 = vcombine.low %v4126_v2, %v4130_v0 }
 0x390   : > { %5755 = vmatprep.subr.bf16.mxu0 %v8546_v23 }
 0x393   : > { %5756 = vmatpush2.bf16.msra.mxu0 %v8545_v45 }
 0x394   : > { %5757 = vmatprep.subr.bf16.mxu0 %v8538_v25  ;;  %v4111_v25 = vld [vmem:[%s10340_s2 + $0x190] sm:$0xff] }
 0x397   : > { %5758 = vmatpush2.bf16.msra.mxu0 %v8537_v47 }
 0x398   : > { %5759 = vmatprep.subr.bf16.mxu0 %v8530_v39 }
 0x39b   : > { %5760 = vmatpush2.bf16.msra.mxu0 %v8529_v35 }
 0x39c   : > { %5761 = vmatprep.subr.bf16.mxu0 %v8522_v44  ;;  %v8476_v44 = vcombine.high %v4111_v25, %v4115_v31 }
 0x39f   : > { %5762 = vmatpush2.bf16.msra.mxu0 %v8521_v26  ;;  %v4103_v26 = vld [vmem:[%s10340_s2 + $0x150] sm:$0xff] }
 0x3a0   : > { %5763 = vmatprep.subr.bf16.mxu0 %v8514_v48  ;;  %v4107_v48 = vld [vmem:[%s10340_s2 + $0x170] sm:$0xff] }
 0x3a1   : > { %v8468_v19 = vcombine.high %v4103_v26, %v4107_v48 }
 0x3a2   : > { %v3711_v36 = vpop.f32.mrf.mxu0 }
 0x3a3   : > { %v3782_v9 = vpop.f32.mrf.mxu1  ;;  %v3712_v52 = vadd.f32 %v3711_v36, %v11109_v10  ;;  %5764 = vmatpush2.bf16.msra.mxu0 %v8513_v8  ;;  %v8475_v8 = vcombine.low %v4111_v25, %v4115_v31  ;;  %v4079_v25 = vld [vmem:[%s10340_s2 + $0x90] sm:$0xff] }
 0x3a4   : > { %v3713_v38 = vpop.f32.mrf.mxu0  ;;  %5765 = vmatprep.subr.bf16.mxu0 %v8506_v51  ;;  %v4083_v31 = vld [vmem:[%s10340_s2 + $0xb0] sm:$0xff] }
 0x3a5   : > { %v3784_v55 = vpop.f32.mrf.mxu1  ;;  %v11119_v56 = vadd.f32 %v3782_v9, %v3712_v52  ;;  %v3714_v7 = vadd.f32 %v3713_v38, %v11114_v5  ;;  %v4095_v9 = vld [vmem:[%s10340_s2 + $0x110] sm:$0xff] }
 0x3a6   : > { %v11124_v60 = vpop.f32.mrf.mxu0  ;;  %v4099_v52 = vld [vmem:[%s10340_s2 + $0x130] sm:$0xff] }
 0x3a7   : > { %v11126_v42 = vpop.f32.mrf.mxu1  ;;  %v11128_v54 = vadd.f32 %v3784_v55, %v3714_v7  ;;  %5766 = vmatpush2.bf16.msra.mxu0 %v8505_v49  ;;  %v8467_v7 = vcombine.low %v4103_v26, %v4107_v48  ;;  %v8460_v0 = vcombine.high %v4095_v9, %v4099_v52  ;;  %v8451_v26 = vcombine.low %v4087_v6, %v4091_v11 }
 0x3a8   : > { %v11130_v33 = vpop.f32.mrf.mxu0  ;;  %5767 = vmatprep.subr.bf16.mxu0 %v8498_v53  ;;  %v8444_v48 = vcombine.high %v4079_v25, %v4083_v31 }
 0x3a9   : > { %v11132_v63 = vpop.f32.mrf.mxu1 }
 0x3aa   : > { %v3721_v12 = vpop.f32.mrf.mxu0 }
 0x3ab   : > { %v3792_v22 = vpop.f32.mrf.mxu1  ;;  %5768 = vmatpush2.bf16.msra.mxu0 %v8497_v20  ;;  %v3722_v23 = vadd.f32 %v3721_v12, %v11109_v10 }
 0x3ac   : > { %5769 = vmatprep.subr.bf16.mxu0 %v8490_v15  ;;  %v3723_v40 = vpop.f32.mrf.mxu0 }
 0x3ad   : > { %v3794_v45 = vpop.f32.mrf.mxu1  ;;  %v3724_v13 = vadd.f32 %v3723_v40, %v11114_v5  ;;  %v11140_v47 = vadd.f32 %v3792_v22, %v3722_v23 }
 0x3ae   : > { %v11142_v39 = vpop.f32.mrf.mxu0 }
 0x3af   : > { %v11144_v3 = vpop.f32.mrf.mxu1  ;;  %5770 = vmatpush2.bf16.msra.mxu0 %v8489_v28  ;;  %v11146_v35 = vadd.f32 %v3794_v45, %v3724_v13  ;;  %v8459_v28 = vcombine.low %v4095_v9, %v4099_v52  ;;  %v4067_v9 = vld [vmem:[%s10340_s2 + $0x30] sm:$0xff] }
 0x3b0   : > { %5881 = vmatprep.subr.bf16.mxu0 %v8484_v30  ;;  %v11148_v17 = vpop.f32.mrf.mxu0  ;;  %v8452_v30 = vcombine.high %v4087_v6, %v4091_v11 }
 0x3b1   : > { %v11150_v27 = vpop.f32.mrf.mxu1 }
 0x3b2   : > { %5772 = vmatmul.mubr.bf16.vlgmr.msra.gmra.mxu0 %v11027_v43  ;;  %v3731_v18 = vpop.f32.mrf.mxu0 }
 0x3b3   : > { %v3802_v1 = vpop.f32.mrf.mxu1  ;;  %5781 = vmatprep.mubr.bf16.mxu0 %v11065_v24  ;;  %5882 = vmatpush1.bf16.msra.mxu0 %v8483_v41  ;;  %v3732_v51 = vadd.f32 %v3731_v18, %v11109_v10 }
 0x3b4   : > { %5883 = vmatprep.subr.bf16.mxu0 %v8476_v44  ;;  %v3733_v50 = vpop.f32.mrf.mxu0 }
 0x3b5   : > { %v3804_v36 = vpop.f32.mrf.mxu1  ;;  %v3734_v49 = vadd.f32 %v3733_v50, %v11114_v5  ;;  %v11160_v38 = vadd.f32 %v3802_v1, %v3732_v51  ;;  %v4075_v51 = vld [vmem:[%s10340_s2 + $0x70] sm:$0xff] }
 0x3b6   : > { %v11162_v55 = vpop.f32.mrf.mxu0 }
 0x3b7   : > { %v11164_v53 = vpop.f32.mrf.mxu1  ;;  %5884 = vmatpush1.bf16.msra.mxu0 %v8475_v8  ;;  %v11166_v2 = vadd.f32 %v3804_v36, %v3734_v49  ;;  %v4071_v8 = vld [vmem:[%s10340_s2 + $0x50] sm:$0xff] }
 0x3b8   : > { %5885 = vmatprep.subr.bf16.mxu0 %v8468_v19  ;;  %v11168_v20 = vpop.f32.mrf.mxu0  ;;  %v8443_v19 = vcombine.low %v4079_v25, %v4083_v31  ;;  %v8436_v50 = vcombine.high %v4071_v8, %v4075_v51  ;;  %v4063_v36 = vld [vmem:[%s10340_s2 + $0x10] sm:$0xff]  ;;  %v8435_v52 = vcombine.low %v4071_v8, %v4075_v51 }
 0x3b9   : > { %v11170_v15 = vpop.f32.mrf.mxu1  ;;  %v8428_v49 = vcombine.high %v4063_v36, %v4067_v9  ;;  %v8427_v6 = vcombine.low %v4063_v36, %v4067_v9  ;;  %v4171_v25 = vld [vmem:[%s10340_s2 + $0x370] sm:$0xff] }
 0x3ba   : > { %5782 = vmatmul.mubr.bf16.gmra.mxu0 %v11057_v21  ;;  %v3741_v12 = vpop.f32.mrf.mxu0  ;;  %v4155_v8 = vld [vmem:[%s10340_s2 + $0x2f0] sm:$0xff] }
 0x3bb   : > { %v3812_v22 = vpop.f32.mrf.mxu1  ;;  %5791 = vmatprep.mubr.bf16.mxu0 %v11077_v57  ;;  %5886 = vmatpush1.bf16.msra.mxu0 %v8467_v7  ;;  %v3742_v23 = vadd.f32 %v3741_v12, %v11109_v10  ;;  %v4183_v7 = vld [vmem:[%s10340_s2 + $0x3d0] sm:$0xff] }
 0x3bc   : > { %5887 = vmatprep.subr.bf16.mxu0 %v8460_v0  ;;  %v11177_v40 = vpop.f32.mrf.mxu0  ;;  %v4187_v0 = vld [vmem:[%s10340_s2 + $0x3f0] sm:$0xff] }
 0x3bd   : > { %v11179_v45 = vpop.f32.mrf.mxu1  ;;  %v11183_v13 = vadd.f32 %v3812_v22, %v3742_v23  ;;  %v8548_v11 = vcombine.high %v4183_v7, %v4187_v0  ;;  %v4175_v12 = vld [vmem:[%s10340_s2 + $0x390] sm:$0xff] }
 0x3be   : > { %v3745_v41 = vpop.f32.mrf.mxu0  ;;  %v4179_v22 = vld [vmem:[%s10340_s2 + $0x3b0] sm:$0xff] }
 0x3bf   : > { %v3816_v44 = vpop.f32.mrf.mxu1  ;;  %5888 = vmatpush1.bf16.msra.mxu0 %v8459_v28  ;;  %v8547_v28 = vcombine.low %v4183_v7, %v4187_v0  ;;  %v8540_v23 = vcombine.high %v4175_v12, %v4179_v22  ;;  %v8539_v31 = vcombine.low %v4175_v12, %v4179_v22  ;;  %v4147_v36 = vld [vmem:[%s10340_s2 + $0x2b0] sm:$0xff]  ;;  %v3718_v12 = vadd.f32 %v11130_v33, %v11114_v5 }
 0x3c0   : > { %5889 = vmatprep.subr.bf16.mxu0 %v8452_v30  ;;  %v3746_v18 = vpop.f32.mrf.mxu0  ;;  %v4167_v30 = vld [vmem:[%s10340_s2 + $0x350] sm:$0xff] }
 0x3c1   : > { %v3817_v1 = vpop.f32.mrf.mxu1  ;;  %v8532_v41 = vcombine.high %v4167_v30, %v4171_v25  ;;  %v4159_v44 = vld [vmem:[%s10340_s2 + $0x310] sm:$0xff]  ;;  %v3789_v33 = vadd.f32 %v11132_v63, %v3718_v12 }
 0x3c2   : > { %5792 = vmatmul.mubr.bf16.gmra.mxu0 %v11073_v4  ;;  %v4151_v1 = vld [vmem:[%s10340_s2 + $0x2d0] sm:$0xff] }
 0x3c3   : > { %5801 = vmatprep.mubr.bf16.mxu0 %v11083_v29  ;;  %5890 = vmatpush1.bf16.msra.mxu0 %v8451_v26  ;;  %v4163_v26 = vld [vmem:[%s10340_s2 + $0x330] sm:$0xff]  ;;  %v8515_v9 = vcombine.low %v4151_v1, %v4155_v8 }
 0x3c4   : > { %5891 = vmatprep.subr.bf16.mxu0 %v8444_v48  ;;  %v8531_v48 = vcombine.low %v4167_v30, %v4171_v25  ;;  %v8524_v18 = vcombine.high %v4159_v44, %v4163_v26  ;;  %v8523_v51 = vcombine.low %v4159_v44, %v4163_v26  ;;  %v4135_v7 = vld [vmem:[%s10340_s2 + $0x250] sm:$0xff] }
 0x3c5   : > { %v4139_v0 = vld [vmem:[%s10340_s2 + $0x270] sm:$0xff] }
 0x3c6   : > { %v8500_v25 = vcombine.high %v4135_v7, %v4139_v0  ;;  %v4131_v44 = vld [vmem:[%s10340_s2 + $0x230] sm:$0xff] }
 0x3c7   : > { %5892 = vmatpush1.bf16.msra.mxu0 %v8443_v19  ;;  %v8516_v19 = vcombine.high %v4151_v1, %v4155_v8  ;;  %v8499_v1 = vcombine.low %v4135_v7, %v4139_v0  ;;  %v3726_v8 = vadd.f32 %v11142_v39, %v11109_v10 }
 0x3c8   : > { %5893 = vmatprep.subr.bf16.mxu0 %v8436_v50  ;;  %v4143_v50 = vld [vmem:[%s10340_s2 + $0x290] sm:$0xff] }
 0x3ca   : > { %5802 = vmatmul.mubr.bf16.gmra.mxu0 %v11088_v32 }
 0x3cb   : > { %5894 = vmatpush1.bf16.msra.mxu0 %v8435_v52  ;;  %5913 = vmatprep.mubr.bf16.mxu0 %v11035_v61  ;;  %v8508_v52 = vcombine.high %v4143_v50, %v4147_v36 }
 0x3cc   : > { %5895 = vmatprep.subr.bf16.mxu0 %v8428_v49  ;;  %v3716_v49 = vadd.f32 %v11124_v60, %v11109_v10 }
 0x3cf   : > { %5896 = vmatpush1.bf16.msra.mxu0 %v8427_v6 }
 0x3d0   : > { %5897 = vmatprep.subr.bf16.mxu0 %v8548_v11 }
 0x3d3   : > { %5898 = vmatpush2.bf16.msra.mxu0 %v8547_v28  ;;  %v8507_v28 = vcombine.low %v4143_v50, %v4147_v36 }
 0x3d4   : > { %5899 = vmatprep.subr.bf16.mxu0 %v8540_v23 }
 0x3d7   : > { %5900 = vmatpush2.bf16.msra.mxu0 %v8539_v31  ;;  %v3787_v31 = vadd.f32 %v11126_v42, %v3716_v49  ;;  %v3728_v49 = vadd.f32 %v11148_v17, %v11114_v5 }
 0x3d8   : > { %5901 = vmatprep.subr.bf16.mxu0 %v8532_v41  ;;  %v4127_v41 = vld [vmem:[%s10340_s2 + $0x210] sm:$0xff] }
 0x3d9   : > { %v8492_v42 = vcombine.high %v4127_v41, %v4131_v44 }
 0x3db   : > { %5902 = vmatpush2.bf16.msra.mxu0 %v8531_v48 }
 0x3dc   : > { %5903 = vmatprep.subr.bf16.mxu0 %v8524_v18 }
 0x3df   : > { %5904 = vmatpush2.bf16.msra.mxu0 %v8523_v51 }
 0x3e0   : > { %5905 = vmatprep.subr.bf16.mxu0 %v8516_v19 }
 0x3e2   : > { %v3853_v6 = vpop.f32.mrf.mxu0 }
 0x3e3   : > { %v3924_v11 = vpop.f32.mrf.mxu1  ;;  %v3854_v22 = vadd.f32 %v3853_v6, %v11119_v56  ;;  %5906 = vmatpush2.bf16.msra.mxu0 %v8515_v9  ;;  %v4120_v9 = vld [vmem:[%s10340_s2 + $0x1d8] sm:$0xff] }
 0x3e4   : > { %v3855_v23 = vpop.f32.mrf.mxu0  ;;  %5907 = vmatprep.subr.bf16.mxu0 %v8508_v52  ;;  %v4124_v52 = vld [vmem:[%s10340_s2 + $0x1f8] sm:$0xff] }
 0x3e5   : > { %v3926_v30 = vpop.f32.mrf.mxu1  ;;  %v3856_v60 = vadd.f32 %v3855_v23, %v11128_v54  ;;  %v3925_v18 = vadd.f32 %v3924_v11, %v3854_v22  ;;  %v8491_v11 = vcombine.low %v4127_v41, %v4131_v44  ;;  %v3797_v22 = vadd.f32 %v11144_v3, %v3726_v8  ;;  %v11229_v41 = vld [vmem:[%s10340_s2 + $0x588] sm:$0xff] }
 0x3e6   : > { %v3857_v26 = vpop.f32.mrf.mxu0  ;;  %v4242_v44 = vld [vmem:[%s10340_s2 + $0x5a8] sm:$0xff]  ;;  %v3799_v3 = vadd.f32 %v11150_v27, %v3728_v49 }
 0x3e7   : > { %v3928_v48 = vpop.f32.mrf.mxu1  ;;  %v3858_v56 = vadd.f32 %v3857_v26, %v3787_v31  ;;  %5908 = vmatpush2.bf16.msra.mxu0 %v8507_v28  ;;  %v3927_v54 = vadd.f32 %v3926_v30, %v3856_v60  ;;  %v3963_v7 = vmax.f32 %v3925_v18, 0.0  ;;  %v8486_v30 = vcombine.high %v4120_v9, %v4124_v52 }
 0x3e8   : > { %v3859_v51 = vpop.f32.mrf.mxu0  ;;  %5909 = vmatprep.subr.bf16.mxu0 %v8500_v25 }
 0x3e9   : > { %v3930_v19 = vpop.f32.mrf.mxu1  ;;  %v3929_v50 = vadd.f32 %v3928_v48, %v3858_v56  ;;  %v3860_v36 = vadd.f32 %v3859_v51, %v3789_v33  ;;  %v3964_v17 = vmax.f32 %v3927_v54, 0.0  ;;  %v4112_v48 = vld [vmem:[%s10340_s2 + $0x198] sm:$0xff]  ;;  %v8485_v51 = vcombine.low %v4120_v9, %v4124_v52  ;;  %v11241_v54 = vld [vmem:[%s10340_s2 + $0x548] sm:$0xff] }
 0x3ea   : > { %v3863_v63 = vpop.f32.mrf.mxu0  ;;  %v4116_v33 = vld [vmem:[%s10340_s2 + $0x1b8] sm:$0xff]  ;;  %v8601_v52 = vcombine.low %v11229_v41, %v4242_v44 }
 0x3eb   : > { %v3934_v6 = vpop.f32.mrf.mxu1  ;;  %v3967_v0 = vmax.f32 %v3929_v50, 0.0  ;;  %v3931_v39 = vadd.f32 %v3930_v19, %v3860_v36  ;;  %v3864_v12 = vadd.f32 %v3863_v63, %v11140_v47  ;;  %5910 = vmatpush2.bf16.msra.mxu0 %v8499_v1  ;;  %v8478_v49 = vcombine.high %v4112_v48, %v4116_v33  ;;  %v11245_v63 = vld [vmem:[%s10340_s2 + $0x568] sm:$0xff] }
 0x3ec   : > { %v3865_v28 = vpop.f32.mrf.mxu0  ;;  %5911 = vmatprep.subr.bf16.mxu0 %v8492_v42  ;;  %v8602_v42 = vcombine.high %v11229_v41, %v4242_v44  ;;  %v4100_v41 = vld [vmem:[%s10340_s2 + $0x138] sm:$0xff] }
 0x3ed   : > { %v3936_v23 = vpop.f32.mrf.mxu1  ;;  %v11225_v25 = vpack.c.bf16 %v3967_v0, %v3963_v7  ;;  %v3968_v31 = vmax.f32 %v3931_v39, 0.0  ;;  %v3866_v60 = vadd.f32 %v3865_v28, %v11146_v35  ;;  %v3935_v56 = vadd.f32 %v3934_v6, %v3864_v12  ;;  %v11248_v6 = vld [vmem:[%s10340_s2 + $0x158] sm:$0xff] }
 0x3ee   : > { %v3867_v26 = vpop.f32.mrf.mxu0  ;;  %v3736_v35 = vadd.f32 %v11162_v55, %v11109_v10  ;;  %v3738_v10 = vadd.f32 %v11168_v20, %v11114_v5  ;;  %v8477_v7 = vcombine.low %v4112_v48, %v4116_v33  ;;  %v8593_v48 = vcombine.low %v11241_v54, %v11245_v63 }
 0x3ef   : > { %v3938_v47 = vpop.f32.mrf.mxu1  ;;  %v11235_v18 = vpack.c.bf16 %v3968_v31, %v3964_v17  ;;  %v3868_v1 = vadd.f32 %v3867_v26, %v3797_v22  ;;  %5912 = vmatpush2.bf16.msra.mxu0 %v8491_v11  ;;  %v3937_v27 = vadd.f32 %v3936_v23, %v3866_v60  ;;  %v11251_v11 = vld [vmem:[%s10340_s2 + $0x178] sm:$0xff]  ;;  %v3971_v0 = vmax.f32 %v3935_v56, 0.0  ;;  %v11269_v17 = vld [vmem:[%s10340_s2 + $0x508] sm:$0xff] }
 0x3f0   : > { %v3869_v8 = vpop.f32.mrf.mxu0  ;;  %6023 = vmatprep.subr.bf16.mxu0 %v8486_v30  ;;  %v3807_v20 = vadd.f32 %v11164_v53, %v3736_v35  ;;  %v8594_v30 = vcombine.high %v11241_v54, %v11245_v63  ;;  %v4226_v53 = vld [vmem:[%s10340_s2 + $0x528] sm:$0xff]  ;;  %v4096_v60 = vld [vmem:[%s10340_s2 + $0x118] sm:$0xff]  ;;  %v3809_v44 = vadd.f32 %v11170_v15, %v3738_v10  ;;  %v3744_v33 = vadd.f32 %v11177_v40, %v11114_v5 }
 0x3f1   : > { %v3940_v19 = vpop.f32.mrf.mxu1  ;;  %v3870_v50 = vadd.f32 %v3869_v8, %v3799_v3  ;;  %v3939_v36 = vadd.f32 %v3938_v47, %v3868_v1  ;;  %5700 = vmatprep.mubr.bf16.mxu1 %v11235_v18  ;;  %v3972_v58 = vmax.f32 %v3937_v27, 0.0  ;;  %v8469_v15 = vcombine.low %v11248_v6, %v11251_v11  ;;  %v4218_v54 = vld [vmem:[%s10340_s2 + $0x4e8] sm:$0xff]  ;;  %v4088_v27 = vld [vmem:[%s10340_s2 + $0xd8] sm:$0xff] }
 0x3f2   : > { %5914 = vmatmul.mubr.bf16.vlgmr.msra.gmra.mxu0 %v11027_v43  ;;  %v3873_v55 = vpop.f32.mrf.mxu0  ;;  %5701 = vmatmul.mubr.bf16.vlgmr.msra.gmra.mxu1 %v11225_v25  ;;  %v8586_v8 = vcombine.high %v11269_v17, %v4226_v53  ;;  %v8585_v63 = vcombine.low %v11269_v17, %v4226_v53  ;;  %v4084_v17 = vld [vmem:[%s10340_s2 + $0xb8] sm:$0xff] }
 0x3f3   : > { %v3944_v9 = vpop.f32.mrf.mxu1  ;;  %v3975_v39 = vmax.f32 %v3939_v36, 0.0  ;;  %v3874_v12 = vadd.f32 %v3873_v55, %v11160_v38  ;;  %v3941_v22 = vadd.f32 %v3940_v19, %v3870_v50  ;;  %5811 = vmatpush1.bf16.msra.mxu1 %v8609_v14  ;;  %5923 = vmatprep.mubr.bf16.mxu0 %v11065_v24  ;;  %v8470_v38 = vcombine.high %v11248_v6, %v11251_v11  ;;  %v4214_v19 = vld [vmem:[%s10340_s2 + $0x4c8] sm:$0xff]  ;;  %v4092_v50 = vld [vmem:[%s10340_s2 + $0xf8] sm:$0xff] }
 0x3f4   : > { %6024 = vmatpush1.bf16.msra.mxu0 %v8485_v51  ;;  %v3875_v28 = vpop.f32.mrf.mxu0  ;;  %5812 = vmatprep.subr.bf16.mxu1 %v8602_v42  ;;  %v8462_v51 = vcombine.high %v4096_v60, %v4100_v41  ;;  %v8461_v6 = vcombine.low %v4096_v60, %v4100_v41  ;;  %v3815_v11 = vadd.f32 %v11179_v45, %v3744_v33 }
 0x3f5   : > { %v3946_v23 = vpop.f32.mrf.mxu1  ;;  %v11271_v37 = vpack.c.bf16 %v3975_v39, %v3971_v0  ;;  %v3976_v14 = vmax.f32 %v3941_v22, 0.0  ;;  %v3876_v31 = vadd.f32 %v3875_v28, %v11166_v2  ;;  %6025 = vmatprep.subr.bf16.mxu0 %v8478_v49  ;;  %v3945_v56 = vadd.f32 %v3944_v9, %v3874_v12 }
 0x3f6   : > { %v3877_v26 = vpop.f32.mrf.mxu0  ;;  %v8578_v39 = vcombine.high %v4214_v19, %v4218_v54  ;;  %v8454_v12 = vcombine.high %v4088_v27, %v4092_v50  ;;  %v8577_v53 = vcombine.low %v4214_v19, %v4218_v54  ;;  %v8453_v41 = vcombine.low %v4088_v27, %v4092_v50  ;;  %v4194_v54 = vld [vmem:[%s10340_s2 + $0x428] sm:$0xff]  ;;  %v4064_v27 = vld [vmem:[%s10340_s2 + $0x18] sm:$0xff] }
 0x3f7   : > { %v3948_v47 = vpop.f32.mrf.mxu1  ;;  %v11282_v3 = vpack.c.bf16 %v3976_v14, %v3972_v58  ;;  %v3878_v2 = vadd.f32 %v3877_v26, %v3807_v20  ;;  %5813 = vmatpush1.bf16.msra.mxu1 %v8601_v52  ;;  %v3947_v5 = vadd.f32 %v3946_v23, %v3876_v31  ;;  %v3979_v10 = vmax.f32 %v3945_v56, 0.0  ;;  %v4206_v23 = vld [vmem:[%s10340_s2 + $0x488] sm:$0xff]  ;;  %v4068_v50 = vld [vmem:[%s10340_s2 + $0x38] sm:$0xff] }
 0x3f8   : > { %6026 = vmatpush1.bf16.msra.mxu0 %v8477_v7  ;;  %v3879_v1 = vpop.f32.mrf.mxu0  ;;  %5814 = vmatprep.subr.bf16.mxu1 %v8594_v30  ;;  %v4210_v30 = vld [vmem:[%s10340_s2 + $0x4a8] sm:$0xff] }
 0x3f9   : > { %v3950_v35 = vpop.f32.mrf.mxu1  ;;  %v3880_v40 = vadd.f32 %v3879_v1, %v3809_v44  ;;  %v3949_v42 = vadd.f32 %v3948_v47, %v3878_v2  ;;  %5710 = vmatprep.mubr.bf16.mxu1 %v11282_v3  ;;  %6027 = vmatprep.subr.bf16.mxu0 %v8470_v38  ;;  %v3980_v22 = vmax.f32 %v3947_v5, 0.0  ;;  %v4080_v38 = vld [vmem:[%s10340_s2 + $0x98] sm:$0xff]  ;;  %v8570_v44 = vcombine.high %v4206_v23, %v4210_v30  ;;  %v4198_v56 = vld [vmem:[%s10340_s2 + $0x448] sm:$0xff] }
 0x3fa   : > { %5924 = vmatmul.mubr.bf16.gmra.mxu0 %v11057_v21  ;;  %v3883_v36 = vpop.f32.mrf.mxu0  ;;  %5711 = vmatmul.mubr.bf16.gmra.mxu1 %v11271_v37  ;;  %v8446_v33 = vcombine.high %v4080_v38, %v4084_v17  ;;  %v4202_v2 = vld [vmem:[%s10340_s2 + $0x468] sm:$0xff]  ;;  %v4072_v1 = vld [vmem:[%s10340_s2 + $0x58] sm:$0xff]  ;;  %v8445_v19 = vcombine.low %v4080_v38, %v4084_v17 }
 0x3fb   : > { %v3954_v49 = vpop.f32.mrf.mxu1  ;;  %v3983_v55 = vmax.f32 %v3949_v42, 0.0  ;;  %v3951_v9 = vadd.f32 %v3950_v35, %v3880_v40  ;;  %5815 = vmatpush1.bf16.msra.mxu1 %v8593_v48  ;;  %5933 = vmatprep.mubr.bf16.mxu0 %v11077_v57  ;;  %v3884_v52 = vadd.f32 %v3883_v36, %v11183_v13  ;;  %v8562_v5 = vcombine.high %v4198_v56, %v4202_v2  ;;  %v4190_v42 = vld [vmem:[%s10340_s2 + $0x408] sm:$0xff] }
 0x3fc   : > { %6028 = vmatpush1.bf16.msra.mxu0 %v8469_v15  ;;  %v3885_v7 = vpop.f32.mrf.mxu0  ;;  %5816 = vmatprep.subr.bf16.mxu1 %v8586_v8  ;;  %v4076_v15 = vld [vmem:[%s10340_s2 + $0x78] sm:$0xff]  ;;  %v8569_v8 = vcombine.low %v4206_v23, %v4210_v30  ;;  %v8561_v36 = vcombine.low %v4198_v56, %v4202_v2 }
 0x3fd   : > { %v3956_v0 = vpop.f32.mrf.mxu1  ;;  %v11298_v45 = vpack.c.bf16 %v3983_v55, %v3979_v10  ;;  %v3984_v20 = vmax.f32 %v3951_v9, 0.0  ;;  %v3886_v28 = vadd.f32 %v3885_v7, %v3815_v11  ;;  %6029 = vmatprep.subr.bf16.mxu0 %v8462_v51  ;;  %v3955_v60 = vadd.f32 %v3954_v49, %v3884_v52  ;;  %v4310_v10 = vld [vmem:[%s10340_s2 + $0x7c8] sm:$0xff]  ;;  %v4184_v9 = vld [vmem:[%s10340_s2 + $0x3d8] sm:$0xff] }
 0x3fe   : > { %v3887_v58 = vpop.f32.mrf.mxu0  ;;  %v8438_v40 = vcombine.high %v4072_v1, %v4076_v15  ;;  %v8430_v11 = vcombine.high %v4064_v27, %v4068_v50  ;;  %v4314_v55 = vld [vmem:[%s10340_s2 + $0x7e8] sm:$0xff]  ;;  %v4188_v52 = vld [vmem:[%s10340_s2 + $0x3f8] sm:$0xff]  ;;  %v8553_v7 = vcombine.low %v4190_v42, %v4194_v54 }
 0x3ff   : > { %v3958_v14 = vpop.f32.mrf.mxu1  ;;  %v11304_v13 = vpack.c.bf16 %v3984_v20, %v3980_v22  ;;  %v3957_v31 = vadd.f32 %v3956_v0, %v3886_v28  ;;  %5817 = vmatpush1.bf16.msra.mxu1 %v8585_v63  ;;  %v3987_v51 = vmax.f32 %v3955_v60, 0.0  ;;  %v8437_v63 = vcombine.low %v4072_v1, %v4076_v15  ;;  %v4302_v22 = vld [vmem:[%s10340_s2 + $0x788] sm:$0xff]  ;;  %v4176_v28 = vld [vmem:[%s10340_s2 + $0x398] sm:$0xff] }
 0x400   : > { %6030 = vmatpush1.bf16.msra.mxu0 %v8461_v6  ;;  %5818 = vmatprep.subr.bf16.mxu1 %v8578_v39  ;;  %v3888_v26 = vpop.f32.mrf.mxu0  ;;  %v8554_v6 = vcombine.high %v4190_v42, %v4194_v54  ;;  %v8429_v0 = vcombine.low %v4064_v27, %v4068_v50  ;;  %v8674_v39 = vcombine.high %v4310_v10, %v4314_v55  ;;  %v4306_v20 = vld [vmem:[%s10340_s2 + $0x7a8] sm:$0xff]  ;;  %v4180_v23 = vld [vmem:[%s10340_s2 + $0x3b8] sm:$0xff] }
 0x401   : > { %v3959_v47 = vpop.f32.mrf.mxu1  ;;  %v3988_v48 = vmax.f32 %v3957_v31, 0.0  ;;  %5720 = vmatprep.mubr.bf16.mxu1 %v11304_v13  ;;  %6031 = vmatprep.subr.bf16.mxu0 %v8454_v12  ;;  %v11321_v49 = vpack.c.bf16 %v3987_v51, %v3987_v51  ;;  %v8550_v12 = vcombine.high %v4184_v9, %v4188_v52  ;;  %v8673_v30 = vcombine.low %v4310_v10, %v4314_v55  ;;  %v4294_v58 = vld [vmem:[%s10340_s2 + $0x748] sm:$0xff]  ;;  %v4168_v31 = vld [vmem:[%s10340_s2 + $0x358] sm:$0xff] }
 0x402   : > { %5934 = vmatmul.mubr.bf16.gmra.mxu0 %v11073_v4  ;;  %5721 = vmatmul.mubr.bf16.gmra.mxu1 %v11298_v45  ;;  %v8666_v38 = vcombine.high %v4302_v22, %v4306_v20  ;;  %v8542_v17 = vcombine.high %v4176_v28, %v4180_v23  ;;  %v4298_v14 = vld [vmem:[%s10340_s2 + $0x768] sm:$0xff]  ;;  %v8665_v60 = vcombine.low %v4302_v22, %v4306_v20  ;;  %v4164_v56 = vld [vmem:[%s10340_s2 + $0x338] sm:$0xff] }
 0x403   : > { %v11313_v35 = vpack.c.bf16 %v3988_v48, %v3988_v48  ;;  %5819 = vmatpush1.bf16.msra.mxu1 %v8577_v53  ;;  %5943 = vmatprep.mubr.bf16.mxu0 %v11083_v29  ;;  %v4172_v53 = vld [vmem:[%s10340_s2 + $0x378] sm:$0xff]  ;;  %v4286_v47 = vld [vmem:[%s10340_s2 + $0x708] sm:$0xff]  ;;  %v8657_v2 = vcombine.low %v4294_v58, %v4298_v14 }
 0x404   : > { %6032 = vmatpush1.bf16.msra.mxu0 %v8453_v41  ;;  %5820 = vmatprep.subr.bf16.mxu1 %v8570_v44  ;;  %v8541_v41 = vcombine.low %v4176_v28, %v4180_v23  ;;  %v8658_v44 = vcombine.high %v4294_v58, %v4298_v14  ;;  %v8534_v26 = vcombine.high %v4168_v31, %v4172_v53  ;;  %v4290_v48 = vld [vmem:[%s10340_s2 + $0x728] sm:$0xff] }
 0x405   : > { %5730 = vmatprep.mubr.bf16.mxu1 %v11313_v35  ;;  %6033 = vmatprep.subr.bf16.mxu0 %v8446_v33  ;;  %v4160_v33 = vld [vmem:[%s10340_s2 + $0x318] sm:$0xff]  ;;  %v8533_v1 = vcombine.low %v4168_v31, %v4172_v53  ;;  %v8650_v15 = vcombine.high %v4286_v47, %v4290_v48  ;;  %v4278_v51 = vld [vmem:[%s10340_s2 + $0x6c8] sm:$0xff]  ;;  %v8649_v42 = vcombine.low %v4286_v47, %v4290_v48  ;;  %v4239_v48 = vld [vmem:[%s10340_s2 + $0x590] sm:$0xff] }
 0x406   : > { %v8525_v54 = vcombine.low %v4160_v33, %v4164_v56 }
 0x407   : > { %5821 = vmatpush1.bf16.msra.mxu1 %v8569_v8  ;;  %v8526_v8 = vcombine.high %v4160_v33, %v4164_v56  ;;  %v4243_v33 = vld [vmem:[%s10340_s2 + $0x5b0] sm:$0xff] }
 0x408   : > { %6034 = vmatpush1.bf16.msra.mxu0 %v8445_v19  ;;  %5822 = vmatprep.subr.bf16.mxu1 %v8562_v5  ;;  %v4282_v19 = vld [vmem:[%s10340_s2 + $0x6e8] sm:$0xff]  ;;  %v4152_v5 = vld [vmem:[%s10340_s2 + $0x2d8] sm:$0xff] }
 0x409   : > { %6035 = vmatprep.subr.bf16.mxu0 %v8438_v40  ;;  %v4156_v40 = vld [vmem:[%s10340_s2 + $0x2f8] sm:$0xff]  ;;  %v8642_v27 = vcombine.high %v4278_v51, %v4282_v19  ;;  %v8641_v10 = vcombine.low %v4278_v51, %v4282_v19  ;;  %v8603_v19 = vcombine.low %v4239_v48, %v4243_v33 }
 0x40a   : > { %5944 = vmatmul.mubr.bf16.gmra.mxu0 %v11088_v32  ;;  %5731 = vmatmul.mubr.bf16.gmra.mxu1 %v11321_v49  ;;  %v8518_v50 = vcombine.high %v4152_v5, %v4156_v40  ;;  %v8517_v55 = vcombine.low %v4152_v5, %v4156_v40 }
 0x40b   : > { %5823 = vmatpush1.bf16.msra.mxu1 %v8561_v36  ;;  %6055 = vmatprep.mubr.bf16.mxu0 %v11035_v61  ;;  %v8549_v61 = vcombine.low %v4184_v9, %v4188_v52  ;;  %v4270_v36 = vld [vmem:[%s10340_s2 + $0x688] sm:$0xff] }
 0x40c   : > { %6036 = vmatpush1.bf16.msra.mxu0 %v8437_v63  ;;  %5842 = vmatprep.mubr.bf16.mxu1 %v11235_v18  ;;  %v4274_v63 = vld [vmem:[%s10340_s2 + $0x6a8] sm:$0xff] }
 0x40d   : > { %5824 = vmatprep.subr.bf16.mxu1 %v8554_v6  ;;  %6037 = vmatprep.subr.bf16.mxu0 %v8430_v11  ;;  %v4144_v6 = vld [vmem:[%s10340_s2 + $0x298] sm:$0xff]  ;;  %v8634_v9 = vcombine.high %v4270_v36, %v4274_v63  ;;  %v8633_v22 = vcombine.low %v4270_v36, %v4274_v63  ;;  %v4215_v36 = vld [vmem:[%s10340_s2 + $0x4d0] sm:$0xff] }
 0x40e   : > { %v4148_v11 = vld [vmem:[%s10340_s2 + $0x2b8] sm:$0xff]  ;;  %v4219_v63 = vld [vmem:[%s10340_s2 + $0x4f0] sm:$0xff] }
 0x40f   : > { %5825 = vmatpush1.bf16.msra.mxu1 %v8553_v7  ;;  %v8510_v52 = vcombine.high %v4144_v6, %v4148_v11  ;;  %v4262_v7 = vld [vmem:[%s10340_s2 + $0x648] sm:$0xff]  ;;  %v8509_v20 = vcombine.low %v4144_v6, %v4148_v11 }
 0x410   : > { %6038 = vmatpush1.bf16.msra.mxu0 %v8429_v0  ;;  %5826 = vmatprep.subr.bf16.mxu1 %v8674_v39  ;;  %v4266_v0 = vld [vmem:[%s10340_s2 + $0x668] sm:$0xff]  ;;  %v4136_v39 = vld [vmem:[%s10340_s2 + $0x258] sm:$0xff] }
 0x411   : > { %6039 = vmatprep.subr.bf16.mxu0 %v8550_v12  ;;  %v4140_v12 = vld [vmem:[%s10340_s2 + $0x278] sm:$0xff]  ;;  %v8626_v28 = vcombine.high %v4262_v7, %v4266_v0  ;;  %v8625_v58 = vcombine.low %v4262_v7, %v4266_v0 }
 0x412   : > { %v8502_v23 = vcombine.high %v4136_v39, %v4140_v12  ;;  %v8501_v14 = vcombine.low %v4136_v39, %v4140_v12  ;;  %v4199_v39 = vld [vmem:[%s10340_s2 + $0x450] sm:$0xff] }
 0x413   : > { %5827 = vmatpush2.bf16.msra.mxu1 %v8673_v30  ;;  %v4254_v30 = vld [vmem:[%s10340_s2 + $0x608] sm:$0xff]  ;;  %v4203_v12 = vld [vmem:[%s10340_s2 + $0x470] sm:$0xff] }
 0x414   : > { %6040 = vmatpush2.bf16.msra.mxu0 %v8549_v61  ;;  %5828 = vmatprep.subr.bf16.mxu1 %v8666_v38  ;;  %v4258_v61 = vld [vmem:[%s10340_s2 + $0x628] sm:$0xff]  ;;  %v4128_v38 = vld [vmem:[%s10340_s2 + $0x218] sm:$0xff] }
 0x415   : > { %6041 = vmatprep.subr.bf16.mxu0 %v8542_v17  ;;  %v4132_v17 = vld [vmem:[%s10340_s2 + $0x238] sm:$0xff]  ;;  %v8618_v31 = vcombine.high %v4254_v30, %v4258_v61 }
 0x416   : > { %v8494_v53 = vcombine.high %v4128_v38, %v4132_v17 }
 0x417   : > { %5829 = vmatpush2.bf16.msra.mxu1 %v8665_v60  ;;  %v4247_v60 = vld [vmem:[%s10340_s2 + $0x5d0] sm:$0xff] }
 0x418   : > { %6042 = vmatpush2.bf16.msra.mxu0 %v8541_v41  ;;  %5830 = vmatprep.subr.bf16.mxu1 %v8658_v44  ;;  %v4251_v41 = vld [vmem:[%s10340_s2 + $0x5f0] sm:$0xff]  ;;  %v8617_v44 = vcombine.low %v4254_v30, %v4258_v61 }
 0x419   : > { %6043 = vmatprep.subr.bf16.mxu0 %v8534_v26  ;;  %v8493_v26 = vcombine.low %v4128_v38, %v4132_v17  ;;  %v8612_v47 = vcombine.high %v4247_v60, %v4251_v41  ;;  %v8611_v56 = vcombine.low %v4247_v60, %v4251_v41  ;;  %v4191_v30 = vld [vmem:[%s10340_s2 + $0x410] sm:$0xff] }
 0x41a   : > { %v4195_v61 = vld [vmem:[%s10340_s2 + $0x430] sm:$0xff] }
 0x41b   : > { %5831 = vmatpush2.bf16.msra.mxu1 %v8657_v2  ;;  %v8604_v2 = vcombine.high %v4239_v48, %v4243_v33  ;;  %v8556_v17 = vcombine.high %v4191_v30, %v4195_v61  ;;  %v4295_v33 = vld [vmem:[%s10340_s2 + $0x750] sm:$0xff] }
 0x41c   : > { %6044 = vmatpush2.bf16.msra.mxu0 %v8533_v1  ;;  %5832 = vmatprep.subr.bf16.mxu1 %v8650_v15  ;;  %v4231_v15 = vld [vmem:[%s10340_s2 + $0x550] sm:$0xff] }
 0x41d   : > { %6045 = vmatprep.subr.bf16.mxu0 %v8526_v8  ;;  %v4235_v8 = vld [vmem:[%s10340_s2 + $0x570] sm:$0xff] }
 0x41e   : > { %v8596_v5 = vcombine.high %v4231_v15, %v4235_v8 }
 0x41f   : > { %5833 = vmatpush2.bf16.msra.mxu1 %v8649_v42  ;;  %v4223_v42 = vld [vmem:[%s10340_s2 + $0x510] sm:$0xff] }
 0x420   : > { %6046 = vmatpush2.bf16.msra.mxu0 %v8525_v54  ;;  %5834 = vmatprep.subr.bf16.mxu1 %v8642_v27  ;;  %v4227_v54 = vld [vmem:[%s10340_s2 + $0x530] sm:$0xff] }
 0x421   : > { %6047 = vmatprep.subr.bf16.mxu0 %v8518_v50  ;;  %v8588_v50 = vcombine.high %v4223_v42, %v4227_v54  ;;  %v8587_v11 = vcombine.low %v4223_v42, %v4227_v54  ;;  %v4279_v54 = vld [vmem:[%s10340_s2 + $0x6d0] sm:$0xff] }
 0x423   : > { %5835 = vmatpush2.bf16.msra.mxu1 %v8641_v10  ;;  %v8580_v10 = vcombine.high %v4215_v36, %v4219_v63 }
 0x424   : > { %6048 = vmatpush2.bf16.msra.mxu0 %v8517_v55  ;;  %5836 = vmatprep.subr.bf16.mxu1 %v8634_v9  ;;  %v4207_v9 = vld [vmem:[%s10340_s2 + $0x490] sm:$0xff] }
 0x425   : > { %6049 = vmatprep.subr.bf16.mxu0 %v8510_v52  ;;  %v4211_v52 = vld [vmem:[%s10340_s2 + $0x4b0] sm:$0xff] }
 0x426   : > { %v8572_v0 = vcombine.high %v4207_v9, %v4211_v52 }
 0x427   : > { %5837 = vmatpush2.bf16.msra.mxu1 %v8633_v22 }
 0x428   : > { %6050 = vmatpush2.bf16.msra.mxu0 %v8509_v20  ;;  %5838 = vmatprep.subr.bf16.mxu1 %v8626_v28  ;;  %v8571_v20 = vcombine.low %v4207_v9, %v4211_v52  ;;  %v8564_v28 = vcombine.high %v4199_v39, %v4203_v12  ;;  %v4263_v52 = vld [vmem:[%s10340_s2 + $0x650] sm:$0xff] }
 0x429   : > { %6051 = vmatprep.subr.bf16.mxu0 %v8502_v23 }
 0x42b   : > { %5839 = vmatpush2.bf16.msra.mxu1 %v8625_v58  ;;  %v4311_v58 = vld [vmem:[%s10340_s2 + $0x7d0] sm:$0xff] }
 0x42c   : > { %6052 = vmatpush2.bf16.msra.mxu0 %v8501_v14  ;;  %5840 = vmatprep.subr.bf16.mxu1 %v8618_v31  ;;  %v4315_v14 = vld [vmem:[%s10340_s2 + $0x7f0] sm:$0xff] }
 0x42d   : > { %6053 = vmatprep.subr.bf16.mxu0 %v8494_v53  ;;  %v8555_v53 = vcombine.low %v4191_v30, %v4195_v61  ;;  %v8676_v60 = vcombine.high %v4311_v58, %v4315_v14  ;;  %v8675_v48 = vcombine.low %v4311_v58, %v4315_v14  ;;  %v4248_v61 = vld [vmem:[%s10340_s2 + $0x5d8] sm:$0xff] }
 0x42e   : > { %v4240_v14 = vld [vmem:[%s10340_s2 + $0x598] sm:$0xff] }
 0x42f   : > { %5841 = vmatpush2.bf16.msra.mxu1 %v8617_v44  ;;  %v4303_v44 = vld [vmem:[%s10340_s2 + $0x790] sm:$0xff] }
 0x430   : > { %6054 = vmatpush2.bf16.msra.mxu0 %v8493_v26  ;;  %5952 = vmatprep.subr.bf16.mxu1 %v8612_v47  ;;  %v4307_v26 = vld [vmem:[%s10340_s2 + $0x7b0] sm:$0xff] }
 0x432   : > { %5843 = vmatmul.mubr.bf16.vlgmr.msra.gmra.mxu1 %v11225_v25  ;;  %v11364_v1 = vpop.f32.mrf.mxu0 }
 0x433   : > { %6056 = vmatmul.mubr.bf16.vlgmr.msra.gmra.mxu0 %v11027_v43  ;;  %5852 = vmatprep.mubr.bf16.mxu1 %v11282_v3  ;;  %v8595_v43 = vcombine.low %v4231_v15, %v4235_v8  ;;  %v4287_v8 = vld [vmem:[%s10340_s2 + $0x710] sm:$0xff] }
 0x434   : > { %5953 = vmatpush1.bf16.msra.mxu1 %v8611_v56  ;;  %6065 = vmatprep.mubr.bf16.mxu0 %v11065_v24  ;;  %v11371_v51 = vpop.f32.mrf.mxu0  ;;  %v4299_v56 = vld [vmem:[%s10340_s2 + $0x770] sm:$0xff] }
 0x435   : > { %5954 = vmatprep.subr.bf16.mxu1 %v8604_v2  ;;  %v8667_v2 = vcombine.low %v4303_v44, %v4307_v26  ;;  %v8660_v15 = vcombine.high %v4295_v33, %v4299_v56 }
 0x436   : > { %v11373_v40 = vpop.f32.mrf.mxu0 }
 0x438   : > { %5955 = vmatpush1.bf16.msra.mxu1 %v8603_v19  ;;  %v11377_v27 = vpop.f32.mrf.mxu0  ;;  %v4291_v19 = vld [vmem:[%s10340_s2 + $0x730] sm:$0xff] }
 0x439   : > { %5956 = vmatprep.subr.bf16.mxu1 %v8596_v5  ;;  %v8659_v5 = vcombine.low %v4295_v33, %v4299_v56  ;;  %v8652_v42 = vcombine.high %v4287_v8, %v4291_v19 }
 0x43a   : > { %5853 = vmatmul.mubr.bf16.gmra.mxu1 %v11271_v37  ;;  %v11380_v24 = vpop.f32.mrf.mxu0 }
 0x43b   : > { %6066 = vmatmul.mubr.bf16.gmra.mxu0 %v11057_v21  ;;  %5862 = vmatprep.mubr.bf16.mxu1 %v11304_v13  ;;  %v8579_v21 = vcombine.low %v4215_v36, %v4219_v63  ;;  %v4271_v63 = vld [vmem:[%s10340_s2 + $0x690] sm:$0xff] }
 0x43c   : > { %5957 = vmatpush1.bf16.msra.mxu1 %v8595_v43  ;;  %6075 = vmatprep.mubr.bf16.mxu0 %v11077_v57  ;;  %v11387_v6 = vpop.f32.mrf.mxu0  ;;  %v4283_v43 = vld [vmem:[%s10340_s2 + $0x6f0] sm:$0xff] }
 0x43d   : > { %5958 = vmatprep.subr.bf16.mxu1 %v8588_v50  ;;  %v8651_v50 = vcombine.low %v4287_v8, %v4291_v19  ;;  %v8644_v36 = vcombine.high %v4279_v54, %v4283_v43 }
 0x43e   : > { %v11389_v55 = vpop.f32.mrf.mxu0 }
 0x440   : > { %5959 = vmatpush1.bf16.msra.mxu1 %v8587_v11  ;;  %v11393_v7 = vpop.f32.mrf.mxu0  ;;  %v4275_v11 = vld [vmem:[%s10340_s2 + $0x6b0] sm:$0xff] }
 0x441   : > { %5960 = vmatprep.subr.bf16.mxu1 %v8580_v10  ;;  %v8643_v10 = vcombine.low %v4279_v54, %v4283_v43  ;;  %v8636_v9 = vcombine.high %v4271_v63, %v4275_v11  ;;  %v4216_v54 = vld [vmem:[%s10340_s2 + $0x4d8] sm:$0xff] }
 0x442   : > { %5863 = vmatmul.mubr.bf16.gmra.mxu1 %v11298_v45  ;;  %v11396_v57 = vpop.f32.mrf.mxu0  ;;  %v4220_v43 = vld [vmem:[%s10340_s2 + $0x4f8] sm:$0xff] }
 0x443   : > { %6076 = vmatmul.mubr.bf16.gmra.mxu0 %v11073_v4  ;;  %5872 = vmatprep.mubr.bf16.mxu1 %v11313_v35  ;;  %v8563_v4 = vcombine.low %v4199_v39, %v4203_v12  ;;  %v4255_v12 = vld [vmem:[%s10340_s2 + $0x610] sm:$0xff] }
 0x444   : > { %5961 = vmatpush1.bf16.msra.mxu1 %v8579_v21  ;;  %6085 = vmatprep.mubr.bf16.mxu0 %v11083_v29  ;;  %v11403_v22 = vpop.f32.mrf.mxu0  ;;  %v4267_v21 = vld [vmem:[%s10340_s2 + $0x670] sm:$0xff] }
 0x445   : > { %5962 = vmatprep.subr.bf16.mxu1 %v8572_v0  ;;  %v8635_v0 = vcombine.low %v4271_v63, %v4275_v11  ;;  %v8628_v39 = vcombine.high %v4263_v52, %v4267_v21  ;;  %v8582_v63 = vcombine.high %v4216_v54, %v4220_v43 }
 0x446   : > { %v11405_v23 = vpop.f32.mrf.mxu0 }
 0x448   : > { %5963 = vmatpush1.bf16.msra.mxu1 %v8571_v20  ;;  %v11409_v38 = vpop.f32.mrf.mxu0  ;;  %v4259_v20 = vld [vmem:[%s10340_s2 + $0x630] sm:$0xff] }
 0x449   : > { %5964 = vmatprep.subr.bf16.mxu1 %v8564_v28  ;;  %v8627_v28 = vcombine.low %v4263_v52, %v4267_v21  ;;  %v8620_v30 = vcombine.high %v4255_v12, %v4259_v20  ;;  %v8581_v21 = vcombine.low %v4216_v54, %v4220_v43 }
 0x44a   : > { %5873 = vmatmul.mubr.bf16.gmra.mxu1 %v11321_v49  ;;  %v11412_v29 = vpop.f32.mrf.mxu0 }
 0x44b   : > { %6086 = vmatmul.mubr.bf16.gmra.mxu0 %v11088_v32  ;;  %5984 = vmatprep.mubr.bf16.mxu1 %v11235_v18  ;;  %v8668_v32 = vcombine.high %v4303_v44, %v4307_v26  ;;  %v4232_v26 = vld [vmem:[%s10340_s2 + $0x558] sm:$0xff] }
 0x44c   : > { %5965 = vmatpush1.bf16.msra.mxu1 %v8563_v4  ;;  %v11418_v31 = vpop.f32.mrf.mxu0  ;;  %v4252_v4 = vld [vmem:[%s10340_s2 + $0x5f8] sm:$0xff] }
 0x44d   : > { %5966 = vmatprep.subr.bf16.mxu1 %v8556_v17  ;;  %v8619_v17 = vcombine.low %v4255_v12, %v4259_v20  ;;  %v8614_v58 = vcombine.high %v4248_v61, %v4252_v4  ;;  %v4200_v12 = vld [vmem:[%s10340_s2 + $0x458] sm:$0xff] }
 0x44e   : > { %v5665_v41 = vpop.f32.mrf.mxu0  ;;  %v4204_v20 = vld [vmem:[%s10340_s2 + $0x478] sm:$0xff] }
 0x450   : > { %5967 = vmatpush1.bf16.msra.mxu1 %v8555_v53  ;;  %v5666_v47 = vpop.f32.mrf.mxu0  ;;  %v4244_v53 = vld [vmem:[%s10340_s2 + $0x5b8] sm:$0xff] }
 0x451   : > { %5968 = vmatprep.subr.bf16.mxu1 %v8676_v60  ;;  %v8613_v60 = vcombine.low %v4248_v61, %v4252_v4  ;;  %v8606_v41 = vcombine.high %v4240_v14, %v4244_v53  ;;  %v4236_v47 = vld [vmem:[%s10340_s2 + $0x578] sm:$0xff]  ;;  %v8566_v61 = vcombine.high %v4200_v12, %v4204_v20 }
 0x452   : > { %v8598_v33 = vcombine.high %v4232_v26, %v4236_v47  ;;  %v8597_v19 = vcombine.low %v4232_v26, %v4236_v47  ;;  %v4312_v26 = vld [vmem:[%s10340_s2 + $0x7d8] sm:$0xff] }
 0x453   : > { %v4316_v47 = vld [vmem:[%s10340_s2 + $0x7f8] sm:$0xff] }
 0x454   : > { %5969 = vmatpush2.bf16.msra.mxu1 %v8675_v48  ;;  %v8677_v43 = vcombine.low %v4312_v26, %v4316_v47 }
 0x455   : > { %5970 = vmatprep.subr.bf16.mxu1 %v8668_v32  ;;  %v8605_v32 = vcombine.low %v4240_v14, %v4244_v53  ;;  %v8565_v53 = vcombine.low %v4200_v12, %v4204_v20 }
 0x458   : > { %5971 = vmatpush2.bf16.msra.mxu1 %v8667_v2  ;;  %v4224_v2 = vld [vmem:[%s10340_s2 + $0x518] sm:$0xff] }
 0x459   : > { %5972 = vmatprep.subr.bf16.mxu1 %v8660_v15  ;;  %v4228_v15 = vld [vmem:[%s10340_s2 + $0x538] sm:$0xff] }
 0x45c   : > { %5973 = vmatpush2.bf16.msra.mxu1 %v8659_v5  ;;  %v8590_v5 = vcombine.high %v4224_v2, %v4228_v15 }
 0x45d   : > { %5974 = vmatprep.subr.bf16.mxu1 %v8652_v42 }
 0x460   : > { %5975 = vmatpush2.bf16.msra.mxu1 %v8651_v50 }
 0x461   : > { %5976 = vmatprep.subr.bf16.mxu1 %v8644_v36  ;;  %v8589_v36 = vcombine.low %v4224_v2, %v4228_v15  ;;  %v8678_v2 = vcombine.high %v4312_v26, %v4316_v47 }
 0x464   : > { %5977 = vmatpush2.bf16.msra.mxu1 %v8643_v10  ;;  %v4208_v10 = vld [vmem:[%s10340_s2 + $0x498] sm:$0xff] }
 0x465   : > { %5978 = vmatprep.subr.bf16.mxu1 %v8636_v9  ;;  %v4212_v9 = vld [vmem:[%s10340_s2 + $0x4b8] sm:$0xff] }
 0x468   : > { %5979 = vmatpush2.bf16.msra.mxu1 %v8635_v0  ;;  %v8574_v0 = vcombine.high %v4208_v10, %v4212_v9 }
 0x469   : > { %5980 = vmatprep.subr.bf16.mxu1 %v8628_v39 }
 0x46c   : > { %5981 = vmatpush2.bf16.msra.mxu1 %v8627_v28 }
 0x46d   : > { %5982 = vmatprep.subr.bf16.mxu1 %v8620_v30  ;;  %v8573_v30 = vcombine.low %v4208_v10, %v4212_v9  ;;  %v4300_v10 = vld [vmem:[%s10340_s2 + $0x778] sm:$0xff] }
 0x470   : > { %5983 = vmatpush2.bf16.msra.mxu1 %v8619_v17  ;;  %v4192_v17 = vld [vmem:[%s10340_s2 + $0x418] sm:$0xff] }
 0x471   : > { %6094 = vmatprep.subr.bf16.mxu1 %v8614_v58  ;;  %v4196_v58 = vld [vmem:[%s10340_s2 + $0x438] sm:$0xff] }
 0x472   : > { %v11438_v44 = vpop.f32.mrf.mxu0 }
 0x473   : > { %5985 = vmatmul.mubr.bf16.vlgmr.msra.gmra.mxu1 %v11225_v25 }
 0x474   : > { %5994 = vmatprep.mubr.bf16.mxu1 %v11282_v3  ;;  %6095 = vmatpush1.bf16.msra.mxu1 %v8613_v60  ;;  %v11444_v48 = vpop.f32.mrf.mxu0  ;;  %v8558_v60 = vcombine.high %v4192_v17, %v4196_v58 }
 0x475   : > { %6096 = vmatprep.subr.bf16.mxu1 %v8606_v41 }
 0x476   : > { %v11446_v56 = vpop.f32.mrf.mxu0 }
 0x478   : > { %6097 = vmatpush1.bf16.msra.mxu1 %v8605_v32  ;;  %v11450_v8 = vpop.f32.mrf.mxu0 }
 0x479   : > { %6098 = vmatprep.subr.bf16.mxu1 %v8598_v33  ;;  %v8557_v33 = vcombine.low %v4192_v17, %v4196_v58 }
 0x47a   : > { %v11452_v42 = vpop.f32.mrf.mxu0 }
 0x47b   : > { %5995 = vmatmul.mubr.bf16.gmra.mxu1 %v11271_v37 }
 0x47c   : > { %6004 = vmatprep.mubr.bf16.mxu1 %v11304_v13  ;;  %6099 = vmatpush1.bf16.msra.mxu1 %v8597_v19  ;;  %v11458_v50 = vpop.f32.mrf.mxu0  ;;  %v4304_v19 = vld [vmem:[%s10340_s2 + $0x798] sm:$0xff] }
 0x47d   : > { %6100 = vmatprep.subr.bf16.mxu1 %v8590_v5  ;;  %v4308_v5 = vld [vmem:[%s10340_s2 + $0x7b8] sm:$0xff] }
 0x47e   : > { %v11460_v11 = vpop.f32.mrf.mxu0 }
 0x480   : > { %6101 = vmatpush1.bf16.msra.mxu1 %v8589_v36  ;;  %v11464_v52 = vpop.f32.mrf.mxu0  ;;  %v8670_v36 = vcombine.high %v4304_v19, %v4308_v5 }
 0x481   : > { %6102 = vmatprep.subr.bf16.mxu1 %v8582_v63  ;;  %v4296_v63 = vld [vmem:[%s10340_s2 + $0x758] sm:$0xff] }
 0x482   : > { %v11466_v39 = vpop.f32.mrf.mxu0  ;;  %v8662_v9 = vcombine.high %v4296_v63, %v4300_v10  ;;  %v8661_v12 = vcombine.low %v4296_v63, %v4300_v10 }
 0x483   : > { %6005 = vmatmul.mubr.bf16.gmra.mxu1 %v11298_v45 }
 0x484   : > { %6014 = vmatprep.mubr.bf16.mxu1 %v11313_v35  ;;  %6103 = vmatpush1.bf16.msra.mxu1 %v8581_v21  ;;  %v11472_v28 = vpop.f32.mrf.mxu0  ;;  %v4288_v21 = vld [vmem:[%s10340_s2 + $0x718] sm:$0xff] }
 0x485   : > { %6104 = vmatprep.subr.bf16.mxu1 %v8574_v0  ;;  %v4292_v0 = vld [vmem:[%s10340_s2 + $0x738] sm:$0xff] }
 0x486   : > { %v11474_v4 = vpop.f32.mrf.mxu0  ;;  %v8654_v20 = vcombine.high %v4288_v21, %v4292_v0  ;;  %v8653_v17 = vcombine.low %v4288_v21, %v4292_v0 }
 0x488   : > { %6105 = vmatpush1.bf16.msra.mxu1 %v8573_v30  ;;  %v11478_v14 = vpop.f32.mrf.mxu0  ;;  %v4280_v30 = vld [vmem:[%s10340_s2 + $0x6d8] sm:$0xff] }
 0x489   : > { %6106 = vmatprep.subr.bf16.mxu1 %v8566_v61  ;;  %v4284_v61 = vld [vmem:[%s10340_s2 + $0x6f8] sm:$0xff] }
 0x48a   : > { %v11480_v41 = vpop.f32.mrf.mxu0  ;;  %v8646_v58 = vcombine.high %v4280_v30, %v4284_v61  ;;  %v8645_v26 = vcombine.low %v4280_v30, %v4284_v61 }
 0x48b   : > { %6015 = vmatmul.mubr.bf16.gmra.mxu1 %v11321_v49 }
 0x48c   : > { %6107 = vmatpush1.bf16.msra.mxu1 %v8565_v53  ;;  %6126 = vmatprep.mubr.bf16.mxu1 %v11235_v18  ;;  %v11486_v32 = vpop.f32.mrf.mxu0  ;;  %v8669_v18 = vcombine.low %v4304_v19, %v4308_v5  ;;  %v4272_v53 = vld [vmem:[%s10340_s2 + $0x698] sm:$0xff] }
 0x48d   : > { %6108 = vmatprep.subr.bf16.mxu1 %v8558_v60  ;;  %v4276_v60 = vld [vmem:[%s10340_s2 + $0x6b8] sm:$0xff] }
 0x48e   : > { %v5807_v15 = vpop.f32.mrf.mxu0  ;;  %v8638_v47 = vcombine.high %v4272_v53, %v4276_v60  ;;  %v4256_v5 = vld [vmem:[%s10340_s2 + $0x618] sm:$0xff] }
 0x48f   : > { %v8637_v15 = vcombine.low %v4272_v53, %v4276_v60 }
 0x490   : > { %6109 = vmatpush1.bf16.msra.mxu1 %v8557_v33  ;;  %v5808_v54 = vpop.f32.mrf.mxu0  ;;  %v4264_v33 = vld [vmem:[%s10340_s2 + $0x658] sm:$0xff] }
 0x491   : > { %6110 = vmatprep.subr.bf16.mxu1 %v8678_v2  ;;  %v4268_v2 = vld [vmem:[%s10340_s2 + $0x678] sm:$0xff] }
 0x492   : > { %v8630_v19 = vcombine.high %v4264_v33, %v4268_v2  ;;  %v4260_v54 = vld [vmem:[%s10340_s2 + $0x638] sm:$0xff] }
 0x493   : > { %v8621_v63 = vcombine.low %v4256_v5, %v4260_v54 }
 0x494   : > { %6111 = vmatpush2.bf16.msra.mxu1 %v8677_v43  ;;  %v8629_v43 = vcombine.low %v4264_v33, %v4268_v2 }
 0x495   : > { %6112 = vmatprep.subr.bf16.mxu1 %v8670_v36  ;;  %v8622_v36 = vcombine.high %v4256_v5, %v4260_v54  ;;  %v4022_v54 = vld [vmem:[#allocation3 + $0x140] sm:$0xff] }
 0x498   : > { %6113 = vmatpush2.bf16.msra.mxu1 %v8669_v18  ;;  %v4005_v18 = vld [vmem:[#allocation3] sm:$0xff] }
 0x499   : > { %6114 = vmatprep.subr.bf16.mxu1 %v8662_v9 }
 0x49c   : > { %6115 = vmatpush2.bf16.msra.mxu1 %v8661_v12  ;;  %v4006_v12 = vld [vmem:[#allocation3 + $0xc0] sm:$0xff] }
 0x49d   : > { %6116 = vmatprep.subr.bf16.mxu1 %v8654_v20 }
 0x4a0   : > { %6117 = vmatpush2.bf16.msra.mxu1 %v8653_v17 }
 0x4a1   : > { %6118 = vmatprep.subr.bf16.mxu1 %v8646_v58  ;;  %v4013_v58 = vld [vmem:[#allocation3 + $0x8] sm:$0xff] }
 0x4a4   : > { %6119 = vmatpush2.bf16.msra.mxu1 %v8645_v26 }
 0x4a5   : > { %6120 = vmatprep.subr.bf16.mxu1 %v8638_v47 }
 0x4a8   : > { %6121 = vmatpush2.bf16.msra.mxu1 %v8637_v15  ;;  %v4021_v15 = vld [vmem:[#allocation3 + $0x130] sm:$0xff] }
 0x4a9   : > { %6122 = vmatprep.subr.bf16.mxu1 %v8630_v19 }
 0x4ac   : > { %6123 = vmatpush2.bf16.msra.mxu1 %v8629_v43 }
 0x4ad   : > { %6124 = vmatprep.subr.bf16.mxu1 %v8622_v36 }
 0x4b0   : > { %6125 = vmatpush2.bf16.msra.mxu1 %v8621_v63 }
 0x4b2   : > { %v11502_v10 = vpop.f32.mrf.mxu0  ;;  %v5702_v9 = vpop.f32.mrf.mxu1 }
 0x4b3   : > { %6127 = vmatmul.mubr.bf16.vlgmr.msra.gmra.mxu1 %v11225_v25  ;;  %v5703_v21 = vadd.f32 %v5702_v9, %v11364_v1  ;;  %v4014_v1 = vld [vmem:[#allocation3 + $0x38] sm:$0xff] }
 0x4b4   : > { %6136 = vmatprep.mubr.bf16.mxu1 %v11282_v3  ;;  %v11507_v0 = vpop.f32.mrf.mxu0  ;;  %v5704_v20 = vpop.f32.mrf.mxu1 }
 0x4b5   : > { %v6165_v30 = vadd.f32 %v5703_v21, %v4005_v18  ;;  %v5705_v61 = vadd.f32 %v5704_v20, %v11371_v51  ;;  %v4029_v18 = vld [vmem:[#allocation3 + $0x78] sm:$0xff] }
 0x4b6   : > { %v11510_v17 = vpop.f32.mrf.mxu0  ;;  %v5706_v53 = vpop.f32.mrf.mxu1 }
 0x4b7   : > { %6221 = vst [vmem:[#allocation3] sm:$0xff] %v6165_v30  ;;  %v6166_v60 = vadd.f32 %v5705_v61, %v4006_v12  ;;  %v5707_v26 = vadd.f32 %v5706_v53, %v11373_v40 }
 0x4b8   : > { %v11513_v25 = vpop.f32.mrf.mxu0  ;;  %v5708_v47 = vpop.f32.mrf.mxu1 }
 0x4b9   : > { %6222 = vst [vmem:[#allocation3 + $0xc0] sm:$0xff] %v6166_v60  ;;  %v6173_v3 = vadd.f32 %v5707_v26, %v4013_v58  ;;  %v5709_v33 = vadd.f32 %v5708_v47, %v11377_v27  ;;  %v4037_v58 = vld [vmem:[#allocation3 + $0x168] sm:$0xff]  ;;  %v4038_v26 = vld [vmem:[#allocation3 + $0x150] sm:$0xff] }
 0x4ba   : > { %v11516_v2 = vpop.f32.mrf.mxu0  ;;  %v5712_v51 = vpop.f32.mrf.mxu1 }
 0x4bb   : > { %6229 = vst [vmem:[#allocation3 + $0x8] sm:$0xff] %v6173_v3  ;;  %v6174_v19 = vadd.f32 %v5709_v33, %v4014_v1  ;;  %6137 = vmatmul.mubr.bf16.gmra.mxu1 %v11271_v37  ;;  %v5713_v5 = vadd.f32 %v5712_v51, %v11380_v24  ;;  %v4030_v24 = vld [vmem:[#allocation3 + $0x80] sm:$0xff]  ;;  %v4045_v33 = vld [vmem:[#allocation3 + $0x1a8] sm:$0xff] }
 0x4bc   : > { %6146 = vmatprep.mubr.bf16.mxu1 %v11304_v13  ;;  %v11521_v40 = vpop.f32.mrf.mxu0  ;;  %v5714_v43 = vpop.f32.mrf.mxu1 }
 0x4bd   : > { %6230 = vst [vmem:[#allocation3 + $0x38] sm:$0xff] %v6174_v19  ;;  %v6181_v36 = vadd.f32 %v5713_v5, %v4021_v15  ;;  %v5715_v27 = vadd.f32 %v5714_v43, %v11387_v6 }
 0x4be   : > { %v11524_v63 = vpop.f32.mrf.mxu0  ;;  %v5716_v9 = vpop.f32.mrf.mxu1 }
 0x4bf   : > { %6237 = vst [vmem:[#allocation3 + $0x130] sm:$0xff] %v6181_v36  ;;  %v6182_v21 = vadd.f32 %v5715_v27, %v4022_v54  ;;  %v5717_v37 = vadd.f32 %v5716_v9, %v11389_v55  ;;  %v4053_v36 = vld [vmem:[#allocation3 + $0x148] sm:$0xff] }
 0x4c0   : > { %v11527_v12 = vpop.f32.mrf.mxu0  ;;  %v5718_v13 = vpop.f32.mrf.mxu1 }
 0x4c1   : > { %6238 = vst [vmem:[#allocation3 + $0x140] sm:$0xff] %v6182_v21  ;;  %v6189_v20 = vadd.f32 %v5717_v37, %v4029_v18  ;;  %v5719_v30 = vadd.f32 %v5718_v13, %v11393_v7 }
 0x4c2   : > { %v11530_v61 = vpop.f32.mrf.mxu0  ;;  %v5722_v6 = vpop.f32.mrf.mxu1 }
 0x4c3   : > { %6245 = vst [vmem:[#allocation3 + $0x78] sm:$0xff] %v6189_v20  ;;  %v6190_v53 = vadd.f32 %v5719_v30, %v4030_v24  ;;  %6147 = vmatmul.mubr.bf16.gmra.mxu1 %v11298_v45  ;;  %v5723_v60 = vadd.f32 %v5722_v6, %v11396_v57  ;;  %v4046_v57 = vld [vmem:[#allocation3 + $0xb8] sm:$0xff] }
 0x4c4   : > { %6156 = vmatprep.mubr.bf16.mxu1 %v11313_v35  ;;  %v11535_v55 = vpop.f32.mrf.mxu0  ;;  %v5724_v1 = vpop.f32.mrf.mxu1  ;;  %v4007_v6 = vld [vmem:[#allocation3 + $0x58] sm:$0xff] }
 0x4c5   : > { %6246 = vst [vmem:[#allocation3 + $0x80] sm:$0xff] %v6190_v53  ;;  %v6197_v47 = vadd.f32 %v5723_v60, %v4037_v58  ;;  %v5725_v7 = vadd.f32 %v5724_v1, %v11403_v22  ;;  %v4008_v60 = vld [vmem:[#allocation3 + $0xe0] sm:$0xff] }
 0x4c6   : > { %v11538_v3 = vpop.f32.mrf.mxu0  ;;  %v5726_v15 = vpop.f32.mrf.mxu1 }
 0x4c7   : > { %6253 = vst [vmem:[#allocation3 + $0x168] sm:$0xff] %v6197_v47  ;;  %v6198_v51 = vadd.f32 %v5725_v7, %v4038_v26  ;;  %v5727_v45 = vadd.f32 %v5726_v15, %v11405_v23  ;;  %v4054_v23 = vld [vmem:[#allocation3 + $0xb0] sm:$0xff] }
 0x4c8   : > { %v11541_v19 = vpop.f32.mrf.mxu0  ;;  %v5728_v35 = vpop.f32.mrf.mxu1 }
 0x4c9   : > { %6254 = vst [vmem:[#allocation3 + $0x150] sm:$0xff] %v6198_v51  ;;  %v6205_v5 = vadd.f32 %v5727_v45, %v4045_v33  ;;  %v5729_v54 = vadd.f32 %v5728_v35, %v11409_v38 }
 0x4ca   : > { %v11544_v43 = vpop.f32.mrf.mxu0  ;;  %v5732_v22 = vpop.f32.mrf.mxu1 }
 0x4cb   : > { %6261 = vst [vmem:[#allocation3 + $0x1a8] sm:$0xff] %v6205_v5  ;;  %v6206_v27 = vadd.f32 %v5729_v54, %v4046_v57  ;;  %6157 = vmatmul.mubr.bf16.gmra.mxu1 %v11321_v49  ;;  %v5733_v18 = vadd.f32 %v5732_v22, %v11412_v29  ;;  %v4016_v57 = vld [vmem:[#allocation3 + $0x100] sm:$0xff] }
 0x4cc   : > { %v11548_v9 = vpop.f32.mrf.mxu0  ;;  %v5734_v21 = vpop.f32.mrf.mxu1 }
 0x4cd   : > { %6262 = vst [vmem:[#allocation3 + $0xb8] sm:$0xff] %v6206_v27  ;;  %v6213_v37 = vadd.f32 %v5733_v18, %v4053_v36  ;;  %v5735_v24 = vadd.f32 %v5734_v21, %v11418_v31  ;;  %v4015_v31 = vld [vmem:[#allocation3 + $0x1b0] sm:$0xff]  ;;  %v4023_v36 = vld [vmem:[#allocation3 + $0x48] sm:$0xff] }
 0x4ce   : > { %v5949_v13 = vpop.f32.mrf.mxu0  ;;  %v5736_v38 = vpop.f32.mrf.mxu1 }
 0x4cf   : > { %6269 = vst [vmem:[#allocation3 + $0x148] sm:$0xff] %v6213_v37  ;;  %v6214_v20 = vadd.f32 %v5735_v24, %v4054_v23  ;;  %v4024_v23 = vld [vmem:[#allocation3 + $0x60] sm:$0xff]  ;;  %v4031_v13 = vld [vmem:[#allocation3 + $0x128] sm:$0xff] }
 0x4d0   : > { %v5950_v30 = vpop.f32.mrf.mxu0  ;;  %v5737_v58 = vpop.f32.mrf.mxu1 }
 0x4d1   : > { %6270 = vst [vmem:[#allocation3 + $0xb0] sm:$0xff] %v6214_v20  ;;  %v4032_v58 = vld [vmem:[#allocation3 + $0x10] sm:$0xff] }
 0x4f2   : > { %v5844_v53 = vpop.f32.mrf.mxu1 }
 0x4f3   : > { %v5845_v49 = vadd.f32 %v5844_v53, %v11438_v44  ;;  %v11552_v29 = vpop.f32.mrf.mxu0 }
 0x4f4   : > { %v5846_v26 = vpop.f32.mrf.mxu1 }
 0x4f5   : > { %v6167_v1 = vadd.f32 %v5845_v49, %v4007_v6  ;;  %v5847_v47 = vadd.f32 %v5846_v26, %v11444_v48  ;;  %v11555_v7 = vpop.f32.mrf.mxu0 }
 0x4f6   : > { %v5848_v33 = vpop.f32.mrf.mxu1 }
 0x4f7   : > { %6223 = vst [vmem:[#allocation3 + $0x58] sm:$0xff] %v6167_v1  ;;  %v6168_v15 = vadd.f32 %v5847_v47, %v4008_v60  ;;  %v5849_v51 = vadd.f32 %v5848_v33, %v11446_v56  ;;  %v11558_v45 = vpop.f32.mrf.mxu0  ;;  %v4039_v60 = vld [vmem:[#allocation3 + $0x170] sm:$0xff] }
 0x4f8   : > { %v5850_v35 = vpop.f32.mrf.mxu1 }
 0x4f9   : > { %6224 = vst [vmem:[#allocation3 + $0xe0] sm:$0xff] %v6168_v15  ;;  %v6175_v44 = vadd.f32 %v5849_v51, %v4015_v31  ;;  %v5851_v5 = vadd.f32 %v5850_v35, %v11450_v8  ;;  %v11561_v54 = vpop.f32.mrf.mxu0  ;;  %v4040_v31 = vld [vmem:[#allocation3 + $0x160] sm:$0xff] }
 0x4fa   : > { %v5854_v48 = vpop.f32.mrf.mxu1 }
 0x4fb   : > { %6231 = vst [vmem:[#allocation3 + $0x1b0] sm:$0xff] %v6175_v44  ;;  %v6176_v22 = vadd.f32 %v5851_v5, %v4016_v57  ;;  %v5855_v27 = vadd.f32 %v5854_v48, %v11452_v42  ;;  %v11564_v18 = vpop.f32.mrf.mxu0  ;;  %v4047_v57 = vld [vmem:[#allocation3 + $0x138] sm:$0xff] }
 0x4fc   : > { %v5856_v56 = vpop.f32.mrf.mxu1 }
 0x4fd   : > { %6232 = vst [vmem:[#allocation3 + $0x100] sm:$0xff] %v6176_v22  ;;  %v6183_v21 = vadd.f32 %v5855_v27, %v4023_v36  ;;  %v5857_v37 = vadd.f32 %v5856_v56, %v11458_v50  ;;  %v11567_v24 = vpop.f32.mrf.mxu0  ;;  %v4048_v36 = vld [vmem:[#allocation3 + $0xa0] sm:$0xff] }
 0x4fe   : > { %v5858_v8 = vpop.f32.mrf.mxu1 }
 0x4ff   : > { %6239 = vst [vmem:[#allocation3 + $0x48] sm:$0xff] %v6183_v21  ;;  %v6184_v38 = vadd.f32 %v5857_v37, %v4024_v23  ;;  %v5859_v20 = vadd.f32 %v5858_v8, %v11460_v11  ;;  %v11570_v30 = vpop.f32.mrf.mxu0  ;;  %v4055_v23 = vld [vmem:[#allocation3 + $0x180] sm:$0xff] }
 0x500   : > { %v5860_v42 = vpop.f32.mrf.mxu1 }
 0x501   : > { %6240 = vst [vmem:[#allocation3 + $0x60] sm:$0xff] %v6184_v38  ;;  %v6191_v6 = vadd.f32 %v5859_v20, %v4031_v13  ;;  %v5861_v53 = vadd.f32 %v5860_v42, %v11464_v52  ;;  %v11573_v49 = vpop.f32.mrf.mxu0  ;;  %v4056_v13 = vld [vmem:[#allocation3 + $0xd8] sm:$0xff] }
 0x502   : > { %v5864_v50 = vpop.f32.mrf.mxu1 }
 0x503   : > { %6247 = vst [vmem:[#allocation3 + $0x128] sm:$0xff] %v6191_v6  ;;  %v6192_v26 = vadd.f32 %v5861_v53, %v4032_v58  ;;  %v5865_v1 = vadd.f32 %v5864_v50, %v11466_v39  ;;  %v11576_v47 = vpop.f32.mrf.mxu0 }
 0x504   : > { %v5866_v11 = vpop.f32.mrf.mxu1 }
 0x505   : > { %6248 = vst [vmem:[#allocation3 + $0x10] sm:$0xff] %v6192_v26  ;;  %v6199_v33 = vadd.f32 %v5865_v1, %v4039_v60  ;;  %v5867_v15 = vadd.f32 %v5866_v11, %v11472_v28  ;;  %v11579_v51 = vpop.f32.mrf.mxu0  ;;  %v4009_v60 = vld [vmem:[#allocation3 + $0x158] sm:$0xff]  ;;  %v4010_v26 = vld [vmem:[#allocation3 + $0x120] sm:$0xff] }
 0x506   : > { %v5868_v52 = vpop.f32.mrf.mxu1 }
 0x507   : > { %6255 = vst [vmem:[#allocation3 + $0x170] sm:$0xff] %v6199_v33  ;;  %v6200_v35 = vadd.f32 %v5867_v15, %v4040_v31  ;;  %v5869_v44 = vadd.f32 %v5868_v52, %v11474_v4  ;;  %v11582_v5 = vpop.f32.mrf.mxu0  ;;  %v4017_v33 = vld [vmem:[#allocation3 + $0x188] sm:$0xff]  ;;  %v4018_v52 = vld [vmem:[#allocation3 + $0x40] sm:$0xff] }
 0x508   : > { %v5870_v39 = vpop.f32.mrf.mxu1 }
 0x509   : > { %6256 = vst [vmem:[#allocation3 + $0x160] sm:$0xff] %v6200_v35  ;;  %v6207_v48 = vadd.f32 %v5869_v44, %v4047_v57  ;;  %v5871_v22 = vadd.f32 %v5870_v39, %v11478_v14  ;;  %v11585_v27 = vpop.f32.mrf.mxu0  ;;  %v4025_v39 = vld [vmem:[#allocation3 + $0xa8] sm:$0xff] }
 0x50a   : > { %v5874_v28 = vpop.f32.mrf.mxu1 }
 0x50b   : > { %6263 = vst [vmem:[#allocation3 + $0x138] sm:$0xff] %v6207_v48  ;;  %v6208_v56 = vadd.f32 %v5871_v22, %v4048_v36  ;;  %v5875_v21 = vadd.f32 %v5874_v28, %v11480_v41  ;;  %v11588_v37 = vpop.f32.mrf.mxu0 }
 0x50c   : > { %v5876_v4 = vpop.f32.mrf.mxu1 }
 0x50d   : > { %6264 = vst [vmem:[#allocation3 + $0xa0] sm:$0xff] %v6208_v56  ;;  %v6215_v8 = vadd.f32 %v5875_v21, %v4055_v23  ;;  %v5877_v38 = vadd.f32 %v5876_v4, %v11486_v32  ;;  %v11591_v20 = vpop.f32.mrf.mxu0  ;;  %v4026_v23 = vld [vmem:[#allocation3 + $0x110] sm:$0xff]  ;;  %v4033_v21 = vld [vmem:[#allocation3 + $0x178] sm:$0xff] }
 0x50e   : > { %v5878_v58 = vpop.f32.mrf.mxu1 }
 0x50f   : > { %6271 = vst [vmem:[#allocation3 + $0x180] sm:$0xff] %v6215_v8  ;;  %v6216_v14 = vadd.f32 %v5877_v38, %v4056_v13  ;;  %v6091_v42 = vpop.f32.mrf.mxu0  ;;  %v4034_v8 = vld [vmem:[#allocation3 + $0x28] sm:$0xff] }
 0x510   : > { %v5879_v6 = vpop.f32.mrf.mxu1 }
 0x511   : > { %6272 = vst [vmem:[#allocation3 + $0xd8] sm:$0xff] %v6216_v14  ;;  %v6092_v53 = vpop.f32.mrf.mxu0  ;;  %v4041_v14 = vld [vmem:[#allocation3 + $0xd0] sm:$0xff] }
 0x512   : > { %v4042_v53 = vld [vmem:[#allocation3 + $0xc8] sm:$0xff] }
 0x533   : > { %v5986_v50 = vpop.f32.mrf.mxu1 }
 0x534   : > { %v5987_v41 = vadd.f32 %v5986_v50, %v11502_v10 }
 0x535   : > { %v5988_v1 = vpop.f32.mrf.mxu1 }
 0x536   : > { %v6169_v31 = vadd.f32 %v5987_v41, %v4009_v60  ;;  %v5989_v11 = vadd.f32 %v5988_v1, %v11507_v0  ;;  %v4049_v41 = vld [vmem:[#allocation3 + $0x68] sm:$0xff] }
 0x537   : > { %v5990_v32 = vpop.f32.mrf.mxu1 }
 0x538   : > { %6225 = vst [vmem:[#allocation3 + $0x158] sm:$0xff] %v6169_v31  ;;  %v6170_v15 = vadd.f32 %v5989_v11, %v4010_v26  ;;  %v5991_v57 = vadd.f32 %v5990_v32, %v11510_v17  ;;  %v4050_v31 = vld [vmem:[#allocation3 + $0x20] sm:$0xff]  ;;  %v4057_v32 = vld [vmem:[#allocation3 + $0x98] sm:$0xff] }
 0x539   : > { %v5992_v35 = vpop.f32.mrf.mxu1 }
 0x53a   : > { %6226 = vst [vmem:[#allocation3 + $0x120] sm:$0xff] %v6170_v15  ;;  %v6177_v44 = vadd.f32 %v5991_v57, %v4017_v33  ;;  %v5993_v36 = vadd.f32 %v5992_v35, %v11513_v25 }
 0x53b   : > { %v5996_v48 = vpop.f32.mrf.mxu1 }
 0x53c   : > { %6233 = vst [vmem:[#allocation3 + $0x188] sm:$0xff] %v6177_v44  ;;  %v6178_v10 = vadd.f32 %v5993_v36, %v4018_v52  ;;  %v5997_v22 = vadd.f32 %v5996_v48, %v11516_v2  ;;  %v4058_v52 = vld [vmem:[#allocation3 + $0x70] sm:$0xff] }
 0x53d   : > { %v5998_v0 = vpop.f32.mrf.mxu1  ;;  %v4011_v48 = vld [vmem:[#allocation3 + $0x190] sm:$0xff] }
 0x53e   : > { %6234 = vst [vmem:[#allocation3 + $0x40] sm:$0xff] %v6178_v10  ;;  %v6185_v28 = vadd.f32 %v5997_v22, %v4025_v39  ;;  %v5999_v56 = vadd.f32 %v5998_v0, %v11521_v40  ;;  %v4012_v22 = vld [vmem:[#allocation3 + $0x108] sm:$0xff] }
 0x53f   : > { %v6000_v17 = vpop.f32.mrf.mxu1 }
 0x540   : > { %6241 = vst [vmem:[#allocation3 + $0xa8] sm:$0xff] %v6185_v28  ;;  %v6186_v13 = vadd.f32 %v5999_v56, %v4026_v23  ;;  %v6001_v4 = vadd.f32 %v6000_v17, %v11524_v63  ;;  %v4019_v28 = vld [vmem:[#allocation3 + $0xe8] sm:$0xff]  ;;  %v4020_v17 = vld [vmem:[#allocation3 + $0xf8] sm:$0xff] }
 0x541   : > { %v6002_v25 = vpop.f32.mrf.mxu1 }
 0x542   : > { %6242 = vst [vmem:[#allocation3 + $0x110] sm:$0xff] %v6186_v13  ;;  %v6193_v38 = vadd.f32 %v6001_v4, %v4033_v21  ;;  %v6003_v58 = vadd.f32 %v6002_v25, %v11527_v12  ;;  %v4027_v25 = vld [vmem:[#allocation3 + $0x198] sm:$0xff] }
 0x543   : > { %v6006_v2 = vpop.f32.mrf.mxu1 }
 0x544   : > { %6249 = vst [vmem:[#allocation3 + $0x178] sm:$0xff] %v6193_v38  ;;  %v6194_v42 = vadd.f32 %v6003_v58, %v4034_v8  ;;  %v6007_v6 = vadd.f32 %v6006_v2, %v11530_v61 }
 0x545   : > { %v6008_v40 = vpop.f32.mrf.mxu1 }
 0x546   : > { %6250 = vst [vmem:[#allocation3 + $0x28] sm:$0xff] %v6194_v42  ;;  %v6201_v60 = vadd.f32 %v6007_v6, %v4041_v14  ;;  %v6009_v50 = vadd.f32 %v6008_v40, %v11535_v55  ;;  %v4028_v14 = vld [vmem:[#allocation3 + $0x88] sm:$0xff]  ;;  %v4035_v6 = vld [vmem:[#allocation3 + $0x30] sm:$0xff] }
 0x547   : > { %v6010_v63 = vpop.f32.mrf.mxu1 }
 0x548   : > { %6257 = vst [vmem:[#allocation3 + $0xd0] sm:$0xff] %v6201_v60  ;;  %v6202_v26 = vadd.f32 %v6009_v50, %v4042_v53  ;;  %v6011_v1 = vadd.f32 %v6010_v63, %v11538_v3  ;;  %v4036_v60 = vld [vmem:[#allocation3 + $0x18] sm:$0xff] }
 0x549   : > { %v6012_v12 = vpop.f32.mrf.mxu1  ;;  %v4043_v63 = vld [vmem:[#allocation3 + $0x118] sm:$0xff] }
 0x54a   : > { %6258 = vst [vmem:[#allocation3 + $0xc8] sm:$0xff] %v6202_v26  ;;  %v6209_v11 = vadd.f32 %v6011_v1, %v4049_v41  ;;  %v6013_v33 = vadd.f32 %v6012_v12, %v11541_v19 }
 0x54b   : > { %v6016_v61 = vpop.f32.mrf.mxu1 }
 0x54c   : > { %6265 = vst [vmem:[#allocation3 + $0x68] sm:$0xff] %v6209_v11  ;;  %v6210_v15 = vadd.f32 %v6013_v33, %v4050_v31  ;;  %v6017_v57 = vadd.f32 %v6016_v61, %v11544_v43  ;;  %v4044_v31 = vld [vmem:[#allocation3 + $0x90] sm:$0xff] }
 0x54d   : > { %v6018_v55 = vpop.f32.mrf.mxu1  ;;  %v4051_v33 = vld [vmem:[#allocation3 + $0xf0] sm:$0xff] }
 0x54e   : > { %6266 = vst [vmem:[#allocation3 + $0x20] sm:$0xff] %v6210_v15  ;;  %v6217_v35 = vadd.f32 %v6017_v57, %v4057_v32  ;;  %v6019_v44 = vadd.f32 %v6018_v55, %v11548_v9  ;;  %v4052_v15 = vld [vmem:[#allocation3 + $0x50] sm:$0xff]  ;;  %v4059_v55 = vld [vmem:[#allocation3 + $0x1b8] sm:$0xff] }
 0x54f   : > { %v6020_v36 = vpop.f32.mrf.mxu1 }
 0x550   : > { %6273 = vst [vmem:[#allocation3 + $0x98] sm:$0xff] %v6217_v35  ;;  %v6218_v3 = vadd.f32 %v6019_v44, %v4058_v52  ;;  %v4060_v36 = vld [vmem:[#allocation3 + $0x1a0] sm:$0xff] }
 0x551   : > { %v6021_v39 = vpop.f32.mrf.mxu1 }
 0x552   : > { %6274 = vst [vmem:[#allocation3 + $0x70] sm:$0xff] %v6218_v3 }
 0x573   : > { %v6128_v10 = vpop.f32.mrf.mxu1 }
 0x574   : > { %v6129_v19 = vadd.f32 %v6128_v10, %v11552_v29 }
 0x575   : > { %v6130_v23 = vpop.f32.mrf.mxu1 }
 0x576   : > { %v6171_v0 = vadd.f32 %v6129_v19, %v4011_v48  ;;  %v6131_v43 = vadd.f32 %v6130_v23, %v11555_v7 }
 0x577   : > { %v6132_v56 = vpop.f32.mrf.mxu1 }
 0x578   : > { %6227 = vst [vmem:[#allocation3 + $0x190] sm:$0xff] %v6171_v0  ;;  %v6172_v21 = vadd.f32 %v6131_v43, %v4012_v22  ;;  %v6133_v9 = vadd.f32 %v6132_v56, %v11558_v45 }
 0x579   : > { %v6134_v13 = vpop.f32.mrf.mxu1 }
 0x57a   : > { %6228 = vst [vmem:[#allocation3 + $0x108] sm:$0xff] %v6172_v21  ;;  %v6179_v4 = vadd.f32 %v6133_v9, %v4019_v28  ;;  %v6135_v8 = vadd.f32 %v6134_v13, %v11561_v54 }
 0x57b   : > { %v6138_v38 = vpop.f32.mrf.mxu1 }
 0x57c   : > { %6235 = vst [vmem:[#allocation3 + $0xe8] sm:$0xff] %v6179_v4  ;;  %v6180_v29 = vadd.f32 %v6135_v8, %v4020_v17  ;;  %v6139_v58 = vadd.f32 %v6138_v38, %v11564_v18 }
 0x57d   : > { %v6140_v7 = vpop.f32.mrf.mxu1 }
 0x57e   : > { %6236 = vst [vmem:[#allocation3 + $0xf8] sm:$0xff] %v6180_v29  ;;  %v6187_v2 = vadd.f32 %v6139_v58, %v4027_v25  ;;  %v6141_v42 = vadd.f32 %v6140_v7, %v11567_v24 }
 0x57f   : > { %v6142_v45 = vpop.f32.mrf.mxu1 }
 0x580   : > { %6243 = vst [vmem:[#allocation3 + $0x198] sm:$0xff] %v6187_v2  ;;  %v6188_v53 = vadd.f32 %v6141_v42, %v4028_v14  ;;  %v6143_v40 = vadd.f32 %v6142_v45, %v11570_v30 }
 0x581   : > { %v6144_v54 = vpop.f32.mrf.mxu1 }
 0x582   : > { %6244 = vst [vmem:[#allocation3 + $0x88] sm:$0xff] %v6188_v53  ;;  %v6195_v50 = vadd.f32 %v6143_v40, %v4035_v6  ;;  %v6145_v41 = vadd.f32 %v6144_v54, %v11573_v49 }
 0x583   : > { %v6148_v18 = vpop.f32.mrf.mxu1 }
 0x584   : > { %6251 = vst [vmem:[#allocation3 + $0x30] sm:$0xff] %v6195_v50  ;;  %v6196_v26 = vadd.f32 %v6145_v41, %v4036_v60  ;;  %v6149_v1 = vadd.f32 %v6148_v18, %v11576_v47 }
 0x585   : > { %v6150_v24 = vpop.f32.mrf.mxu1 }
 0x586   : > { %6252 = vst [vmem:[#allocation3 + $0x18] sm:$0xff] %v6196_v26  ;;  %v6203_v12 = vadd.f32 %v6149_v1, %v4043_v63  ;;  %v6151_v11 = vadd.f32 %v6150_v24, %v11579_v51 }
 0x587   : > { %v6152_v30 = vpop.f32.mrf.mxu1 }
 0x588   : > { %6259 = vst [vmem:[#allocation3 + $0x118] sm:$0xff] %v6203_v12  ;;  %v6204_v32 = vadd.f32 %v6151_v11, %v4044_v31  ;;  %v6153_v61 = vadd.f32 %v6152_v30, %v11582_v5 }
 0x589   : > { %v6154_v49 = vpop.f32.mrf.mxu1 }
 0x58a   : > { %6260 = vst [vmem:[#allocation3 + $0x90] sm:$0xff] %v6204_v32  ;;  %v6211_v57 = vadd.f32 %v6153_v61, %v4051_v33  ;;  %v6155_v52 = vadd.f32 %v6154_v49, %v11585_v27 }
 0x58b   : > { %v6158_v47 = vpop.f32.mrf.mxu1 }
 0x58c   : > { %6267 = vst [vmem:[#allocation3 + $0xf0] sm:$0xff] %v6211_v57  ;;  %v6212_v35 = vadd.f32 %v6155_v52, %v4052_v15  ;;  %v6159_v44 = vadd.f32 %v6158_v47, %v11588_v37 }
 0x58d   : > { %v6160_v51 = vpop.f32.mrf.mxu1 }
 0x58e   : > { %6268 = vst [vmem:[#allocation3 + $0x50] sm:$0xff] %v6212_v35  ;;  %v6219_v3 = vadd.f32 %v6159_v44, %v4059_v55  ;;  %v6161_v39 = vadd.f32 %v6160_v51, %v11591_v20  ;;  %6280 = sbr.rel (%p8679_p2) target bundleno = 2135 (0x857), region = 120 }
 0x58f   : > { %v6162_v48 = vpop.f32.mrf.mxu1 }
 0x590   : > { %6275 = vst [vmem:[#allocation3 + $0x1b8] sm:$0xff] %v6219_v3  ;;  %v6220_v5 = vadd.f32 %v6161_v39, %v4060_v36 }
 0x591   : > { %v6163_v10 = vpop.f32.mrf.mxu1 }
 0x592   : > { %6276 = vst [vmem:[#allocation3 + $0x1a0] sm:$0xff] %v6220_v5 }
 0x593   : > { %v6330_v27 = vld [vmem:[#allocation3 + $0xb0] sm:$0xff]  ;;  %v6329_v22 = vld [vmem:[#allocation3 + $0x148] sm:$0xff]  ;;  %vm6528_vm0 = vcmask 1043456   ;;  %v6322_v0 = vld [vmem:[#allocation3 + $0xb8] sm:$0xff]  ;;  %v10034_v28 = vmov 0   ;;  %v6361_v4 = vsub.s32 5, %v10854_v34 }
 0x594   : > { %v11622_v19 = vld [vmem:[#allocation11] sm:$0xff]  ;;  %v6313_v43 = vld [vmem:[#allocation3 + $0x168] sm:$0xff]  ;;  %6585 = vmatprep.mubr.bf16.mxu1 %v10034_v28  ;;  %v6298_v21 = vld [vmem:[#allocation3 + $0x140] sm:$0xff]  ;;  %v6357_v8 = vsub.s32 4, %v10854_v34  ;;  %6667 = vmatprep.mubr.bf16.mxu0 %v10034_v28  ;;  %vm6524_vm1 = vcmask 457728  }
 0x595   : > { %v6346_v37 = vrot.slane %v11622_v19, %v10870_v46  ;;  %v6342_v23 = vrot.slane %v11622_v19, %v10863_v62  ;;  %v6314_v20 = vld [vmem:[#allocation3 + $0x150] sm:$0xff]  ;;  %v6321_v56 = vld [vmem:[#allocation3 + $0x1a8] sm:$0xff]  ;;  %v6306_v9 = vld [vmem:[#allocation3 + $0x80] sm:$0xff]  ;;  %v11632_v17 = vrot.slane %v11622_v19, %v1959_v16  ;;  %v11637_v13 = vrot.slane %v11622_v19, %v1955_v59 }
 0x596   : > { %v6297_v42 = vld [vmem:[#allocation3 + $0x130] sm:$0xff]  ;;  %v6305_v40 = vld [vmem:[#allocation3 + $0x78] sm:$0xff]  ;;  %v6282_v60 = vld [vmem:[#allocation3 + $0xc0] sm:$0xff] }
 0x597   : > { %v6428_v25 = vadd.f32 %v6346_v37, %v6330_v27  ;;  %v6427_v38 = vadd.f32 %v6342_v23, %v6329_v22  ;;  %v6412_v29 = vadd.f32 %v6346_v37, %v6314_v20  ;;  %v6420_v58 = vadd.f32 %v6346_v37, %v6322_v0  ;;  %v6290_v18 = vld [vmem:[#allocation3 + $0x38] sm:$0xff]  ;;  %v6281_v26 = vld [vmem:[#allocation3] sm:$0xff]  ;;  %v6289_v11 = vld [vmem:[#allocation3 + $0x8] sm:$0xff] }
 0x598   : > { %v6411_v14 = vadd.f32 %v6342_v23, %v6313_v43  ;;  %v6419_v7 = vadd.f32 %v6342_v23, %v6321_v56  ;;  %v6396_v2 = vadd.f32 %v6346_v37, %v6298_v21  ;;  %v6404_v16 = vadd.f32 %v6346_v37, %v6306_v9  ;;  %v6332_v33 = vld [vmem:[#allocation3 + $0xd8] sm:$0xff]  ;;  %v6331_v49 = vld [vmem:[#allocation3 + $0x180] sm:$0xff]  ;;  %v6315_v48 = vld [vmem:[#allocation3 + $0x170] sm:$0xff] }
 0x599   : > { %v6484_v6 = vmax.f32 %v6428_v25, 0.0  ;;  %v6483_v45 = vmax.f32 %v6427_v38, 0.0  ;;  %v6468_v53 = vmax.f32 %v6412_v29, 0.0  ;;  %v6476_v59 = vmax.f32 %v6420_v58, 0.0  ;;  %v6316_v57 = vld [vmem:[#allocation3 + $0x160] sm:$0xff]  ;;  %v6323_v20 = vld [vmem:[#allocation3 + $0x138] sm:$0xff] }
 0x59a   : > { %v6467_v54 = vmax.f32 %v6411_v14, 0.0  ;;  %v6475_v50 = vmax.f32 %v6419_v7, 0.0  ;;  %v6452_v41 = vmax.f32 %v6396_v2, 0.0  ;;  %v6460_v63 = vmax.f32 %v6404_v16, 0.0  ;;  %v6324_v44 = vld [vmem:[#allocation3 + $0xa0] sm:$0xff]  ;;  %v6308_v21 = vld [vmem:[#allocation3 + $0x10] sm:$0xff] }
 0x59b   : > { %v6516_v1 = vpack.c.bf16 %v6484_v6, %v6484_v6  ;;  %v6515_v31 = vpack.c.bf16 %v6483_v45, %v6483_v45  ;;  %v6508_v24 = vpack.c.bf16 %v6476_v59, %v6468_v53  ;;  %v6395_v12 = vadd.f32 %v6342_v23, %v6297_v42  ;;  %v6300_v56 = vld [vmem:[#allocation3 + $0x60] sm:$0xff]  ;;  %v6299_v58 = vld [vmem:[#allocation3 + $0x48] sm:$0xff] }
 0x59c   : > { %v6507_v30 = vpack.c.bf16 %v6475_v50, %v6467_v54  ;;  %v6500_v32 = vpack.c.bf16 %v6460_v63, %v6452_v41  ;;  %v6403_v61 = vadd.f32 %v6342_v23, %v6305_v40  ;;  %v6380_v15 = vadd.f32 %v6346_v37, %v6282_v60  ;;  %v6307_v14 = vld [vmem:[#allocation3 + $0x128] sm:$0xff]  ;;  %v6284_v6 = vld [vmem:[#allocation3 + $0xe0] sm:$0xff] }
 0x59d   : > { %8680 = vmatprep.subr.msk.bf16.mxu1 %vm6528_vm0, %v6516_v1  ;;  %v6530_v52 = vsel %vm6528_vm0, %v6515_v31, 0  ;;  %v6451_v55 = vmax.f32 %v6395_v12, 0.0  ;;  %v6388_v47 = vadd.f32 %v6346_v37, %v6290_v18  ;;  %v6379_v35 = vadd.f32 %v6342_v23, %v6281_v26  ;;  %v6292_v60 = vld [vmem:[#allocation3 + $0x100] sm:$0xff]  ;;  %v6283_v18 = vld [vmem:[#allocation3 + $0x58] sm:$0xff]  ;;  %v6291_v26 = vld [vmem:[#allocation3 + $0x1b0] sm:$0xff] }
 0x59e   : > { %6562 = vmatpush1.bf16.msra.mxu1 %v6530_v52  ;;  %v6459_v36 = vmax.f32 %v6403_v61, 0.0  ;;  %v6436_v51 = vmax.f32 %v6380_v15, 0.0  ;;  %v6387_v3 = vadd.f32 %v6342_v23, %v6289_v11  ;;  %v6430_v39 = vadd.f32 %v11632_v17, %v6332_v33  ;;  %v6334_v61 = vld [vmem:[#allocation3 + $0x70] sm:$0xff]  ;;  %v6333_v15 = vld [vmem:[#allocation3 + $0x98] sm:$0xff] }
 0x59f   : > { %6563 = vmatprep.subr.bf16.mxu1 %v6508_v24  ;;  %v6444_v5 = vmax.f32 %v6388_v47, 0.0  ;;  %v6435_v10 = vmax.f32 %v6379_v35, 0.0  ;;  %v6429_v27 = vadd.f32 %v11637_v13, %v6331_v49  ;;  %v6414_v22 = vadd.f32 %v11632_v17, %v6316_v57  ;;  %v6318_v47 = vld [vmem:[#allocation3 + $0xc8] sm:$0xff]  ;;  %v6326_v35 = vld [vmem:[#allocation3 + $0x20] sm:$0xff] }
 0x5a0   : > { %v6443_v0 = vmax.f32 %v6387_v3, 0.0  ;;  %v6486_v43 = vmax.f32 %v6430_v39, 0.0  ;;  %v6422_v37 = vadd.f32 %v11632_v17, %v6324_v44  ;;  %v6369_v9 = vsub.s32 7, %v10854_v34  ;;  %v6317_v44 = vld [vmem:[#allocation3 + $0xd0] sm:$0xff]  ;;  %v6325_v39 = vld [vmem:[#allocation3 + $0x68] sm:$0xff] }
 0x5a1   : > { %v6499_v23 = vpack.c.bf16 %v6459_v36, %v6451_v55  ;;  %v6485_v25 = vmax.f32 %v6429_v27, 0.0  ;;  %v6470_v38 = vmax.f32 %v6414_v22, 0.0  ;;  %v6413_v29 = vadd.f32 %v11637_v13, %v6315_v48  ;;  %v11681_v22 = vld [vmem:[#allocation12] sm:$0xf] }
 0x5a2   : > { %6564 = vmatpush1.bf16.msra.mxu1 %v6507_v30  ;;  %v6492_v7 = vpack.c.bf16 %v6444_v5, %v6436_v51  ;;  %v6491_v2 = vpack.c.bf16 %v6443_v0, %v6435_v10  ;;  %v6478_v16 = vmax.f32 %v6422_v37, 0.0  ;;  %v6421_v42 = vadd.f32 %v11637_v13, %v6323_v20  ;;  %v6302_v10 = vld [vmem:[#allocation3 + $0x110] sm:$0xff] }
 0x5a3   : > { %6565 = vmatprep.subr.bf16.mxu1 %v6500_v32  ;;  %v6517_v45 = vpack.c.bf16 %v6485_v25, %v6485_v25  ;;  %v6469_v53 = vmax.f32 %v6413_v29, 0.0  ;;  %v6398_v59 = vadd.f32 %v11632_v17, %v6300_v56  ;;  %v6406_v40 = vadd.f32 %v11632_v17, %v6308_v21  ;;  %v6301_v25 = vld [vmem:[#allocation3 + $0xa8] sm:$0xff] }
 0x5a4   : > { %v6518_v54 = vpack.c.bf16 %v6486_v43, %v6486_v43  ;;  %v6477_v50 = vmax.f32 %v6421_v42, 0.0  ;;  %v6397_v41 = vadd.f32 %v11637_v13, %v6299_v58  ;;  %v6405_v63 = vadd.f32 %v11637_v13, %v6307_v14  ;;  %v6310_v43 = vld [vmem:[#allocation3 + $0x28] sm:$0xff]  ;;  %v6309_v14 = vld [vmem:[#allocation3 + $0x178] sm:$0xff]  ;;  %v6336_v42 = vld [vmem:[#allocation3 + $0x1a0] sm:$0xff] }
 0x5a5   : > { %v6510_v1 = vpack.c.bf16 %v6478_v16, %v6470_v38  ;;  %v6454_v31 = vmax.f32 %v6398_v59, 0.0  ;;  %v6462_v24 = vmax.f32 %v6406_v40, 0.0  ;;  %v6382_v12 = vadd.f32 %v11632_v17, %v6284_v6  ;;  %v6335_v6 = vld [vmem:[#allocation3 + $0x1b8] sm:$0xff] }
 0x5a6   : > { %6566 = vmatpush1.bf16.msra.mxu1 %v6499_v23  ;;  %v6536_v11 = vsel %vm6528_vm0, %v6517_v45, 0  ;;  %v6453_v33 = vmax.f32 %v6397_v41, 0.0  ;;  %v6461_v30 = vmax.f32 %v6405_v63, 0.0  ;;  %v6390_v32 = vadd.f32 %v11632_v17, %v6292_v60  ;;  %v6286_v60 = vld [vmem:[#allocation3 + $0x120] sm:$0xff] }
 0x5a7   : > { %6567 = vmatprep.subr.bf16.mxu1 %v6492_v7  ;;  %v11658_v49 = vpack.c.bf16 %v6477_v50, %v6469_v53  ;;  %v6438_v57 = vmax.f32 %v6382_v12, 0.0  ;;  %v11661_v52 = vadd.f32 %v11637_v13, %v6283_v18  ;;  %v11664_v55 = vadd.f32 %v11637_v13, %v6291_v26  ;;  %v6285_v26 = vld [vmem:[#allocation3 + $0x158] sm:$0xff] }
 0x5a8   : > { %v11666_v36 = vpack.c.bf16 %v6462_v24, %v6454_v31  ;;  %v6446_v51 = vmax.f32 %v6390_v32, 0.0  ;;  %v6362_v17 = vrot.slane %v11622_v19, %v6361_v4  ;;  %v6358_v3 = vrot.slane %v11622_v19, %v6357_v8  ;;  %v6293_v31 = vld [vmem:[#allocation3 + $0x188] sm:$0xff] }
 0x5a9   : > { %v11674_v48 = vpack.c.bf16 %v6461_v30, %v6453_v33  ;;  %v6437_v13 = vmax.f32 %v11661_v52, 0.0  ;;  %v6445_v5 = vmax.f32 %v11664_v55, 0.0  ;;  %v11679_v27 = vrot.slane %v11622_v19, %v6369_v9  ;;  %v6320_v30 = vld [vmem:[#allocation3 + $0x90] sm:$0xff] }
 0x5aa   : > { %6568 = vmatpush1.bf16.msra.mxu1 %v6491_v2  ;;  %v6432_v20 = vadd.f32 %v6362_v17, %v6334_v61  ;;  %v6431_v4 = vadd.f32 %v6358_v3, %v6333_v15  ;;  %v6416_v0 = vadd.f32 %v6362_v17, %v6318_v47  ;;  %v6365_v8 = vsub.s32 6, %v10854_v34 }
 0x5ab   : > { %8682 = vmatprep.subr.msk.bf16.mxu1 %vm6528_vm0, %v6518_v54  ;;  %v11685_v37 = vpack.c.bf16 %v6446_v51, %v6438_v57  ;;  %v6424_v56 = vadd.f32 %v6362_v17, %v6326_v35  ;;  %v6415_v21 = vadd.f32 %v6358_v3, %v6317_v44  ;;  %v6423_v23 = vadd.f32 %v6358_v3, %v6325_v39  ;;  %v6294_v54 = vld [vmem:[#allocation3 + $0x40] sm:$0xff]  ;;  %v6328_v44 = vld [vmem:[#allocation3 + $0x50] sm:$0xff]  ;;  %v6319_v51 = vld [vmem:[#allocation3 + $0x118] sm:$0xff] }
 0x5ac   : > { %v6488_v38 = vmax.f32 %v6432_v20, 0.0  ;;  %v6487_v9 = vmax.f32 %v6431_v4, 0.0  ;;  %v6472_v29 = vmax.f32 %v6416_v0, 0.0  ;;  %v6400_v58 = vadd.f32 %v6362_v17, %v6302_v10  ;;  %v6327_v4 = vld [vmem:[#allocation3 + $0xf0] sm:$0xff] }
 0x5ad   : > { %8681 = vmatmul.mubr.msk.bf16.vlgmr.msra.gmra.mxu1 %vm6524_vm1, %v11681_v22  ;;  %v6480_v7 = vmax.f32 %v6424_v56, 0.0  ;;  %v6471_v2 = vmax.f32 %v6415_v21, 0.0  ;;  %v6479_v16 = vmax.f32 %v6423_v23, 0.0  ;;  %v6408_v34 = vadd.f32 %v6362_v17, %v6310_v43  ;;  %v6304_v43 = vld [vmem:[#allocation3 + $0x88] sm:$0xff] }
 0x5ae   : > { %6603 = vmatpush1.bf16.msra.mxu1 %v6536_v11  ;;  %6626 = vmatprep.mubr.bf16.mxu1 %v10034_v28  ;;  %v6520_v45 = vpack.c.bf16 %v6488_v38, %v6488_v38  ;;  %v6519_v53 = vpack.c.bf16 %v6487_v9, %v6487_v9  ;;  %v6456_v59 = vmax.f32 %v6400_v58, 0.0  ;;  %v6399_v40 = vadd.f32 %v6358_v3, %v6301_v25 }
 0x5af   : > { %6604 = vmatprep.subr.bf16.mxu1 %v6510_v1  ;;  %v6512_v50 = vpack.c.bf16 %v6480_v7, %v6472_v29  ;;  %v6511_v41 = vpack.c.bf16 %v6479_v16, %v6471_v2  ;;  %v6464_v63 = vmax.f32 %v6408_v34, 0.0  ;;  %v6407_v18 = vadd.f32 %v6358_v3, %v6309_v14  ;;  %v6288_v14 = vld [vmem:[#allocation3 + $0x108] sm:$0xff]  ;;  %v6296_v7 = vld [vmem:[#allocation3 + $0xf8] sm:$0xff]  ;;  %v6287_v34 = vld [vmem:[#allocation3 + $0x190] sm:$0xff] }
 0x5b0   : > { %8684 = vmatprep.subr.msk.bf16.mxu0 %vm6528_vm0, %v6520_v45  ;;  %v6542_v24 = vsel %vm6528_vm0, %v6519_v53, 0  ;;  %v6455_v12 = vmax.f32 %v6399_v40, 0.0  ;;  %v6434_v11 = vadd.f32 %v11679_v27, %v6336_v42  ;;  %v11694_v33 = vrot.slane %v11622_v19, %v6365_v8  ;;  %v6312_v8 = vld [vmem:[#allocation3 + $0x18] sm:$0xff]  ;;  %v6295_v53 = vld [vmem:[#allocation3 + $0xe8] sm:$0xff] }
 0x5b1   : > { %6644 = vmatpush1.bf16.msra.mxu0 %v6542_v24  ;;  %v6504_v32 = vpack.c.bf16 %v6464_v63, %v6456_v59  ;;  %v6463_v1 = vmax.f32 %v6407_v18, 0.0  ;;  %v6384_v61 = vadd.f32 %v6362_v17, %v6286_v60  ;;  %v6392_v15 = vadd.f32 %v6362_v17, %v6294_v54  ;;  %v9452_v63 = vld [vmem:[#allocation14 + $0x70] ss:$8 sps:$4 sm:$0xff]  }
 0x5b2   : > { %6605 = vmatpush1.bf16.msra.mxu1 %v11658_v49  ;;  %6645 = vmatprep.subr.bf16.mxu0 %v6512_v50  ;;  %v6433_v57 = vadd.f32 %v11694_v33, %v6335_v6  ;;  %v6383_v47 = vadd.f32 %v6358_v3, %v6285_v26  ;;  %v6391_v35 = vadd.f32 %v6358_v3, %v6293_v31  ;;  %v6490_v39 = vmax.f32 %v6434_v11, 0.0  ;;  %v9454_v50 = vld [vmem:[#allocation14 + $0x74] ss:$8 sps:$4 sm:$0xff]  }
 0x5b3   : > { %6606 = vmatprep.subr.bf16.mxu1 %v11666_v36  ;;  %v6440_v19 = vmax.f32 %v6384_v61, 0.0  ;;  %v6448_v10 = vmax.f32 %v6392_v15, 0.0  ;;  %v6418_v20 = vadd.f32 %v11679_v27, %v6320_v30  ;;  %v6493_v49 = vpack.c.bf16 %v6445_v5, %v6437_v13  ;;  %v6303_v13 = vld [vmem:[#allocation3 + $0x198] sm:$0xff]  ;;  %v6311_v5 = vld [vmem:[#allocation3 + $0x30] sm:$0xff] }
 0x5b4   : > { %v6503_v17 = vpack.c.bf16 %v6463_v1, %v6455_v12  ;;  %v6489_v0 = vmax.f32 %v6433_v57, 0.0  ;;  %v6439_v3 = vmax.f32 %v6383_v47, 0.0  ;;  %v6447_v56 = vmax.f32 %v6391_v35, 0.0  ;;  %v9457_v12 = vld [vmem:[#allocation14 + $0x64] ss:$8 sps:$4 sm:$0xff]  }
 0x5b5   : > { %6646 = vmatpush1.bf16.msra.mxu0 %v6511_v41  ;;  %v6426_v36 = vadd.f32 %v11679_v27, %v6328_v44  ;;  %v6417_v21 = vadd.f32 %v11694_v33, %v6319_v51  ;;  %v6496_v25 = vpack.c.bf16 %v6448_v10, %v6440_v19  ;;  %v6474_v52 = vmax.f32 %v6418_v20, 0.0  ;;  %v9460_v57 = vld [vmem:[#allocation14 + $0x54] ss:$8 sps:$4 sm:$0xff]   ;;  %v9463_v35 = vld [vmem:[#allocation14 + $0x44] ss:$8 sps:$4 sm:$0xff]  }
 0x5b6   : > { %6607 = vmatpush1.bf16.msra.mxu1 %v11674_v48  ;;  %6647 = vmatprep.subr.bf16.mxu0 %v6504_v32  ;;  %v6521_v23 = vpack.c.bf16 %v6489_v0, %v6489_v0  ;;  %v6425_v55 = vadd.f32 %v11694_v33, %v6327_v4  ;;  %v6522_v38 = vpack.c.bf16 %v6490_v39, %v6490_v39  ;;  %v9455_v32 = vld [vmem:[#allocation14 + $0x60] ss:$8 sps:$4 sm:$0xff]   ;;  %v9469_v44 = vld [vmem:[#allocation14 + $0x174] ss:$8 sps:$4 sm:$0xff]   ;;  %v9467_v19 = vld [vmem:[#allocation14 + $0x170] ss:$8 sps:$4 sm:$0xff]  }
 0x5b7   : > { %6608 = vmatprep.subr.bf16.mxu1 %v11685_v37  ;;  %v6482_v9 = vmax.f32 %v6426_v36, 0.0  ;;  %v6402_v29 = vadd.f32 %v11679_v27, %v6304_v43  ;;  %v6410_v58 = vadd.f32 %v11679_v27, %v6312_v8  ;;  %v6495_v48 = vpack.c.bf16 %v6447_v56, %v6439_v3  ;;  %v9461_v51 = vld [vmem:[#allocation14 + $0x40] ss:$8 sps:$4 sm:$0xff]   ;;  %v9466_v39 = vld [vmem:[#allocation14 + $0x34] ss:$8 sps:$4 sm:$0xff]  }
 0x5b8   : > { %v6473_v2 = vmax.f32 %v6417_v21, 0.0  ;;  %v6481_v16 = vmax.f32 %v6425_v55, 0.0  ;;  %v6548_v42 = vsel %vm6528_vm0, %v6521_v23, 0  ;;  %v6401_v37 = vadd.f32 %v11694_v33, %v6303_v13  ;;  %v9464_v10 = vld [vmem:[#allocation14 + $0x30] ss:$8 sps:$4 sm:$0xff]  }
 0x5b9   : > { %6648 = vmatpush1.bf16.msra.mxu0 %v6503_v17  ;;  %v6514_v6 = vpack.c.bf16 %v6482_v9, %v6474_v52  ;;  %v6409_v45 = vadd.f32 %v11694_v33, %v6311_v5  ;;  %v6458_v59 = vmax.f32 %v6402_v29, 0.0  ;;  %v6466_v40 = vmax.f32 %v6410_v58, 0.0  ;;  %v9475_v20 = vld [vmem:[#allocation14 + $0x164] ss:$8 sps:$4 sm:$0xff]   ;;  %v9481_v17 = vld [vmem:[#allocation14 + $0x154] ss:$8 sps:$4 sm:$0xff]  }
 0x5ba   : > { %6609 = vmatpush1.bf16.msra.mxu1 %v6493_v49  ;;  %6649 = vmatprep.subr.bf16.mxu0 %v6496_v25  ;;  %v6386_v60 = vadd.f32 %v11679_v27, %v6288_v14  ;;  %v6394_v54 = vadd.f32 %v11679_v27, %v6296_v7  ;;  %v6513_v41 = vpack.c.bf16 %v6481_v16, %v6473_v2  ;;  %v6457_v18 = vmax.f32 %v6401_v37, 0.0  ;;  %v9472_v4 = vld [vmem:[#allocation14 + $0x24] ss:$8 sps:$4 sm:$0xff]   ;;  %v9473_v49 = vld [vmem:[#allocation14 + $0x160] ss:$8 sps:$4 sm:$0xff]  }
 0x5bb   : > { %8686 = vmatprep.subr.msk.bf16.mxu1 %vm6528_vm0, %v6522_v38  ;;  %v6465_v26 = vmax.f32 %v6409_v45, 0.0  ;;  %v6385_v31 = vadd.f32 %v11694_v33, %v6287_v34  ;;  %v6393_v24 = vadd.f32 %v11694_v33, %v6295_v53  ;;  %v6506_v11 = vpack.c.bf16 %v6466_v40, %v6458_v59  ;;  %v9470_v0 = vld [vmem:[#allocation14 + $0x20] ss:$8 sps:$4 sm:$0xff]   ;;  %v9478_v43 = vld [vmem:[#allocation14 + $0x14] ss:$8 sps:$4 sm:$0xff]  }
 0x5bc   : > { %v6442_v27 = vmax.f32 %v6386_v60, 0.0  ;;  %v6450_v30 = vmax.f32 %v6394_v54, 0.0  ;;  %v9479_v8 = vld [vmem:[#allocation14 + $0x150] ss:$8 sps:$4 sm:$0xff]   ;;  %v9487_v3 = vld [vmem:[#allocation14 + $0x144] ss:$8 sps:$4 sm:$0xff]  }
 0x5bd   : > { %8683 = vmatmul.mubr.msk.bf16.vlgmr.msra.gmra.mxu1 %vm6524_vm1, %v11681_v22  ;;  %6650 = vmatpush1.bf16.msra.mxu0 %v6495_v48  ;;  %v6505_v1 = vpack.c.bf16 %v6465_v26, %v6457_v18  ;;  %v6441_v61 = vmax.f32 %v6385_v31, 0.0  ;;  %v6449_v15 = vmax.f32 %v6393_v24, 0.0  ;;  %v9476_v56 = vld [vmem:[#allocation14 + $0x10] ss:$8 sps:$4 sm:$0xff]   ;;  %v9484_v36 = vld [vmem:[#allocation14 + $0x4] ss:$8 sps:$4 sm:$0xff]  }
 0x5be   : > { %6685 = vmatpush1.bf16.msra.mxu1 %v6548_v42  ;;  %6708 = vmatprep.mubr.bf16.mxu1 %v10034_v28  ;;  %v6498_v33 = vpack.c.bf16 %v6450_v30, %v6442_v27  ;;  %v9458_v28 = vld [vmem:[#allocation14 + $0x50] ss:$8 sps:$4 sm:$0xff]   ;;  %v9485_v21 = vld [vmem:[#allocation14 + $0x140] ss:$8 sps:$4 sm:$0xff]   ;;  %v9493_v23 = vld [vmem:[#allocation14 + $0x134] ss:$8 sps:$4 sm:$0xff]  }
 0x5bf   : > { %6686 = vmatprep.subr.bf16.mxu1 %v6514_v6  ;;  %7505 = vmatprep.subr.bf16.mxu0 %v9454_v50  ;;  %v6497_v47 = vpack.c.bf16 %v6449_v15, %v6441_v61  ;;  %v9490_v25 = vld [vmem:[#allocation14 + $0xf4] ss:$8 sps:$4 sm:$0xff]   ;;  %v9491_v52 = vld [vmem:[#allocation14 + $0x130] ss:$8 sps:$4 sm:$0xff]   ;;  %v9499_v55 = vld [vmem:[#allocation14 + $0x124] ss:$8 sps:$4 sm:$0xff]  }
 0x5c0   : > { %8685 = vmatmul.mubr.msk.bf16.vlgmr.msra.gmra.mxu0 %vm6524_vm1, %v11681_v22  ;;  %v9488_v13 = vld [vmem:[#allocation14 + $0xf0] ss:$8 sps:$4 sm:$0xff]   ;;  %v9496_v5 = vld [vmem:[#allocation14 + $0xe4] ss:$8 sps:$4 sm:$0xff]   ;;  %v9497_v38 = vld [vmem:[#allocation14 + $0x120] ss:$8 sps:$4 sm:$0xff]  }
 0x5c1   : > { %7506 = vmatpush1.bf16.msra.mxu0 %v9452_v63  ;;  %v9505_v9 = vld [vmem:[#allocation14 + $0x114] ss:$8 sps:$4 sm:$0xff]   ;;  %v9494_v29 = vld [vmem:[#allocation14 + $0xe0] ss:$8 sps:$4 sm:$0xff]   ;;  %v9503_v14 = vld [vmem:[#allocation14 + $0x110] ss:$8 sps:$4 sm:$0xff]  }
 0x5c2   : > { %6687 = vmatpush1.bf16.msra.mxu1 %v6513_v41  ;;  %7507 = vmatprep.subr.bf16.mxu0 %v9457_v12  ;;  %v9502_v58 = vld [vmem:[#allocation14 + $0xd4] ss:$8 sps:$4 sm:$0xff]   ;;  %v9511_v7 = vld [vmem:[#allocation14 + $0x104] ss:$8 sps:$4 sm:$0xff]   ;;  %v9500_v48 = vld [vmem:[#allocation14 + $0xd0] ss:$8 sps:$4 sm:$0xff]  }
 0x5c3   : > { %6688 = vmatprep.subr.bf16.mxu1 %v6506_v11  ;;  %v9508_v2 = vld [vmem:[#allocation14 + $0xc4] ss:$8 sps:$4 sm:$0xff]   ;;  %v9509_v16 = vld [vmem:[#allocation14 + $0x100] ss:$8 sps:$4 sm:$0xff]   ;;  %v9517_v34 = vld [vmem:[#allocation14 + $0x1f4] ss:$8 sps:$4 sm:$0xff]  }
 0x5c4   : > { %v9506_v42 = vld [vmem:[#allocation14 + $0xc0] ss:$8 sps:$4 sm:$0xff]   ;;  %v9514_v6 = vld [vmem:[#allocation14 + $0xb4] ss:$8 sps:$4 sm:$0xff]   ;;  %v9515_v37 = vld [vmem:[#allocation14 + $0x1f0] ss:$8 sps:$4 sm:$0xff]  }
 0x5c5   : > { %7508 = vmatpush1.bf16.msra.mxu0 %v9455_v32  ;;  %v9523_v45 = vld [vmem:[#allocation14 + $0x1e4] ss:$8 sps:$4 sm:$0xff]   ;;  %v9512_v53 = vld [vmem:[#allocation14 + $0xb0] ss:$8 sps:$4 sm:$0xff]   ;;  %v9521_v40 = vld [vmem:[#allocation14 + $0x1e0] ss:$8 sps:$4 sm:$0xff]  }
 0x5c6   : > { %6689 = vmatpush1.bf16.msra.mxu1 %v6505_v1  ;;  %7509 = vmatprep.subr.bf16.mxu0 %v9460_v57  ;;  %v9520_v59 = vld [vmem:[#allocation14 + $0xa4] ss:$8 sps:$4 sm:$0xff]   ;;  %v9529_v60 = vld [vmem:[#allocation14 + $0x1d4] ss:$8 sps:$4 sm:$0xff]   ;;  %v9518_v54 = vld [vmem:[#allocation14 + $0xa0] ss:$8 sps:$4 sm:$0xff]  }
 0x5c7   : > { %6690 = vmatprep.subr.bf16.mxu1 %v6498_v33  ;;  %v9526_v50 = vld [vmem:[#allocation14 + $0x94] ss:$8 sps:$4 sm:$0xff]   ;;  %v9527_v41 = vld [vmem:[#allocation14 + $0x1d0] ss:$8 sps:$4 sm:$0xff]   ;;  %v9535_v63 = vld [vmem:[#allocation14 + $0x1c4] ss:$8 sps:$4 sm:$0xff]  }
 0x5c8   : > { %v9524_v18 = vld [vmem:[#allocation14 + $0x90] ss:$8 sps:$4 sm:$0xff]   ;;  %v9532_v26 = vld [vmem:[#allocation14 + $0x84] ss:$8 sps:$4 sm:$0xff]   ;;  %v9533_v31 = vld [vmem:[#allocation14 + $0x1c0] ss:$8 sps:$4 sm:$0xff]  }
 0x5c9   : > { %7510 = vmatpush1.bf16.msra.mxu0 %v9458_v28  ;;  %v9538_v24 = vld [vmem:[#allocation14 + $0x1b4] ss:$8 sps:$4 sm:$0xff]   ;;  %v9530_v12 = vld [vmem:[#allocation14 + $0x80] ss:$8 sps:$4 sm:$0xff]   ;;  %v9536_v11 = vld [vmem:[#allocation14 + $0x1b0] ss:$8 sps:$4 sm:$0xff]  }
 0x5ca   : > { %6691 = vmatpush1.bf16.msra.mxu1 %v6497_v47  ;;  %7511 = vmatprep.subr.bf16.mxu0 %v9463_v35  ;;  %v9541_v27 = vld [vmem:[#allocation14 + $0x274] ss:$8 sps:$4 sm:$0xff]   ;;  %v9544_v30 = vld [vmem:[#allocation14 + $0x1a4] ss:$8 sps:$4 sm:$0xff]   ;;  %v9542_v32 = vld [vmem:[#allocation14 + $0x1a0] ss:$8 sps:$4 sm:$0xff]  }
 0x5cb   : > { %7546 = vmatprep.subr.bf16.mxu1 %v9469_v44  ;;  %v9550_v1 = vld [vmem:[#allocation14 + $0x194] ss:$8 sps:$4 sm:$0xff]   ;;  %v9548_v61 = vld [vmem:[#allocation14 + $0x190] ss:$8 sps:$4 sm:$0xff]   ;;  %v9556_v15 = vld [vmem:[#allocation14 + $0x184] ss:$8 sps:$4 sm:$0xff]  }
 0x5cc   : > { %v9554_v57 = vld [vmem:[#allocation14 + $0x180] ss:$8 sps:$4 sm:$0xff]   ;;  %v9565_v33 = vld [vmem:[#allocation14 + $0x374] ss:$8 sps:$4 sm:$0xff]   ;;  %v9539_v44 = vld [vmem:[#allocation14 + $0x270] ss:$8 sps:$4 sm:$0xff]  }
 0x5cd   : > { %8687 = vmatmul.mubr.msk.bf16.vlgmr.msra.gmra.mxu1 %vm6524_vm1, %v11681_v22  ;;  %7512 = vmatpush1.bf16.msra.mxu0 %v9461_v51  ;;  %v9482_v22 = vld [vmem:[#allocation14] ss:$8 sps:$4 sm:$0xff]  }
 0x5ce   : > { %7513 = vmatprep.subr.bf16.mxu0 %v9466_v39  ;;  %7547 = vmatpush1.bf16.msra.mxu1 %v9467_v19  ;;  %v9547_v19 = vld [vmem:[#allocation14 + $0x264] ss:$8 sps:$4 sm:$0xff]  }
 0x5cf   : > { %7548 = vmatprep.subr.bf16.mxu1 %v9475_v20  ;;  %v9545_v20 = vld [vmem:[#allocation14 + $0x260] ss:$8 sps:$4 sm:$0xff]  }
 0x5d1   : > { %7514 = vmatpush1.bf16.msra.mxu0 %v9464_v10 }
 0x5d2   : > { %7515 = vmatprep.subr.bf16.mxu0 %v9472_v4  ;;  %7549 = vmatpush1.bf16.msra.mxu1 %v9473_v49  ;;  %v9553_v4 = vld [vmem:[#allocation14 + $0x254] ss:$8 sps:$4 sm:$0xff]   ;;  %v9551_v49 = vld [vmem:[#allocation14 + $0x250] ss:$8 sps:$4 sm:$0xff]  }
 0x5d3   : > { %7550 = vmatprep.subr.bf16.mxu1 %v9481_v17  ;;  %v9559_v17 = vld [vmem:[#allocation14 + $0x244] ss:$8 sps:$4 sm:$0xff]  }
 0x5d5   : > { %7516 = vmatpush1.bf16.msra.mxu0 %v9470_v0  ;;  %v9557_v0 = vld [vmem:[#allocation14 + $0x240] ss:$8 sps:$4 sm:$0xff]  }
 0x5d6   : > { %7517 = vmatprep.subr.bf16.mxu0 %v9478_v43  ;;  %7551 = vmatpush1.bf16.msra.mxu1 %v9479_v8  ;;  %v9562_v8 = vld [vmem:[#allocation14 + $0x234] ss:$8 sps:$4 sm:$0xff]  }
 0x5d7   : > { %7552 = vmatprep.subr.bf16.mxu1 %v9487_v3 }
 0x5d9   : > { %7518 = vmatpush1.bf16.msra.mxu0 %v9476_v56 }
 0x5da   : > { %7519 = vmatprep.subr.bf16.mxu0 %v9484_v36  ;;  %7553 = vmatpush1.bf16.msra.mxu1 %v9485_v21  ;;  %v9560_v36 = vld [vmem:[#allocation14 + $0x230] ss:$8 sps:$4 sm:$0xff]  }
 0x5db   : > { %7554 = vmatprep.subr.bf16.mxu1 %v9493_v23  ;;  %v9563_v21 = vld [vmem:[#allocation14 + $0x370] ss:$8 sps:$4 sm:$0xff]  }
 0x5dd   : > { %7520 = vmatpush1.bf16.msra.mxu0 %v9482_v22 }
 0x5de   : > { %7521 = vmatprep.subr.bf16.mxu0 %v9490_v25  ;;  %7555 = vmatpush1.bf16.msra.mxu1 %v9491_v52  ;;  %v9568_v52 = vld [vmem:[#allocation14 + $0x224] ss:$8 sps:$4 sm:$0xff]  }
 0x5df   : > { %7556 = vmatprep.subr.bf16.mxu1 %v9499_v55  ;;  %v9571_v55 = vld [vmem:[#allocation14 + $0x364] ss:$8 sps:$4 sm:$0xff]  }
 0x5e1   : > { %7522 = vmatpush2.bf16.msra.mxu0 %v9488_v13 }
 0x5e2   : > { %7523 = vmatprep.subr.bf16.mxu0 %v9496_v5  ;;  %7557 = vmatpush1.bf16.msra.mxu1 %v9497_v38 }
 0x5e3   : > { %7558 = vmatprep.subr.bf16.mxu1 %v9505_v9  ;;  %v9566_v9 = vld [vmem:[#allocation14 + $0x220] ss:$8 sps:$4 sm:$0xff]  }
 0x5e5   : > { %7524 = vmatpush2.bf16.msra.mxu0 %v9494_v29  ;;  %v9569_v29 = vld [vmem:[#allocation14 + $0x360] ss:$8 sps:$4 sm:$0xff]  }
 0x5e6   : > { %7525 = vmatprep.subr.bf16.mxu0 %v9502_v58  ;;  %7559 = vmatpush1.bf16.msra.mxu1 %v9503_v14  ;;  %v9574_v14 = vld [vmem:[#allocation14 + $0x214] ss:$8 sps:$4 sm:$0xff]  }
 0x5e7   : > { %7560 = vmatprep.subr.bf16.mxu1 %v9511_v7  ;;  %v9577_v7 = vld [vmem:[#allocation14 + $0x354] ss:$8 sps:$4 sm:$0xff]  }
 0x5e9   : > { %7526 = vmatpush2.bf16.msra.mxu0 %v9500_v48 }
 0x5ea   : > { %7527 = vmatprep.subr.bf16.mxu0 %v9508_v2  ;;  %7561 = vmatpush1.bf16.msra.mxu1 %v9509_v16  ;;  %v9572_v2 = vld [vmem:[#allocation14 + $0x210] ss:$8 sps:$4 sm:$0xff]  }
 0x5eb   : > { %7562 = vmatprep.subr.bf16.mxu1 %v9517_v34  ;;  %v9575_v16 = vld [vmem:[#allocation14 + $0x350] ss:$8 sps:$4 sm:$0xff]   ;;  %v9580_v34 = vld [vmem:[#allocation14 + $0x204] ss:$8 sps:$4 sm:$0xff]  }
 0x5ed   : > { %7528 = vmatpush2.bf16.msra.mxu0 %v9506_v42  ;;  %v9583_v42 = vld [vmem:[#allocation14 + $0x344] ss:$8 sps:$4 sm:$0xff]  }
 0x5ee   : > { %7529 = vmatprep.subr.bf16.mxu0 %v9514_v6  ;;  %7563 = vmatpush2.bf16.msra.mxu1 %v9515_v37  ;;  %v9578_v6 = vld [vmem:[#allocation14 + $0x200] ss:$8 sps:$4 sm:$0xff]  }
 0x5ef   : > { %7564 = vmatprep.subr.bf16.mxu1 %v9523_v45  ;;  %v9581_v37 = vld [vmem:[#allocation14 + $0x340] ss:$8 sps:$4 sm:$0xff]   ;;  %v9586_v45 = vld [vmem:[#allocation14 + $0x2f4] ss:$8 sps:$4 sm:$0xff]  }
 0x5f1   : > { %7530 = vmatpush2.bf16.msra.mxu0 %v9512_v53  ;;  %v9589_v53 = vld [vmem:[#allocation14 + $0x334] ss:$8 sps:$4 sm:$0xff]  }
 0x5f2   : > { %7531 = vmatprep.subr.bf16.mxu0 %v9520_v59  ;;  %7565 = vmatpush2.bf16.msra.mxu1 %v9521_v40 }
 0x5f3   : > { %7566 = vmatprep.subr.bf16.mxu1 %v9529_v60  ;;  %v9584_v60 = vld [vmem:[#allocation14 + $0x2f0] ss:$8 sps:$4 sm:$0xff]  }
 0x5f5   : > { %7532 = vmatpush2.bf16.msra.mxu0 %v9518_v54  ;;  %v9587_v54 = vld [vmem:[#allocation14 + $0x330] ss:$8 sps:$4 sm:$0xff]  }
 0x5f6   : > { %7533 = vmatprep.subr.bf16.mxu0 %v9526_v50  ;;  %7567 = vmatpush2.bf16.msra.mxu1 %v9527_v41  ;;  %v9592_v41 = vld [vmem:[#allocation14 + $0x2e4] ss:$8 sps:$4 sm:$0xff]  }
 0x5f7   : > { %7568 = vmatprep.subr.bf16.mxu1 %v9535_v63  ;;  %v9595_v63 = vld [vmem:[#allocation14 + $0x324] ss:$8 sps:$4 sm:$0xff]  }
 0x5f9   : > { %7534 = vmatpush2.bf16.msra.mxu0 %v9524_v18 }
 0x5fa   : > { %7535 = vmatprep.subr.bf16.mxu0 %v9532_v26  ;;  %7569 = vmatpush2.bf16.msra.mxu1 %v9533_v31  ;;  %v9590_v31 = vld [vmem:[#allocation14 + $0x2e0] ss:$8 sps:$4 sm:$0xff]  }
 0x5fb   : > { %7570 = vmatprep.subr.bf16.mxu1 %v9538_v24  ;;  %v9593_v24 = vld [vmem:[#allocation14 + $0x320] ss:$8 sps:$4 sm:$0xff]  }
 0x5fd   : > { %7536 = vmatpush2.bf16.msra.mxu0 %v9530_v12  ;;  %v9598_v12 = vld [vmem:[#allocation14 + $0x2d4] ss:$8 sps:$4 sm:$0xff]  }
 0x5fe   : > { %7587 = vmatprep.subr.bf16.mxu0 %v9541_v27  ;;  %7571 = vmatpush2.bf16.msra.mxu1 %v9536_v11  ;;  %v9601_v11 = vld [vmem:[#allocation14 + $0x314] ss:$8 sps:$4 sm:$0xff]   ;;  %v9596_v27 = vld [vmem:[#allocation14 + $0x2d0] ss:$8 sps:$4 sm:$0xff]  }
 0x5ff   : > { %7572 = vmatprep.subr.bf16.mxu1 %v9544_v30  ;;  %v9599_v30 = vld [vmem:[#allocation14 + $0x310] ss:$8 sps:$4 sm:$0xff]  }
 0x602   : > { %7573 = vmatpush2.bf16.msra.mxu1 %v9542_v32  ;;  %v9604_v32 = vld [vmem:[#allocation14 + $0x2c4] ss:$8 sps:$4 sm:$0xff]  }
 0x603   : > { %7574 = vmatprep.subr.bf16.mxu1 %v9550_v1  ;;  %v9607_v1 = vld [vmem:[#allocation14 + $0x304] ss:$8 sps:$4 sm:$0xff]  }
 0x606   : > { %7575 = vmatpush2.bf16.msra.mxu1 %v9548_v61  ;;  %v9602_v61 = vld [vmem:[#allocation14 + $0x2c0] ss:$8 sps:$4 sm:$0xff]  }
 0x607   : > { %7576 = vmatprep.subr.bf16.mxu1 %v9556_v15  ;;  %v9605_v15 = vld [vmem:[#allocation14 + $0x300] ss:$8 sps:$4 sm:$0xff]  }
 0x60a   : > { %7577 = vmatpush2.bf16.msra.mxu1 %v9554_v57  ;;  %v9610_v57 = vld [vmem:[#allocation14 + $0x2b4] ss:$8 sps:$4 sm:$0xff]  }
 0x60b   : > { %7628 = vmatprep.subr.bf16.mxu1 %v9565_v33  ;;  %v9613_v33 = vld [vmem:[#allocation14 + $0x3f4] ss:$8 sps:$4 sm:$0xff]  }
 0x66d   : > { %v6587_v28 = vpop.f32.mrf.mxu1 }
 0x66e   : > { %v6717_v51 = vpack.c.bf16 %v6587_v28, %v6587_v28  ;;  %v9608_v28 = vld [vmem:[#allocation14 + $0x2b0] ss:$8 sps:$4 sm:$0xff]  }
 0x66f   : > { %v6589_v47 = vpop.f32.mrf.mxu1 }
 0x670   : > { %v6718_v35 = vpack.c.bf16 %v6589_v47, %v6589_v47  ;;  %v9611_v47 = vld [vmem:[#allocation14 + $0x3f0] ss:$8 sps:$4 sm:$0xff]  }
 0x671   : > { %v6591_v39 = vpop.f32.mrf.mxu1 }
 0x672   : > { %7537 = vmatprep.mubr.bf16.mxu0 %v6718_v35  ;;  %v9616_v35 = vld [vmem:[#allocation14 + $0x2a4] ss:$8 sps:$4 sm:$0xff]   ;;  %v9617_v39 = vld [vmem:[#allocation14 + $0x3e0] ss:$8 sps:$4 sm:$0xff]  }
 0x673   : > { %v6592_v10 = vpop.f32.mrf.mxu1  ;;  %7538 = vmatmul.mubr.bf16.vlgmr.msra.gmra.mxu0 %v6717_v51  ;;  %v9614_v51 = vld [vmem:[#allocation14 + $0x2a0] ss:$8 sps:$4 sm:$0xff]  }
 0x674   : > { %7588 = vmatpush1.bf16.msra.mxu0 %v9539_v44  ;;  %v9619_v44 = vld [vmem:[#allocation14 + $0x3e4] ss:$8 sps:$4 sm:$0xff]   ;;  %v9625_v10 = vld [vmem:[#allocation14 + $0x3d4] ss:$8 sps:$4 sm:$0xff]  }
 0x675   : > { %7589 = vmatprep.subr.bf16.mxu0 %v9547_v19  ;;  %v9622_v19 = vld [vmem:[#allocation14 + $0x294] ss:$8 sps:$4 sm:$0xff]  }
 0x678   : > { %7590 = vmatpush1.bf16.msra.mxu0 %v9545_v20  ;;  %v9620_v20 = vld [vmem:[#allocation14 + $0x290] ss:$8 sps:$4 sm:$0xff]  }
 0x679   : > { %7591 = vmatprep.subr.bf16.mxu0 %v9553_v4  ;;  %v9623_v4 = vld [vmem:[#allocation14 + $0x3d0] ss:$8 sps:$4 sm:$0xff]  }
 0x67c   : > { %7592 = vmatpush1.bf16.msra.mxu0 %v9551_v49  ;;  %v9628_v49 = vld [vmem:[#allocation14 + $0x284] ss:$8 sps:$4 sm:$0xff]  }
 0x67d   : > { %v6628_v43 = vpop.f32.mrf.mxu1  ;;  %7593 = vmatprep.subr.bf16.mxu0 %v9559_v17  ;;  %v9631_v17 = vld [vmem:[#allocation14 + $0x3c4] ss:$8 sps:$4 sm:$0xff]  }
 0x67e   : > { %v6719_v22 = vpack.c.bf16 %v6628_v43, %v6628_v43  ;;  %v9629_v43 = vld [vmem:[#allocation14 + $0x3c0] ss:$8 sps:$4 sm:$0xff]  }
 0x67f   : > { %v6630_v3 = vpop.f32.mrf.mxu1 }
 0x680   : > { %v6720_v56 = vpack.c.bf16 %v6630_v3, %v6630_v3  ;;  %7594 = vmatpush1.bf16.msra.mxu0 %v9557_v0  ;;  %v11726_v23 = vpop.f32.mrf.mxu0  ;;  %v9626_v0 = vld [vmem:[#allocation14 + $0x280] ss:$8 sps:$4 sm:$0xff]  }
 0x681   : > { %v6632_v25 = vpop.f32.mrf.mxu1  ;;  %7595 = vmatprep.subr.bf16.mxu0 %v9562_v8  ;;  %v9634_v8 = vld [vmem:[#allocation14 + $0x3b4] ss:$8 sps:$4 sm:$0xff]   ;;  %v6721_v3 = vpack.c.bf16 %v11726_v23, %v11726_v23 }
 0x682   : > { %7578 = vmatprep.mubr.bf16.mxu1 %v6720_v56  ;;  %v6671_v13 = vpop.f32.mrf.mxu0  ;;  %v9632_v56 = vld [vmem:[#allocation14 + $0x3b0] ss:$8 sps:$4 sm:$0xff]  }
 0x683   : > { %v6633_v5 = vpop.f32.mrf.mxu1  ;;  %7579 = vmatmul.mubr.bf16.vlgmr.msra.gmra.mxu1 %v6719_v22  ;;  %v6722_v38 = vpack.c.bf16 %v6671_v13, %v6671_v13  ;;  %v9640_v22 = vld [vmem:[#allocation14 + $0x394] ss:$8 sps:$4 sm:$0xff]   ;;  %v9638_v25 = vld [vmem:[#allocation14 + $0x390] ss:$8 sps:$4 sm:$0xff]  }
 0x684   : > { %7596 = vmatpush1.bf16.msra.mxu0 %v9560_v36  ;;  %7629 = vmatpush1.bf16.msra.mxu1 %v9563_v21  ;;  %v6673_v58 = vpop.f32.mrf.mxu0  ;;  %v9637_v36 = vld [vmem:[#allocation14 + $0x3a4] ss:$8 sps:$4 sm:$0xff]   ;;  %v9635_v21 = vld [vmem:[#allocation14 + $0x3a0] ss:$8 sps:$4 sm:$0xff]  }
 0x685   : > { %7597 = vmatprep.subr.bf16.mxu0 %v9568_v52  ;;  %7630 = vmatprep.subr.bf16.mxu1 %v9571_v55  ;;  %v9643_v52 = vld [vmem:[#allocation14 + $0x384] ss:$8 sps:$4 sm:$0xff]   ;;  %v9641_v55 = vld [vmem:[#allocation14 + $0x380] ss:$8 sps:$4 sm:$0xff]  }
 0x686   : > { %7619 = vmatprep.mubr.bf16.mxu0 %v6722_v38  ;;  %v6674_v48 = vpop.f32.mrf.mxu0  ;;  %v9644_v13 = vld [vmem:[#allocation17 + $0x78] sm:$0xff]   ;;  %v9646_v38 = vld [vmem:[#allocation17 + $0x70] sm:$0xff]   ;;  %v9649_v58 = vld [vmem:[#allocation17 + $0x28] sm:$0xff]  }
 0x687   : > { %v9645_v5 = vld [vmem:[#allocation17 + $0x38] sm:$0xff]  }
 0x688   : > { %7598 = vmatpush1.bf16.msra.mxu0 %v9566_v9  ;;  %7631 = vmatpush1.bf16.msra.mxu1 %v9569_v29  ;;  %v9647_v9 = vld [vmem:[#allocation17 + $0x30] sm:$0xff]   ;;  %v9648_v29 = vld [vmem:[#allocation17 + $0x68] sm:$0xff]   ;;  %v9652_v48 = vld [vmem:[#allocation17 + $0x58] sm:$0xff]  }
 0x689   : > { %7599 = vmatprep.subr.bf16.mxu0 %v9574_v14  ;;  %7632 = vmatprep.subr.bf16.mxu1 %v9577_v7  ;;  %v9650_v14 = vld [vmem:[#allocation17 + $0x60] sm:$0xff]  }
 0x68a   : > { %v9651_v7 = vld [vmem:[#allocation17 + $0x20] sm:$0xff]  }
 0x68c   : > { %7600 = vmatpush1.bf16.msra.mxu0 %v9572_v2  ;;  %7633 = vmatpush1.bf16.msra.mxu1 %v9575_v16  ;;  %v9653_v2 = vld [vmem:[#allocation17 + $0x18] sm:$0xff]   ;;  %v9654_v16 = vld [vmem:[#allocation17 + $0x50] sm:$0xff]  }
 0x68d   : > { %7601 = vmatprep.subr.bf16.mxu0 %v9580_v34  ;;  %7634 = vmatprep.subr.bf16.mxu1 %v9583_v42  ;;  %v11728_v59 = vpop.f32.mrf.mxu1  ;;  %v9655_v34 = vld [vmem:[#allocation17 + $0x10] sm:$0xff]   ;;  %v9656_v42 = vld [vmem:[#allocation17 + $0x48] sm:$0xff]  }
 0x68e   : > { %v6723_v23 = vpack.c.bf16 %v11728_v59, %v11728_v59 }
 0x68f   : > { %v6712_v40 = vpop.f32.mrf.mxu1 }
 0x690   : > { %7602 = vmatpush1.bf16.msra.mxu0 %v9578_v6  ;;  %7635 = vmatpush1.bf16.msra.mxu1 %v9581_v37  ;;  %v6724_v50 = vpack.c.bf16 %v6712_v40, %v6712_v40  ;;  %v9657_v6 = vld [vmem:[#allocation17 + $0x8] sm:$0xff]   ;;  %v9658_v37 = vld [vmem:[#allocation17 + $0x40] sm:$0xff]  }
 0x691   : > { %7603 = vmatprep.subr.bf16.mxu0 %v9586_v45  ;;  %7636 = vmatprep.subr.bf16.mxu1 %v9589_v53  ;;  %v6714_v18 = vpop.f32.mrf.mxu1  ;;  %v9659_v45 = vld [vmem:[#allocation17] sm:$0xff]  }
 0x692   : > { %7660 = vmatprep.mubr.bf16.mxu1 %v6724_v50 }
 0x693   : > { %v6715_v26 = vpop.f32.mrf.mxu1 }
 0x694   : > { %7604 = vmatpush2.bf16.msra.mxu0 %v9584_v60  ;;  %7637 = vmatpush1.bf16.msra.mxu1 %v9587_v54 }
 0x695   : > { %7605 = vmatprep.subr.bf16.mxu0 %v9592_v41  ;;  %7638 = vmatprep.subr.bf16.mxu1 %v9595_v63 }
 0x698   : > { %7606 = vmatpush2.bf16.msra.mxu0 %v9590_v31  ;;  %7639 = vmatpush1.bf16.msra.mxu1 %v9593_v24  ;;  %v6853_v31 = vld [vmem:[#allocation15] sm:$0x3] }
 0x699   : > { %7607 = vmatprep.subr.bf16.mxu0 %v9598_v12  ;;  %7640 = vmatprep.subr.bf16.mxu1 %v9601_v11  ;;  %v6858_v11 = vrot.slane %v6853_v31, %v10863_v62 }
 0x69c   : > { %7608 = vmatpush2.bf16.msra.mxu0 %v9596_v27  ;;  %7641 = vmatpush1.bf16.msra.mxu1 %v9599_v30  ;;  %v6862_v27 = vrot.slane %v6853_v31, %v10870_v46  ;;  %v8816_v46 = vld [vmem:[#allocation18] ss:$0 sm:$0xff] }
 0x69d   : > { %7609 = vmatprep.subr.bf16.mxu0 %v9604_v32  ;;  %7642 = vmatprep.subr.bf16.mxu1 %v9607_v1 }
 0x6a0   : > { %7610 = vmatpush2.bf16.msra.mxu0 %v9602_v61  ;;  %7643 = vmatpush1.bf16.msra.mxu1 %v9605_v15 }
 0x6a1   : > { %7611 = vmatprep.subr.bf16.mxu0 %v9610_v57  ;;  %7644 = vmatprep.subr.bf16.mxu1 %v9613_v33 }
 0x6a4   : > { %7612 = vmatpush2.bf16.msra.mxu0 %v9608_v28  ;;  %7645 = vmatpush2.bf16.msra.mxu1 %v9611_v47 }
 0x6a5   : > { %7613 = vmatprep.subr.bf16.mxu0 %v9616_v35  ;;  %7646 = vmatprep.subr.bf16.mxu1 %v9619_v44 }
 0x6a8   : > { %7614 = vmatpush2.bf16.msra.mxu0 %v9614_v51  ;;  %7647 = vmatpush2.bf16.msra.mxu1 %v9617_v39 }
 0x6a9   : > { %7615 = vmatprep.subr.bf16.mxu0 %v9622_v19  ;;  %7648 = vmatprep.subr.bf16.mxu1 %v9625_v10 }
 0x6ac   : > { %7616 = vmatpush2.bf16.msra.mxu0 %v9620_v20  ;;  %7649 = vmatpush2.bf16.msra.mxu1 %v9623_v4 }
 0x6ad   : > { %7617 = vmatprep.subr.bf16.mxu0 %v9628_v49  ;;  %7650 = vmatprep.subr.bf16.mxu1 %v9631_v17 }
 0x6b0   : > { %7618 = vmatpush2.bf16.msra.mxu0 %v9626_v0  ;;  %7651 = vmatpush2.bf16.msra.mxu1 %v9629_v43 }
 0x6b1   : > { %7652 = vmatprep.subr.bf16.mxu1 %v9634_v8  ;;  %8867 = vmatprep.subr.bf16.mxu0 %v9644_v13 }
 0x6b3   : > { %7620 = vmatmul.mubr.bf16.vlgmr.msra.gmra.mxu0 %v6721_v3 }
 0x6b4   : > { %7653 = vmatpush2.bf16.msra.mxu1 %v9632_v56  ;;  %8868 = vmatpush3.bf16.msra.mxu0 %v9645_v5 }
 0x6b5   : > { %7654 = vmatprep.subr.bf16.mxu1 %v9637_v36  ;;  %8869 = vmatprep.subr.bf16.mxu0 %v9646_v38 }
 0x6b8   : > { %7655 = vmatpush2.bf16.msra.mxu1 %v9635_v21  ;;  %8870 = vmatpush3.bf16.msra.mxu0 %v9647_v9 }
 0x6b9   : > { %7656 = vmatprep.subr.bf16.mxu1 %v9640_v22  ;;  %8871 = vmatprep.subr.bf16.mxu0 %v9648_v29 }
 0x6bc   : > { %7657 = vmatpush2.bf16.msra.mxu1 %v9638_v25  ;;  %8872 = vmatpush3.bf16.msra.mxu0 %v9649_v58 }
 0x6bd   : > { %7658 = vmatprep.subr.bf16.mxu1 %v9643_v52  ;;  %8873 = vmatprep.subr.bf16.mxu0 %v9650_v14 }
 0x6c0   : > { %7659 = vmatpush2.bf16.msra.mxu1 %v9641_v55  ;;  %8874 = vmatpush3.bf16.msra.mxu0 %v9651_v7 }
 0x6c1   : > { %8875 = vmatprep.subr.bf16.mxu0 %v9652_v48 }
 0x6c3   : > { %7661 = vmatmul.mubr.bf16.vlgmr.msra.gmra.mxu1 %v6723_v23 }
 0x6c4   : > { %8876 = vmatpush3.bf16.msra.mxu0 %v9653_v2 }
 0x6c5   : > { %8877 = vmatprep.subr.bf16.mxu0 %v9654_v16 }
 0x6c8   : > { %8878 = vmatpush3.bf16.msra.mxu0 %v9655_v34 }
 0x6c9   : > { %8879 = vmatprep.subr.bf16.mxu0 %v9656_v42 }
 0x6cc   : > { %8880 = vmatpush3.bf16.msra.mxu0 %v9657_v6 }
 0x6cd   : > { %8881 = vmatprep.subr.bf16.mxu0 %v9658_v37 }
 0x6d0   : > { %8882 = vmatpush3.bf16.msra.mxu0 %v9659_v45 }
 0x733   : > { %v7539_v53 = vpop.f32.mrf.mxu0 }
 0x734   : > { %v7540_v30 = vadd.f32 %v7539_v53, %v6858_v11 }
 0x735   : > { %v7541_v59 = vpop.f32.mrf.mxu0 }
 0x736   : > { %v7542_v32 = vadd.f32 %v7541_v59, %v6862_v27 }
 0x737   : > { %v7543_v40 = vpop.f32.mrf.mxu0 }
 0x739   : > { %v7544_v60 = vpop.f32.mrf.mxu0 }
 0x743   : > { %v7580_v54 = vpop.f32.mrf.mxu1 }
 0x744   : > { %v7581_v1 = vadd.f32 %v7580_v54, %v7540_v30 }
 0x745   : > { %v7582_v50 = vpop.f32.mrf.mxu1 }
 0x746   : > { %v7583_v61 = vadd.f32 %v7582_v50, %v7542_v32 }
 0x747   : > { %v7584_v41 = vpop.f32.mrf.mxu1 }
 0x749   : > { %v7585_v63 = vpop.f32.mrf.mxu1 }
 0x773   : > { %v7621_v18 = vpop.f32.mrf.mxu0 }
 0x774   : > { %v7622_v15 = vadd.f32 %v7621_v18, %v7581_v1 }
 0x775   : > { %v7623_v26 = vpop.f32.mrf.mxu0 }
 0x776   : > { %v7624_v33 = vadd.f32 %v7623_v26, %v7583_v61 }
 0x777   : > { %v7625_v24 = vpop.f32.mrf.mxu0 }
 0x779   : > { %v7626_v12 = vpop.f32.mrf.mxu0 }
 0x783   : > { %v7662_v57 = vpop.f32.mrf.mxu1 }
 0x784   : > { %v7663_v28 = vadd.f32 %v7662_v57, %v7622_v15 }
 0x785   : > { %v7664_v47 = vpop.f32.mrf.mxu1 }
 0x786   : > { %v7665_v35 = vadd.f32 %v7664_v47, %v7624_v33  ;;  %v7669_v44 = vmax.f32 %v7663_v28, 0.0 }
 0x787   : > { %v7666_v51 = vpop.f32.mrf.mxu1 }
 0x788   : > { %v7670_v39 = vmax.f32 %v7665_v35, 0.0  ;;  %v7671_v20 = vpack.c.bf16 %v7669_v44, %v7669_v44 }
 0x789   : > { %v7667_v19 = vpop.f32.mrf.mxu1 }
 0x78a   : > { %v7672_v10 = vpack.c.bf16 %v7670_v39, %v7670_v39 }
 0x78c   : > { %7840 = vmatprep.mubr.bf16.mxu0 %v7672_v10 }
 0x78d   : > { %7841 = vmatmul.mubr.bf16.vlgmr.msra.gmra.mxu0 %v7671_v20 }
 0x84d   : > { %v8883_v62 = vpop.f32.mrf.mxu0 }
 0x84f   : > { %v8884_v4 = vpop.f32.mrf.mxu0 }
 0x850   : > { %v8885_v49 = vadd.f32 %v8884_v4, %v8883_v62 }
 0x851   : > { %v8886_v17 = vpop.f32.mrf.mxu0 }
 0x852   : > { %v7843_v0 = vadd.f32 %v8885_v49, %v8816_v46 }
 0x853   : > { %v8887_v43 = vpop.f32.mrf.mxu0 }
 0x854   : > { %v7848_v8 = vmax.f32 %v7843_v0, 0.0 }
 0x856   : > { %7849 = vst [vmem:[%s11838_s30] sm:$0xff] %v7848_v8 }
 0x857 PF: > { %s11839_s24 = sld [smem:[#allocation28_spill]]  ;;  %s11842_s22 = smov %s10006_s23 }
 0x858   : > { %s11840_s21 = sld [smem:[#allocation27_spill]] }
 0x859   : > { %s11841_s16 = sld [smem:[#allocation29_spill]] }
 0x85d   : > { %p24_p8 = scmp.ge.s32.totalorder %s11839_s24, 6  }
 0x85f   : > { %s11843_s23 = smov %s11841_s16  ;;  %26 = sbr.rel (!%p24_p8) target bundleno = 13 (0xd), region = 165 }
 0x864   :  { %7861 = vsyncpa [#allocation5], 1 }
 0x865   :  { %7863 = vsyncpa [#allocation5 + $0x1], 1 }
 0x866   :  { %7864 = vsyncpa [#allocation7], 1 }
 0x867   :  { %7865 = vsyncpa [#allocation13], 1 }
 0x868   :  { %7866 = vsyncpa [#allocation16], 1 }
 0x869   :  { %7867 = vsyncpa [#allocation19], 1 }

</bundles_post_ra>
